<compile_context>
chip_gen: v7x
topology: tpu7x:2x2x1
jax: 0.10.0
libtpu: 0.0.40
codegen_flags: <defaults>
</compile_context>

<pallas_src>
import functools

import numpy as np
import jax
import jax.numpy as jnp
from jax import lax
from jax.experimental import pallas as pl
from jax.experimental.pallas import tpu as pltpu


def _cutout_kernel(x_ref, ridx_ref, rw_ref, cidx_ref, cw_ref, o_ref):
    """One grid step: Pt fused batch*channel images x NT cutouts.

    x_ref:    (Pt, H, W)    image tile (resident; constant over the cutout axis)
    ridx_ref: (NT, S, 2)    int32 global row (height) indices [i0, i1]
    rw_ref:   (NT, S, 2)    row weights [w0, w1]
    cidx_ref: (NT, 2, S)    int32 global col (width) indices
    cw_ref:   (NT, 2, S)    col weights
    o_ref:    (NT, Pt, S, S)
    """
    Pt, H, W = x_ref.shape
    NT, S, _ = ridx_ref.shape
    cdt = rw_ref.dtype

    # (Pt, H, W) -> (Pt*H, W): merge leading dims, last dim unchanged (layout free).
    x2 = x_ref[...].reshape(Pt * H, W)

    hpos = lax.broadcasted_iota(jnp.int32, (S, H), 1)
    wpos = lax.broadcasted_iota(jnp.int32, (W, S), 0)
    zero = jnp.zeros((), cdt)

    for t in range(NT):                       # NT is a small trace-time constant
        ri = ridx_ref[t]                      # (S, 2)
        rwt = rw_ref[t]                       # (S, 2)
        ci = cidx_ref[t]                      # (2, S)
        cwt = cw_ref[t]                       # (2, S)

        # Dense crop+bilinear-resize matrices built in-kernel from the 2-tap tables.
        wrow = (jnp.where(hpos == ri[:, 0:1], rwt[:, 0:1], zero)
                + jnp.where(hpos == ri[:, 1:2], rwt[:, 1:2], zero))       # (S, H)
        wcolT = (jnp.where(wpos == ci[0:1, :], cwt[0:1, :], zero)
                 + jnp.where(wpos == ci[1:2, :], cwt[1:2, :], zero))      # (W, S)

        # Width contraction: one large 2D MXU matmul with f32 accumulation.
        t1 = jnp.dot(x2, wcolT, preferred_element_type=jnp.float32)       # (Pt*H, S)
        t1 = t1.astype(cdt).reshape(Pt, H, S)

        # Height contraction: Pt 2D matmuls sharing the loop-invariant wrow.
        for p in range(Pt):
            o_ref[t, p] = jnp.dot(
                wrow, t1[p], preferred_element_type=jnp.float32
            ).astype(o_ref.dtype)


def _interp_tables(sizes, offsets, cut_size, weight_dtype, stack_axis):
    """2-tap tables replicating F.interpolate(mode='bilinear', align_corners=False)
    applied to the crop [offset, offset + size) of one spatial axis."""
    sizes_f = sizes.astype(jnp.float32)[:, None]
    j = jnp.arange(cut_size, dtype=jnp.float32)[None, :]
    src = jnp.maximum(sizes_f / float(cut_size) * (j + 0.5) - 0.5, 0.0)
    i0 = jnp.minimum(jnp.floor(src).astype(jnp.int32), sizes[:, None] - 1)
    i1 = jnp.minimum(i0 + 1, sizes[:, None] - 1)
    w1 = src - i0.astype(jnp.float32)
    w0 = 1.0 - w1
    idx = jnp.stack([offsets[:, None] + i0, offsets[:, None] + i1], axis=stack_axis)
    w = jnp.stack([w0, w1], axis=stack_axis).astype(weight_dtype)
    return idx.astype(jnp.int32), w


def _vmem_capacity_bytes():
    try:
        return int(pltpu.get_tpu_info().vmem_capacity_bytes)
    except Exception:
        return 64 * 1024 * 1024          # conservative default (v7x per-TC VMEM)


def _per_step_vmem(pt, nt, H, W, S, cbytes, obytes, x_buffers):
    x_block = x_buffers * pt * H * W * cbytes      # pipelined image-tile buffers
    x_vals = pt * H * W * cbytes                   # value loaded in-kernel
    interm = pt * H * S * (4 + cbytes)             # f32 matmul result + cast copy
    interp = (S * H + W * S) * max(cbytes, 4)      # in-kernel wrow / wcolT (+ iotas)
    out_blk = 2 * nt * pt * S * S * obytes         # double-buffered output tile
    tables = 2 * 2 * nt * S * 2 * (4 + cbytes)     # idx/weight tables
    return x_block + x_vals + interm + interp + out_blk + tables + (2 << 20)


def _choose_tiles(P, N, H, W, S, cbytes, obytes, x_buffers, budget,
                  max_pt=16, max_nt=8, max_unroll=64):
    def divisors(v, cap):
        return [d for d in range(1, min(v, cap) + 1) if v % d == 0]

    best = (1, 1)
    for pt in divisors(P, max_pt):
        for nt in divisors(N, max_nt):
            if pt * nt > max_unroll:
                continue
            if _per_step_vmem(pt, nt, H, W, S, cbytes, obytes, x_buffers) > budget:
                continue
            if (pt, nt) > best:          # prefer larger Pt, then larger NT
                best = (pt, nt)
    return best


@functools.partial(jax.jit, static_argnames=("cut_size", "cut_pow", "single_buffer_x"))
def _make_cutouts_fwd(x, u_size, u_ox, u_oy, *, cut_size, cut_pow, single_buffer_x):
    B, C, H, W = x.shape                 # torch: side_x, side_y = H, W
    N = u_size.shape[0]
    S = int(cut_size)
    P = B * C

    max_size = min(H, W)
    min_size = min(H, W, S)

    # --- per-cutout sizes / offsets, computed on device (no host sync) ---
    sizes = jnp.floor(u_size ** cut_pow * float(max_size - min_size)
                      + float(min_size)).astype(jnp.int32)
    sizes = jnp.clip(sizes, min_size, max_size)
    offy = jnp.floor(u_oy * (H - sizes + 1).astype(jnp.float32)).astype(jnp.int32)
    offy = jnp.clip(offy, 0, H - sizes)                  # height (dim 2) offset
    offx = jnp.floor(u_ox * (W - sizes + 1).astype(jnp.float32)).astype(jnp.int32)
    offx = jnp.clip(offx, 0, W - sizes)                  # width  (dim 3) offset

    # bf16 operands (f32 accumulation) only when the input itself is bf16.
    compute_dtype = jnp.bfloat16 if x.dtype == jnp.bfloat16 else jnp.float32
    cbytes = np.dtype(compute_dtype).itemsize
    obytes = np.dtype(x.dtype).itemsize

    # 2-tap (index, weight) tables: ~4*N*S scalars instead of dense matrices.
    ridx, rw = _interp_tables(sizes, offy, S, compute_dtype, stack_axis=-1)  # (N,S,2)
    cidx, cw = _interp_tables(sizes, offx, S, compute_dtype, stack_axis=1)   # (N,2,S)

    xp = x.reshape(P, H, W).astype(compute_dtype)

    # --- tiling / VMEM budget ---
    x_buffers = 1 if single_buffer_x else 2
    budget = int(_vmem_capacity_bytes() * 0.9)
    Pt, NT = _choose_tiles(P, N, H, W, S, cbytes, obytes, x_buffers, budget)
    vmem_limit = int(min(max(_per_step_vmem(Pt, NT, H, W, S, cbytes, obytes,
                                            x_buffers),
                             32 * 1024 * 1024), budget))

    flops = 2 * N * P * S * H * (W + S)
    bytes_accessed = (P * H * W * cbytes + N * P * S * S * obytes
                      + 4 * N * S * 2 * (4 + cbytes))

    if single_buffer_x:
        # x block index is constant over the cutout axis -> single buffer is enough.
        x_spec = pl.BlockSpec((Pt, H, W), lambda p, n: (p, 0, 0),
                              pipeline_mode=pl.Buffered(1))
    else:
        x_spec = pl.BlockSpec((Pt, H, W), lambda p, n: (p, 0, 0))

    out = pl.pallas_call(
        _cutout_kernel,
        out_shape=jax.ShapeDtypeStruct((N, P, S, S), x.dtype),
        grid=(P // Pt, N // NT),          # P outermost: each x tile DMA'd exactly once
        in_specs=[
            x_spec,
            pl.BlockSpec((NT, S, 2), lambda p, n: (n, 0, 0)),
            pl.BlockSpec((NT, S, 2), lambda p, n: (n, 0, 0)),
            pl.BlockSpec((NT, 2, S), lambda p, n: (n, 0, 0)),
            pl.BlockSpec((NT, 2, S), lambda p, n: (n, 0, 0)),
        ],
        out_specs=pl.BlockSpec((NT, Pt, S, S), lambda p, n: (n, p, 0, 0)),
        compiler_params=pltpu.CompilerParams(
            dimension_semantics=("parallel", "parallel"),
            vmem_limit_bytes=vmem_limit),
        cost_estimate=pl.CostEstimate(
            flops=int(flops), transcendentals=0,
            bytes_accessed=int(bytes_accessed)),
    )(xp, ridx, rw, cidx, cw)

    # (N, B*C, S, S) -> (N*B, C, S, S), matching th.cat(cutouts) ordering.
    out = out.reshape(N * B, C, S, S)
    aux = dict(sizes=sizes, offset_x=offx, offset_y=offy,
               row_idx=ridx, row_w=rw, col_idx=cidx, col_w=cw)
    return out, aux


class MakeCutoutsPallas:
    """JAX/Pallas equivalent of cgd.util.MakeCutouts (augment_list=[] -> identity)."""

    def __init__(self, cut_size: int, num_cutouts: int,
                 cutout_size_power: float = 1.0, augment_list=()):
        self.cut_size = int(cut_size)
        self.cutn = int(num_cutouts)
        self.cut_pow = float(cutout_size_power)
        if augment_list:
            # TODO(synk): kornia-style augmentations have no Pallas equivalent here.
            raise NotImplementedError("augment_list is not supported")
        self._single_buffer_x = None      # resolved on first call

    def __call__(self, x, key):
        k1, k2, k3 = jax.random.split(key, 3)
        n = self.cutn
        u_size = jax.random.uniform(k1, (n,), dtype=jnp.float32)
        u_ox = jax.random.uniform(k2, (n,), dtype=jnp.float32)
        u_oy = jax.random.uniform(k3, (n,), dtype=jnp.float32)

        def run(single):
            return _make_cutouts_fwd(x, u_size, u_ox, u_oy,
                                     cut_size=self.cut_size, cut_pow=self.cut_pow,
                                     single_buffer_x=single)

        if self._single_buffer_x is None:
            try:
                res = run(True)
                self._single_buffer_x = True
                return res
            except Exception:
                # Fallback if this JAX build rejects pl.Buffered(1) single-buffering.
                self._single_buffer_x = False
                return run(False)
        return run(self._single_buffer_x)


if __name__ == "__main__":
    key = jax.random.PRNGKey(0)
    kx, kc = jax.random.split(key)

    B, C, H, W = 2, 4, 16, 16
    cut_size, num_cutouts = 8, 4

    x = jax.random.normal(kx, (B, C, H, W), dtype=jnp.float32)

    mod = MakeCutoutsPallas(cut_size=cut_size, num_cutouts=num_cutouts,
                            cutout_size_power=1.0)
    out, aux = mod(x, kc)
    out = jax.block_until_ready(out)

    assert out.shape == (num_cutouts * B, C, cut_size, cut_size), out.shape
    assert out.dtype == x.dtype

    # Pure-numpy reference: rebuild the dense crop+bilinear matrices from the
    # same 2-tap tables the kernel used and apply them with an einsum.
    N, S = num_cutouts, cut_size
    ridx = np.asarray(aux["row_idx"])                       # (N, S, 2)
    rw = np.asarray(aux["row_w"], np.float64)
    cidx = np.asarray(aux["col_idx"])                       # (N, 2, S)
    cw = np.asarray(aux["col_w"], np.float64)

    Wrow = np.zeros((N, S, H), np.float64)
    WcolT = np.zeros((N, W, S), np.float64)
    n_i = np.arange(N)[:, None]
    s_i = np.arange(S)[None, :]
    np.add.at(Wrow, (n_i, s_i, ridx[:, :, 0]), rw[:, :, 0])
    np.add.at(Wrow, (n_i, s_i, ridx[:, :, 1]), rw[:, :, 1])
    np.add.at(WcolT, (n_i, cidx[:, 0, :], s_i), cw[:, 0, :])
    np.add.at(WcolT, (n_i, cidx[:, 1, :], s_i), cw[:, 1, :])

    x_np = np.asarray(x, np.float64)
    ref = np.einsum("nsh,bchw,nwt->nbcst", Wrow, x_np, WcolT).reshape(
        N * B, C, S, S)
    np.testing.assert_allclose(np.asarray(out, np.float64), ref,
                               rtol=1e-4, atol=1e-4)

    # Sanity: every interpolation row/column is a convex 2-tap combination.
    np.testing.assert_allclose(Wrow.sum(-1), 1.0, atol=1e-5)
    np.testing.assert_allclose(WcolT.sum(1), 1.0, atol=1e-5)

    print("KERNEL_OK")
</pallas_src>

<mosaic_0001>
module attributes {stable_mosaic.version = 11 : i64} {
  func.func @_cutout_kernel(%arg0: i32, %arg1: i32, %arg2: memref<8x16x16xf32, #tpu.memory_space<vmem>>, %arg3: memref<4x8x2xi32, #tpu.memory_space<vmem>>, %arg4: memref<4x8x2xf32, #tpu.memory_space<vmem>>, %arg5: memref<4x2x8xi32, #tpu.memory_space<vmem>>, %arg6: memref<4x2x8xf32, #tpu.memory_space<vmem>>, %arg7: memref<4x8x8x8xf32, #tpu.memory_space<vmem>>) attributes {dimension_semantics = [#tpu.dimension_semantics<parallel>, #tpu.dimension_semantics<parallel>], iteration_bounds = array<i64: 1, 1>, scalar_prefetch = 0 : i64, scratch_operands = 0 : i64, tpu.core_type = #tpu.core_type<tc>, window_params = [{pipeline_mode = #tpu.pipeline_mode<synchronous>, transform_indices = @transform_0, window_bounds = array<i64: 8, 16, 16>}, {transform_indices = @transform_1, window_bounds = array<i64: 4, 8, 2>}, {transform_indices = @transform_2, window_bounds = array<i64: 4, 8, 2>}, {transform_indices = @transform_3, window_bounds = array<i64: 4, 2, 8>}, {transform_indices = @transform_4, window_bounds = array<i64: 4, 2, 8>}, {transform_indices = @transform_5, window_bounds = array<i64: 4, 8, 8, 8>}]} {
    %c0 = arith.constant 0 : index
    %c0_0 = arith.constant 0 : index
    %c0_1 = arith.constant 0 : index
    %0 = vector.load %arg2[%c0, %c0_0, %c0_1] : memref<8x16x16xf32, #tpu.memory_space<vmem>>, vector<8x16x16xf32>
    %1 = vector.shape_cast %0 : vector<8x16x16xf32> to vector<128x16xf32>
    %2 = tpu.iota {dimensions = array<i32: 1>} : vector<8x16xi32>
    %3 = tpu.iota {dimensions = array<i32: 0>} : vector<16x8xi32>
    %c0_2 = arith.constant 0 : index
    %c0_3 = arith.constant 0 : index
    %c0_4 = arith.constant 0 : index
    %4 = vector.load %arg3[%c0_2, %c0_3, %c0_4] : memref<4x8x2xi32, #tpu.memory_space<vmem>>, vector<1x8x2xi32>
    %5 = vector.shape_cast %4 : vector<1x8x2xi32> to vector<8x2xi32>
    %c0_5 = arith.constant 0 : index
    %c0_6 = arith.constant 0 : index
    %c0_7 = arith.constant 0 : index
    %6 = vector.load %arg4[%c0_5, %c0_6, %c0_7] : memref<4x8x2xf32, #tpu.memory_space<vmem>>, vector<1x8x2xf32>
    %7 = vector.shape_cast %6 : vector<1x8x2xf32> to vector<8x2xf32>
    %c0_8 = arith.constant 0 : index
    %c0_9 = arith.constant 0 : index
    %c0_10 = arith.constant 0 : index
    %8 = vector.load %arg5[%c0_8, %c0_9, %c0_10] : memref<4x2x8xi32, #tpu.memory_space<vmem>>, vector<1x2x8xi32>
    %9 = vector.shape_cast %8 : vector<1x2x8xi32> to vector<2x8xi32>
    %c0_11 = arith.constant 0 : index
    %c0_12 = arith.constant 0 : index
    %c0_13 = arith.constant 0 : index
    %10 = vector.load %arg6[%c0_11, %c0_12, %c0_13] : memref<4x2x8xf32, #tpu.memory_space<vmem>>, vector<1x2x8xf32>
    %11 = vector.shape_cast %10 : vector<1x2x8xf32> to vector<2x8xf32>
    %12 = vector.extract_strided_slice %5 {offsets = [0, 0], sizes = [8, 1], strides = [1, 1]} : vector<8x2xi32> to vector<8x1xi32>
    %13 = vector.broadcast %12 : vector<8x1xi32> to vector<8x16xi32>
    %14 = arith.cmpi eq, %2, %13 : vector<8x16xi32>
    %15 = vector.extract_strided_slice %7 {offsets = [0, 0], sizes = [8, 1], strides = [1, 1]} : vector<8x2xf32> to vector<8x1xf32>
    %cst = arith.constant 0.000000e+00 : f32
    %16 = vector.shape_cast %15 : vector<8x1xf32> to vector<8x1xf32>
    %17 = vector.broadcast %16 : vector<8x1xf32> to vector<8x16xf32>
    %18 = vector.broadcast %cst : f32 to vector<8x16xf32>
    %19 = arith.select %14, %17, %18 : vector<8x16xi1>, vector<8x16xf32>
    %20 = vector.extract_strided_slice %5 {offsets = [0, 1], sizes = [8, 1], strides = [1, 1]} : vector<8x2xi32> to vector<8x1xi32>
    %21 = vector.broadcast %20 : vector<8x1xi32> to vector<8x16xi32>
    %22 = arith.cmpi eq, %2, %21 : vector<8x16xi32>
    %23 = vector.extract_strided_slice %7 {offsets = [0, 1], sizes = [8, 1], strides = [1, 1]} : vector<8x2xf32> to vector<8x1xf32>
    %cst_14 = arith.constant 0.000000e+00 : f32
    %24 = vector.shape_cast %23 : vector<8x1xf32> to vector<8x1xf32>
    %25 = vector.broadcast %24 : vector<8x1xf32> to vector<8x16xf32>
    %26 = vector.broadcast %cst_14 : f32 to vector<8x16xf32>
    %27 = arith.select %22, %25, %26 : vector<8x16xi1>, vector<8x16xf32>
    %28 = arith.addf %19, %27 : vector<8x16xf32>
    %29 = vector.extract_strided_slice %9 {offsets = [0, 0], sizes = [1, 8], strides = [1, 1]} : vector<2x8xi32> to vector<1x8xi32>
    %30 = vector.broadcast %29 : vector<1x8xi32> to vector<16x8xi32>
    %31 = arith.cmpi eq, %3, %30 : vector<16x8xi32>
    %32 = vector.extract_strided_slice %11 {offsets = [0, 0], sizes = [1, 8], strides = [1, 1]} : vector<2x8xf32> to vector<1x8xf32>
    %cst_15 = arith.constant 0.000000e+00 : f32
    %33 = vector.shape_cast %32 : vector<1x8xf32> to vector<1x8xf32>
    %34 = vector.broadcast %33 : vector<1x8xf32> to vector<16x8xf32>
    %35 = vector.broadcast %cst_15 : f32 to vector<16x8xf32>
    %36 = arith.select %31, %34, %35 : vector<16x8xi1>, vector<16x8xf32>
    %37 = vector.extract_strided_slice %9 {offsets = [1, 0], sizes = [1, 8], strides = [1, 1]} : vector<2x8xi32> to vector<1x8xi32>
    %38 = vector.broadcast %37 : vector<1x8xi32> to vector<16x8xi32>
    %39 = arith.cmpi eq, %3, %38 : vector<16x8xi32>
    %40 = vector.extract_strided_slice %11 {offsets = [1, 0], sizes = [1, 8], strides = [1, 1]} : vector<2x8xf32> to vector<1x8xf32>
    %cst_16 = arith.constant 0.000000e+00 : f32
    %41 = vector.shape_cast %40 : vector<1x8xf32> to vector<1x8xf32>
    %42 = vector.broadcast %41 : vector<1x8xf32> to vector<16x8xf32>
    %43 = vector.broadcast %cst_16 : f32 to vector<16x8xf32>
    %44 = arith.select %39, %42, %43 : vector<16x8xi1>, vector<16x8xf32>
    %45 = arith.addf %36, %44 : vector<16x8xf32>
    %cst_17 = arith.constant dense<0.000000e+00> : vector<128x8xf32>
    %46 = tpu.matmul %1, %45, %cst_17 {dimension_numbers = #tpu.dot_dimension_numbers<[1], [0], [0], [1], [0, 0, 1, 1], [], []>} : vector<128x16xf32>, vector<16x8xf32>, vector<128x8xf32> -> vector<128x8xf32>
    %47 = vector.shape_cast %46 : vector<128x8xf32> to vector<8x16x8xf32>
    %48 = vector.extract_strided_slice %47 {offsets = [0, 0, 0], sizes = [1, 16, 8], strides = [1, 1, 1]} : vector<8x16x8xf32> to vector<1x16x8xf32>
    %49 = vector.shape_cast %48 : vector<1x16x8xf32> to vector<16x8xf32>
    %cst_18 = arith.constant dense<0.000000e+00> : vector<8x8xf32>
    %50 = tpu.matmul %28, %49, %cst_18 {dimension_numbers = #tpu.dot_dimension_numbers<[1], [0], [0], [1], [0, 0, 1, 1], [], []>} : vector<8x16xf32>, vector<16x8xf32>, vector<8x8xf32> -> vector<8x8xf32>
    %c0_19 = arith.constant 0 : index
    %c0_20 = arith.constant 0 : index
    %c0_21 = arith.constant 0 : index
    %c0_22 = arith.constant 0 : index
    %51 = vector.load %arg7[%c0_19, %c0_20, %c0_21, %c0_22] : memref<4x8x8x8xf32, #tpu.memory_space<vmem>>, vector<1x1x8x8xf32>
    %52 = vector.shape_cast %51 : vector<1x1x8x8xf32> to vector<8x8xf32>
    %53 = vector.shape_cast %50 : vector<8x8xf32> to vector<1x1x8x8xf32>
    tpu.vector_store %arg7[%c0_19, %c0_20, %c0_21, %c0_22], %53 {strides = array<i32>} : memref<4x8x8x8xf32, #tpu.memory_space<vmem>>, vector<1x1x8x8xf32>,
    %54 = vector.extract_strided_slice %47 {offsets = [1, 0, 0], sizes = [1, 16, 8], strides = [1, 1, 1]} : vector<8x16x8xf32> to vector<1x16x8xf32>
    %55 = vector.shape_cast %54 : vector<1x16x8xf32> to vector<16x8xf32>
    %cst_23 = arith.constant dense<0.000000e+00> : vector<8x8xf32>
    %56 = tpu.matmul %28, %55, %cst_23 {dimension_numbers = #tpu.dot_dimension_numbers<[1], [0], [0], [1], [0, 0, 1, 1], [], []>} : vector<8x16xf32>, vector<16x8xf32>, vector<8x8xf32> -> vector<8x8xf32>
    %c0_24 = arith.constant 0 : index
    %c1 = arith.constant 1 : index
    %c0_25 = arith.constant 0 : index
    %c0_26 = arith.constant 0 : index
    %57 = vector.load %arg7[%c0_24, %c1, %c0_25, %c0_26] : memref<4x8x8x8xf32, #tpu.memory_space<vmem>>, vector<1x1x8x8xf32>
    %58 = vector.shape_cast %57 : vector<1x1x8x8xf32> to vector<8x8xf32>
    %59 = vector.shape_cast %56 : vector<8x8xf32> to vector<1x1x8x8xf32>
    tpu.vector_store %arg7[%c0_24, %c1, %c0_25, %c0_26], %59 {strides = array<i32>} : memref<4x8x8x8xf32, #tpu.memory_space<vmem>>, vector<1x1x8x8xf32>,
    %60 = vector.extract_strided_slice %47 {offsets = [2, 0, 0], sizes = [1, 16, 8], strides = [1, 1, 1]} : vector<8x16x8xf32> to vector<1x16x8xf32>
    %61 = vector.shape_cast %60 : vector<1x16x8xf32> to vector<16x8xf32>
    %cst_27 = arith.constant dense<0.000000e+00> : vector<8x8xf32>
    %62 = tpu.matmul %28, %61, %cst_27 {dimension_numbers = #tpu.dot_dimension_numbers<[1], [0], [0], [1], [0, 0, 1, 1], [], []>} : vector<8x16xf32>, vector<16x8xf32>, vector<8x8xf32> -> vector<8x8xf32>
    %c0_28 = arith.constant 0 : index
    %c2 = arith.constant 2 : index
    %c0_29 = arith.constant 0 : index
    %c0_30 = arith.constant 0 : index
    %63 = vector.load %arg7[%c0_28, %c2, %c0_29, %c0_30] : memref<4x8x8x8xf32, #tpu.memory_space<vmem>>, vector<1x1x8x8xf32>
    %64 = vector.shape_cast %63 : vector<1x1x8x8xf32> to vector<8x8xf32>
    %65 = vector.shape_cast %62 : vector<8x8xf32> to vector<1x1x8x8xf32>
    tpu.vector_store %arg7[%c0_28, %c2, %c0_29, %c0_30], %65 {strides = array<i32>} : memref<4x8x8x8xf32, #tpu.memory_space<vmem>>, vector<1x1x8x8xf32>,
    %66 = vector.extract_strided_slice %47 {offsets = [3, 0, 0], sizes = [1, 16, 8], strides = [1, 1, 1]} : vector<8x16x8xf32> to vector<1x16x8xf32>
    %67 = vector.shape_cast %66 : vector<1x16x8xf32> to vector<16x8xf32>
    %cst_31 = arith.constant dense<0.000000e+00> : vector<8x8xf32>
    %68 = tpu.matmul %28, %67, %cst_31 {dimension_numbers = #tpu.dot_dimension_numbers<[1], [0], [0], [1], [0, 0, 1, 1], [], []>} : vector<8x16xf32>, vector<16x8xf32>, vector<8x8xf32> -> vector<8x8xf32>
    %c0_32 = arith.constant 0 : index
    %c3 = arith.constant 3 : index
    %c0_33 = arith.constant 0 : index
    %c0_34 = arith.constant 0 : index
    %69 = vector.load %arg7[%c0_32, %c3, %c0_33, %c0_34] : memref<4x8x8x8xf32, #tpu.memory_space<vmem>>, vector<1x1x8x8xf32>
    %70 = vector.shape_cast %69 : vector<1x1x8x8xf32> to vector<8x8xf32>
    %71 = vector.shape_cast %68 : vector<8x8xf32> to vector<1x1x8x8xf32>
    tpu.vector_store %arg7[%c0_32, %c3, %c0_33, %c0_34], %71 {strides = array<i32>} : memref<4x8x8x8xf32, #tpu.memory_space<vmem>>, vector<1x1x8x8xf32>,
    %72 = vector.extract_strided_slice %47 {offsets = [4, 0, 0], sizes = [1, 16, 8], strides = [1, 1, 1]} : vector<8x16x8xf32> to vector<1x16x8xf32>
    %73 = vector.shape_cast %72 : vector<1x16x8xf32> to vector<16x8xf32>
    %cst_35 = arith.constant dense<0.000000e+00> : vector<8x8xf32>
    %74 = tpu.matmul %28, %73, %cst_35 {dimension_numbers = #tpu.dot_dimension_numbers<[1], [0], [0], [1], [0, 0, 1, 1], [], []>} : vector<8x16xf32>, vector<16x8xf32>, vector<8x8xf32> -> vector<8x8xf32>
    %c0_36 = arith.constant 0 : index
    %c4 = arith.constant 4 : index
    %c0_37 = arith.constant 0 : index
    %c0_38 = arith.constant 0 : index
    %75 = vector.load %arg7[%c0_36, %c4, %c0_37, %c0_38] : memref<4x8x8x8xf32, #tpu.memory_space<vmem>>, vector<1x1x8x8xf32>
    %76 = vector.shape_cast %75 : vector<1x1x8x8xf32> to vector<8x8xf32>
    %77 = vector.shape_cast %74 : vector<8x8xf32> to vector<1x1x8x8xf32>
    tpu.vector_store %arg7[%c0_36, %c4, %c0_37, %c0_38], %77 {strides = array<i32>} : memref<4x8x8x8xf32, #tpu.memory_space<vmem>>, vector<1x1x8x8xf32>,
    %78 = vector.extract_strided_slice %47 {offsets = [5, 0, 0], sizes = [1, 16, 8], strides = [1, 1, 1]} : vector<8x16x8xf32> to vector<1x16x8xf32>
    %79 = vector.shape_cast %78 : vector<1x16x8xf32> to vector<16x8xf32>
    %cst_39 = arith.constant dense<0.000000e+00> : vector<8x8xf32>
    %80 = tpu.matmul %28, %79, %cst_39 {dimension_numbers = #tpu.dot_dimension_numbers<[1], [0], [0], [1], [0, 0, 1, 1], [], []>} : vector<8x16xf32>, vector<16x8xf32>, vector<8x8xf32> -> vector<8x8xf32>
    %c0_40 = arith.constant 0 : index
    %c5 = arith.constant 5 : index
    %c0_41 = arith.constant 0 : index
    %c0_42 = arith.constant 0 : index
    %81 = vector.load %arg7[%c0_40, %c5, %c0_41, %c0_42] : memref<4x8x8x8xf32, #tpu.memory_space<vmem>>, vector<1x1x8x8xf32>
    %82 = vector.shape_cast %81 : vector<1x1x8x8xf32> to vector<8x8xf32>
    %83 = vector.shape_cast %80 : vector<8x8xf32> to vector<1x1x8x8xf32>
    tpu.vector_store %arg7[%c0_40, %c5, %c0_41, %c0_42], %83 {strides = array<i32>} : memref<4x8x8x8xf32, #tpu.memory_space<vmem>>, vector<1x1x8x8xf32>,
    %84 = vector.extract_strided_slice %47 {offsets = [6, 0, 0], sizes = [1, 16, 8], strides = [1, 1, 1]} : vector<8x16x8xf32> to vector<1x16x8xf32>
    %85 = vector.shape_cast %84 : vector<1x16x8xf32> to vector<16x8xf32>
    %cst_43 = arith.constant dense<0.000000e+00> : vector<8x8xf32>
    %86 = tpu.matmul %28, %85, %cst_43 {dimension_numbers = #tpu.dot_dimension_numbers<[1], [0], [0], [1], [0, 0, 1, 1], [], []>} : vector<8x16xf32>, vector<16x8xf32>, vector<8x8xf32> -> vector<8x8xf32>
    %c0_44 = arith.constant 0 : index
    %c6 = arith.constant 6 : index
    %c0_45 = arith.constant 0 : index
    %c0_46 = arith.constant 0 : index
    %87 = vector.load %arg7[%c0_44, %c6, %c0_45, %c0_46] : memref<4x8x8x8xf32, #tpu.memory_space<vmem>>, vector<1x1x8x8xf32>
    %88 = vector.shape_cast %87 : vector<1x1x8x8xf32> to vector<8x8xf32>
    %89 = vector.shape_cast %86 : vector<8x8xf32> to vector<1x1x8x8xf32>
    tpu.vector_store %arg7[%c0_44, %c6, %c0_45, %c0_46], %89 {strides = array<i32>} : memref<4x8x8x8xf32, #tpu.memory_space<vmem>>, vector<1x1x8x8xf32>,
    %90 = vector.extract_strided_slice %47 {offsets = [7, 0, 0], sizes = [1, 16, 8], strides = [1, 1, 1]} : vector<8x16x8xf32> to vector<1x16x8xf32>
    %91 = vector.shape_cast %90 : vector<1x16x8xf32> to vector<16x8xf32>
    %cst_47 = arith.constant dense<0.000000e+00> : vector<8x8xf32>
    %92 = tpu.matmul %28, %91, %cst_47 {dimension_numbers = #tpu.dot_dimension_numbers<[1], [0], [0], [1], [0, 0, 1, 1], [], []>} : vector<8x16xf32>, vector<16x8xf32>, vector<8x8xf32> -> vector<8x8xf32>
    %c0_48 = arith.constant 0 : index
    %c7 = arith.constant 7 : index
    %c0_49 = arith.constant 0 : index
    %c0_50 = arith.constant 0 : index
    %93 = vector.load %arg7[%c0_48, %c7, %c0_49, %c0_50] : memref<4x8x8x8xf32, #tpu.memory_space<vmem>>, vector<1x1x8x8xf32>
    %94 = vector.shape_cast %93 : vector<1x1x8x8xf32> to vector<8x8xf32>
    %95 = vector.shape_cast %92 : vector<8x8xf32> to vector<1x1x8x8xf32>
    tpu.vector_store %arg7[%c0_48, %c7, %c0_49, %c0_50], %95 {strides = array<i32>} : memref<4x8x8x8xf32, #tpu.memory_space<vmem>>, vector<1x1x8x8xf32>,
    %c1_51 = arith.constant 1 : index
    %c0_52 = arith.constant 0 : index
    %c0_53 = arith.constant 0 : index
    %96 = vector.load %arg3[%c1_51, %c0_52, %c0_53] : memref<4x8x2xi32, #tpu.memory_space<vmem>>, vector<1x8x2xi32>
    %97 = vector.shape_cast %96 : vector<1x8x2xi32> to vector<8x2xi32>
    %c1_54 = arith.constant 1 : index
    %c0_55 = arith.constant 0 : index
    %c0_56 = arith.constant 0 : index
    %98 = vector.load %arg4[%c1_54, %c0_55, %c0_56] : memref<4x8x2xf32, #tpu.memory_space<vmem>>, vector<1x8x2xf32>
    %99 = vector.shape_cast %98 : vector<1x8x2xf32> to vector<8x2xf32>
    %c1_57 = arith.constant 1 : index
    %c0_58 = arith.constant 0 : index
    %c0_59 = arith.constant 0 : index
    %100 = vector.load %arg5[%c1_57, %c0_58, %c0_59] : memref<4x2x8xi32, #tpu.memory_space<vmem>>, vector<1x2x8xi32>
    %101 = vector.shape_cast %100 : vector<1x2x8xi32> to vector<2x8xi32>
    %c1_60 = arith.constant 1 : index
    %c0_61 = arith.constant 0 : index
    %c0_62 = arith.constant 0 : index
    %102 = vector.load %arg6[%c1_60, %c0_61, %c0_62] : memref<4x2x8xf32, #tpu.memory_space<vmem>>, vector<1x2x8xf32>
    %103 = vector.shape_cast %102 : vector<1x2x8xf32> to vector<2x8xf32>
    %104 = vector.extract_strided_slice %97 {offsets = [0, 0], sizes = [8, 1], strides = [1, 1]} : vector<8x2xi32> to vector<8x1xi32>
    %105 = vector.broadcast %104 : vector<8x1xi32> to vector<8x16xi32>
    %106 = arith.cmpi eq, %2, %105 : vector<8x16xi32>
    %107 = vector.extract_strided_slice %99 {offsets = [0, 0], sizes = [8, 1], strides = [1, 1]} : vector<8x2xf32> to vector<8x1xf32>
    %cst_63 = arith.constant 0.000000e+00 : f32
    %108 = vector.shape_cast %107 : vector<8x1xf32> to vector<8x1xf32>
    %109 = vector.broadcast %108 : vector<8x1xf32> to vector<8x16xf32>
    %110 = vector.broadcast %cst_63 : f32 to vector<8x16xf32>
    %111 = arith.select %106, %109, %110 : vector<8x16xi1>, vector<8x16xf32>
    %112 = vector.extract_strided_slice %97 {offsets = [0, 1], sizes = [8, 1], strides = [1, 1]} : vector<8x2xi32> to vector<8x1xi32>
    %113 = vector.broadcast %112 : vector<8x1xi32> to vector<8x16xi32>
    %114 = arith.cmpi eq, %2, %113 : vector<8x16xi32>
    %115 = vector.extract_strided_slice %99 {offsets = [0, 1], sizes = [8, 1], strides = [1, 1]} : vector<8x2xf32> to vector<8x1xf32>
    %cst_64 = arith.constant 0.000000e+00 : f32
    %116 = vector.shape_cast %115 : vector<8x1xf32> to vector<8x1xf32>
    %117 = vector.broadcast %116 : vector<8x1xf32> to vector<8x16xf32>
    %118 = vector.broadcast %cst_64 : f32 to vector<8x16xf32>
    %119 = arith.select %114, %117, %118 : vector<8x16xi1>, vector<8x16xf32>
    %120 = arith.addf %111, %119 : vector<8x16xf32>
    %121 = vector.extract_strided_slice %101 {offsets = [0, 0], sizes = [1, 8], strides = [1, 1]} : vector<2x8xi32> to vector<1x8xi32>
    %122 = vector.broadcast %121 : vector<1x8xi32> to vector<16x8xi32>
    %123 = arith.cmpi eq, %3, %122 : vector<16x8xi32>
    %124 = vector.extract_strided_slice %103 {offsets = [0, 0], sizes = [1, 8], strides = [1, 1]} : vector<2x8xf32> to vector<1x8xf32>
    %cst_65 = arith.constant 0.000000e+00 : f32
    %125 = vector.shape_cast %124 : vector<1x8xf32> to vector<1x8xf32>
    %126 = vector.broadcast %125 : vector<1x8xf32> to vector<16x8xf32>
    %127 = vector.broadcast %cst_65 : f32 to vector<16x8xf32>
    %128 = arith.select %123, %126, %127 : vector<16x8xi1>, vector<16x8xf32>
    %129 = vector.extract_strided_slice %101 {offsets = [1, 0], sizes = [1, 8], strides = [1, 1]} : vector<2x8xi32> to vector<1x8xi32>
    %130 = vector.broadcast %129 : vector<1x8xi32> to vector<16x8xi32>
    %131 = arith.cmpi eq, %3, %130 : vector<16x8xi32>
    %132 = vector.extract_strided_slice %103 {offsets = [1, 0], sizes = [1, 8], strides = [1, 1]} : vector<2x8xf32> to vector<1x8xf32>
    %cst_66 = arith.constant 0.000000e+00 : f32
    %133 = vector.shape_cast %132 : vector<1x8xf32> to vector<1x8xf32>
    %134 = vector.broadcast %133 : vector<1x8xf32> to vector<16x8xf32>
    %135 = vector.broadcast %cst_66 : f32 to vector<16x8xf32>
    %136 = arith.select %131, %134, %135 : vector<16x8xi1>, vector<16x8xf32>
    %137 = arith.addf %128, %136 : vector<16x8xf32>
    %cst_67 = arith.constant dense<0.000000e+00> : vector<128x8xf32>
    %138 = tpu.matmul %1, %137, %cst_67 {dimension_numbers = #tpu.dot_dimension_numbers<[1], [0], [0], [1], [0, 0, 1, 1], [], []>} : vector<128x16xf32>, vector<16x8xf32>, vector<128x8xf32> -> vector<128x8xf32>
    %139 = vector.shape_cast %138 : vector<128x8xf32> to vector<8x16x8xf32>
    %140 = vector.extract_strided_slice %139 {offsets = [0, 0, 0], sizes = [1, 16, 8], strides = [1, 1, 1]} : vector<8x16x8xf32> to vector<1x16x8xf32>
    %141 = vector.shape_cast %140 : vector<1x16x8xf32> to vector<16x8xf32>
    %cst_68 = arith.constant dense<0.000000e+00> : vector<8x8xf32>
    %142 = tpu.matmul %120, %141, %cst_68 {dimension_numbers = #tpu.dot_dimension_numbers<[1], [0], [0], [1], [0, 0, 1, 1], [], []>} : vector<8x16xf32>, vector<16x8xf32>, vector<8x8xf32> -> vector<8x8xf32>
    %c1_69 = arith.constant 1 : index
    %c0_70 = arith.constant 0 : index
    %c0_71 = arith.constant 0 : index
    %c0_72 = arith.constant 0 : index
    %143 = vector.load %arg7[%c1_69, %c0_70, %c0_71, %c0_72] : memref<4x8x8x8xf32, #tpu.memory_space<vmem>>, vector<1x1x8x8xf32>
    %144 = vector.shape_cast %143 : vector<1x1x8x8xf32> to vector<8x8xf32>
    %145 = vector.shape_cast %142 : vector<8x8xf32> to vector<1x1x8x8xf32>
    tpu.vector_store %arg7[%c1_69, %c0_70, %c0_71, %c0_72], %145 {strides = array<i32>} : memref<4x8x8x8xf32, #tpu.memory_space<vmem>>, vector<1x1x8x8xf32>,
    %146 = vector.extract_strided_slice %139 {offsets = [1, 0, 0], sizes = [1, 16, 8], strides = [1, 1, 1]} : vector<8x16x8xf32> to vector<1x16x8xf32>
    %147 = vector.shape_cast %146 : vector<1x16x8xf32> to vector<16x8xf32>
    %cst_73 = arith.constant dense<0.000000e+00> : vector<8x8xf32>
    %148 = tpu.matmul %120, %147, %cst_73 {dimension_numbers = #tpu.dot_dimension_numbers<[1], [0], [0], [1], [0, 0, 1, 1], [], []>} : vector<8x16xf32>, vector<16x8xf32>, vector<8x8xf32> -> vector<8x8xf32>
    %c1_74 = arith.constant 1 : index
    %c1_75 = arith.constant 1 : index
    %c0_76 = arith.constant 0 : index
    %c0_77 = arith.constant 0 : index
    %149 = vector.load %arg7[%c1_74, %c1_75, %c0_76, %c0_77] : memref<4x8x8x8xf32, #tpu.memory_space<vmem>>, vector<1x1x8x8xf32>
    %150 = vector.shape_cast %149 : vector<1x1x8x8xf32> to vector<8x8xf32>
    %151 = vector.shape_cast %148 : vector<8x8xf32> to vector<1x1x8x8xf32>
    tpu.vector_store %arg7[%c1_74, %c1_75, %c0_76, %c0_77], %151 {strides = array<i32>} : memref<4x8x8x8xf32, #tpu.memory_space<vmem>>, vector<1x1x8x8xf32>,
    %152 = vector.extract_strided_slice %139 {offsets = [2, 0, 0], sizes = [1, 16, 8], strides = [1, 1, 1]} : vector<8x16x8xf32> to vector<1x16x8xf32>
    %153 = vector.shape_cast %152 : vector<1x16x8xf32> to vector<16x8xf32>
    %cst_78 = arith.constant dense<0.000000e+00> : vector<8x8xf32>
    %154 = tpu.matmul %120, %153, %cst_78 {dimension_numbers = #tpu.dot_dimension_numbers<[1], [0], [0], [1], [0, 0, 1, 1], [], []>} : vector<8x16xf32>, vector<16x8xf32>, vector<8x8xf32> -> vector<8x8xf32>
    %c1_79 = arith.constant 1 : index
    %c2_80 = arith.constant 2 : index
    %c0_81 = arith.constant 0 : index
    %c0_82 = arith.constant 0 : index
    %155 = vector.load %arg7[%c1_79, %c2_80, %c0_81, %c0_82] : memref<4x8x8x8xf32, #tpu.memory_space<vmem>>, vector<1x1x8x8xf32>
    %156 = vector.shape_cast %155 : vector<1x1x8x8xf32> to vector<8x8xf32>
    %157 = vector.shape_cast %154 : vector<8x8xf32> to vector<1x1x8x8xf32>
    tpu.vector_store %arg7[%c1_79, %c2_80, %c0_81, %c0_82], %157 {strides = array<i32>} : memref<4x8x8x8xf32, #tpu.memory_space<vmem>>, vector<1x1x8x8xf32>,
    %158 = vector.extract_strided_slice %139 {offsets = [3, 0, 0], sizes = [1, 16, 8], strides = [1, 1, 1]} : vector<8x16x8xf32> to vector<1x16x8xf32>
    %159 = vector.shape_cast %158 : vector<1x16x8xf32> to vector<16x8xf32>
    %cst_83 = arith.constant dense<0.000000e+00> : vector<8x8xf32>
    %160 = tpu.matmul %120, %159, %cst_83 {dimension_numbers = #tpu.dot_dimension_numbers<[1], [0], [0], [1], [0, 0, 1, 1], [], []>} : vector<8x16xf32>, vector<16x8xf32>, vector<8x8xf32> -> vector<8x8xf32>
    %c1_84 = arith.constant 1 : index
    %c3_85 = arith.constant 3 : index
    %c0_86 = arith.constant 0 : index
    %c0_87 = arith.constant 0 : index
    %161 = vector.load %arg7[%c1_84, %c3_85, %c0_86, %c0_87] : memref<4x8x8x8xf32, #tpu.memory_space<vmem>>, vector<1x1x8x8xf32>
    %162 = vector.shape_cast %161 : vector<1x1x8x8xf32> to vector<8x8xf32>
    %163 = vector.shape_cast %160 : vector<8x8xf32> to vector<1x1x8x8xf32>
    tpu.vector_store %arg7[%c1_84, %c3_85, %c0_86, %c0_87], %163 {strides = array<i32>} : memref<4x8x8x8xf32, #tpu.memory_space<vmem>>, vector<1x1x8x8xf32>,
    %164 = vector.extract_strided_slice %139 {offsets = [4, 0, 0], sizes = [1, 16, 8], strides = [1, 1, 1]} : vector<8x16x8xf32> to vector<1x16x8xf32>
    %165 = vector.shape_cast %164 : vector<1x16x8xf32> to vector<16x8xf32>
    %cst_88 = arith.constant dense<0.000000e+00> : vector<8x8xf32>
    %166 = tpu.matmul %120, %165, %cst_88 {dimension_numbers = #tpu.dot_dimension_numbers<[1], [0], [0], [1], [0, 0, 1, 1], [], []>} : vector<8x16xf32>, vector<16x8xf32>, vector<8x8xf32> -> vector<8x8xf32>
    %c1_89 = arith.constant 1 : index
    %c4_90 = arith.constant 4 : index
    %c0_91 = arith.constant 0 : index
    %c0_92 = arith.constant 0 : index
    %167 = vector.load %arg7[%c1_89, %c4_90, %c0_91, %c0_92] : memref<4x8x8x8xf32, #tpu.memory_space<vmem>>, vector<1x1x8x8xf32>
    %168 = vector.shape_cast %167 : vector<1x1x8x8xf32> to vector<8x8xf32>
    %169 = vector.shape_cast %166 : vector<8x8xf32> to vector<1x1x8x8xf32>
    tpu.vector_store %arg7[%c1_89, %c4_90, %c0_91, %c0_92], %169 {strides = array<i32>} : memref<4x8x8x8xf32, #tpu.memory_space<vmem>>, vector<1x1x8x8xf32>,
    %170 = vector.extract_strided_slice %139 {offsets = [5, 0, 0], sizes = [1, 16, 8], strides = [1, 1, 1]} : vector<8x16x8xf32> to vector<1x16x8xf32>
    %171 = vector.shape_cast %170 : vector<1x16x8xf32> to vector<16x8xf32>
    %cst_93 = arith.constant dense<0.000000e+00> : vector<8x8xf32>
    %172 = tpu.matmul %120, %171, %cst_93 {dimension_numbers = #tpu.dot_dimension_numbers<[1], [0], [0], [1], [0, 0, 1, 1], [], []>} : vector<8x16xf32>, vector<16x8xf32>, vector<8x8xf32> -> vector<8x8xf32>
    %c1_94 = arith.constant 1 : index
    %c5_95 = arith.constant 5 : index
    %c0_96 = arith.constant 0 : index
    %c0_97 = arith.constant 0 : index
    %173 = vector.load %arg7[%c1_94, %c5_95, %c0_96, %c0_97] : memref<4x8x8x8xf32, #tpu.memory_space<vmem>>, vector<1x1x8x8xf32>
    %174 = vector.shape_cast %173 : vector<1x1x8x8xf32> to vector<8x8xf32>
    %175 = vector.shape_cast %172 : vector<8x8xf32> to vector<1x1x8x8xf32>
    tpu.vector_store %arg7[%c1_94, %c5_95, %c0_96, %c0_97], %175 {strides = array<i32>} : memref<4x8x8x8xf32, #tpu.memory_space<vmem>>, vector<1x1x8x8xf32>,
    %176 = vector.extract_strided_slice %139 {offsets = [6, 0, 0], sizes = [1, 16, 8], strides = [1, 1, 1]} : vector<8x16x8xf32> to vector<1x16x8xf32>
    %177 = vector.shape_cast %176 : vector<1x16x8xf32> to vector<16x8xf32>
    %cst_98 = arith.constant dense<0.000000e+00> : vector<8x8xf32>
    %178 = tpu.matmul %120, %177, %cst_98 {dimension_numbers = #tpu.dot_dimension_numbers<[1], [0], [0], [1], [0, 0, 1, 1], [], []>} : vector<8x16xf32>, vector<16x8xf32>, vector<8x8xf32> -> vector<8x8xf32>
    %c1_99 = arith.constant 1 : index
    %c6_100 = arith.constant 6 : index
    %c0_101 = arith.constant 0 : index
    %c0_102 = arith.constant 0 : index
    %179 = vector.load %arg7[%c1_99, %c6_100, %c0_101, %c0_102] : memref<4x8x8x8xf32, #tpu.memory_space<vmem>>, vector<1x1x8x8xf32>
    %180 = vector.shape_cast %179 : vector<1x1x8x8xf32> to vector<8x8xf32>
    %181 = vector.shape_cast %178 : vector<8x8xf32> to vector<1x1x8x8xf32>
    tpu.vector_store %arg7[%c1_99, %c6_100, %c0_101, %c0_102], %181 {strides = array<i32>} : memref<4x8x8x8xf32, #tpu.memory_space<vmem>>, vector<1x1x8x8xf32>,
    %182 = vector.extract_strided_slice %139 {offsets = [7, 0, 0], sizes = [1, 16, 8], strides = [1, 1, 1]} : vector<8x16x8xf32> to vector<1x16x8xf32>
    %183 = vector.shape_cast %182 : vector<1x16x8xf32> to vector<16x8xf32>
    %cst_103 = arith.constant dense<0.000000e+00> : vector<8x8xf32>
    %184 = tpu.matmul %120, %183, %cst_103 {dimension_numbers = #tpu.dot_dimension_numbers<[1], [0], [0], [1], [0, 0, 1, 1], [], []>} : vector<8x16xf32>, vector<16x8xf32>, vector<8x8xf32> -> vector<8x8xf32>
    %c1_104 = arith.constant 1 : index
    %c7_105 = arith.constant 7 : index
    %c0_106 = arith.constant 0 : index
    %c0_107 = arith.constant 0 : index
    %185 = vector.load %arg7[%c1_104, %c7_105, %c0_106, %c0_107] : memref<4x8x8x8xf32, #tpu.memory_space<vmem>>, vector<1x1x8x8xf32>
    %186 = vector.shape_cast %185 : vector<1x1x8x8xf32> to vector<8x8xf32>
    %187 = vector.shape_cast %184 : vector<8x8xf32> to vector<1x1x8x8xf32>
    tpu.vector_store %arg7[%c1_104, %c7_105, %c0_106, %c0_107], %187 {strides = array<i32>} : memref<4x8x8x8xf32, #tpu.memory_space<vmem>>, vector<1x1x8x8xf32>,
    %c2_108 = arith.constant 2 : index
    %c0_109 = arith.constant 0 : index
    %c0_110 = arith.constant 0 : index
    %188 = vector.load %arg3[%c2_108, %c0_109, %c0_110] : memref<4x8x2xi32, #tpu.memory_space<vmem>>, vector<1x8x2xi32>
    %189 = vector.shape_cast %188 : vector<1x8x2xi32> to vector<8x2xi32>
    %c2_111 = arith.constant 2 : index
    %c0_112 = arith.constant 0 : index
    %c0_113 = arith.constant 0 : index
    %190 = vector.load %arg4[%c2_111, %c0_112, %c0_113] : memref<4x8x2xf32, #tpu.memory_space<vmem>>, vector<1x8x2xf32>
    %191 = vector.shape_cast %190 : vector<1x8x2xf32> to vector<8x2xf32>
    %c2_114 = arith.constant 2 : index
    %c0_115 = arith.constant 0 : index
    %c0_116 = arith.constant 0 : index
    %192 = vector.load %arg5[%c2_114, %c0_115, %c0_116] : memref<4x2x8xi32, #tpu.memory_space<vmem>>, vector<1x2x8xi32>
    %193 = vector.shape_cast %192 : vector<1x2x8xi32> to vector<2x8xi32>
    %c2_117 = arith.constant 2 : index
    %c0_118 = arith.constant 0 : index
    %c0_119 = arith.constant 0 : index
    %194 = vector.load %arg6[%c2_117, %c0_118, %c0_119] : memref<4x2x8xf32, #tpu.memory_space<vmem>>, vector<1x2x8xf32>
    %195 = vector.shape_cast %194 : vector<1x2x8xf32> to vector<2x8xf32>
    %196 = vector.extract_strided_slice %189 {offsets = [0, 0], sizes = [8, 1], strides = [1, 1]} : vector<8x2xi32> to vector<8x1xi32>
    %197 = vector.broadcast %196 : vector<8x1xi32> to vector<8x16xi32>
    %198 = arith.cmpi eq, %2, %197 : vector<8x16xi32>
    %199 = vector.extract_strided_slice %191 {offsets = [0, 0], sizes = [8, 1], strides = [1, 1]} : vector<8x2xf32> to vector<8x1xf32>
    %cst_120 = arith.constant 0.000000e+00 : f32
    %200 = vector.shape_cast %199 : vector<8x1xf32> to vector<8x1xf32>
    %201 = vector.broadcast %200 : vector<8x1xf32> to vector<8x16xf32>
    %202 = vector.broadcast %cst_120 : f32 to vector<8x16xf32>
    %203 = arith.select %198, %201, %202 : vector<8x16xi1>, vector<8x16xf32>
    %204 = vector.extract_strided_slice %189 {offsets = [0, 1], sizes = [8, 1], strides = [1, 1]} : vector<8x2xi32> to vector<8x1xi32>
    %205 = vector.broadcast %204 : vector<8x1xi32> to vector<8x16xi32>
    %206 = arith.cmpi eq, %2, %205 : vector<8x16xi32>
    %207 = vector.extract_strided_slice %191 {offsets = [0, 1], sizes = [8, 1], strides = [1, 1]} : vector<8x2xf32> to vector<8x1xf32>
    %cst_121 = arith.constant 0.000000e+00 : f32
    %208 = vector.shape_cast %207 : vector<8x1xf32> to vector<8x1xf32>
    %209 = vector.broadcast %208 : vector<8x1xf32> to vector<8x16xf32>
    %210 = vector.broadcast %cst_121 : f32 to vector<8x16xf32>
    %211 = arith.select %206, %209, %210 : vector<8x16xi1>, vector<8x16xf32>
    %212 = arith.addf %203, %211 : vector<8x16xf32>
    %213 = vector.extract_strided_slice %193 {offsets = [0, 0], sizes = [1, 8], strides = [1, 1]} : vector<2x8xi32> to vector<1x8xi32>
    %214 = vector.broadcast %213 : vector<1x8xi32> to vector<16x8xi32>
    %215 = arith.cmpi eq, %3, %214 : vector<16x8xi32>
    %216 = vector.extract_strided_slice %195 {offsets = [0, 0], sizes = [1, 8], strides = [1, 1]} : vector<2x8xf32> to vector<1x8xf32>
    %cst_122 = arith.constant 0.000000e+00 : f32
    %217 = vector.shape_cast %216 : vector<1x8xf32> to vector<1x8xf32>
    %218 = vector.broadcast %217 : vector<1x8xf32> to vector<16x8xf32>
    %219 = vector.broadcast %cst_122 : f32 to vector<16x8xf32>
    %220 = arith.select %215, %218, %219 : vector<16x8xi1>, vector<16x8xf32>
    %221 = vector.extract_strided_slice %193 {offsets = [1, 0], sizes = [1, 8], strides = [1, 1]} : vector<2x8xi32> to vector<1x8xi32>
    %222 = vector.broadcast %221 : vector<1x8xi32> to vector<16x8xi32>
    %223 = arith.cmpi eq, %3, %222 : vector<16x8xi32>
    %224 = vector.extract_strided_slice %195 {offsets = [1, 0], sizes = [1, 8], strides = [1, 1]} : vector<2x8xf32> to vector<1x8xf32>
    %cst_123 = arith.constant 0.000000e+00 : f32
    %225 = vector.shape_cast %224 : vector<1x8xf32> to vector<1x8xf32>
    %226 = vector.broadcast %225 : vector<1x8xf32> to vector<16x8xf32>
    %227 = vector.broadcast %cst_123 : f32 to vector<16x8xf32>
    %228 = arith.select %223, %226, %227 : vector<16x8xi1>, vector<16x8xf32>
    %229 = arith.addf %220, %228 : vector<16x8xf32>
    %cst_124 = arith.constant dense<0.000000e+00> : vector<128x8xf32>
    %230 = tpu.matmul %1, %229, %cst_124 {dimension_numbers = #tpu.dot_dimension_numbers<[1], [0], [0], [1], [0, 0, 1, 1], [], []>} : vector<128x16xf32>, vector<16x8xf32>, vector<128x8xf32> -> vector<128x8xf32>
    %231 = vector.shape_cast %230 : vector<128x8xf32> to vector<8x16x8xf32>
    %232 = vector.extract_strided_slice %231 {offsets = [0, 0, 0], sizes = [1, 16, 8], strides = [1, 1, 1]} : vector<8x16x8xf32> to vector<1x16x8xf32>
    %233 = vector.shape_cast %232 : vector<1x16x8xf32> to vector<16x8xf32>
    %cst_125 = arith.constant dense<0.000000e+00> : vector<8x8xf32>
    %234 = tpu.matmul %212, %233, %cst_125 {dimension_numbers = #tpu.dot_dimension_numbers<[1], [0], [0], [1], [0, 0, 1, 1], [], []>} : vector<8x16xf32>, vector<16x8xf32>, vector<8x8xf32> -> vector<8x8xf32>
    %c2_126 = arith.constant 2 : index
    %c0_127 = arith.constant 0 : index
    %c0_128 = arith.constant 0 : index
    %c0_129 = arith.constant 0 : index
    %235 = vector.load %arg7[%c2_126, %c0_127, %c0_128, %c0_129] : memref<4x8x8x8xf32, #tpu.memory_space<vmem>>, vector<1x1x8x8xf32>
    %236 = vector.shape_cast %235 : vector<1x1x8x8xf32> to vector<8x8xf32>
    %237 = vector.shape_cast %234 : vector<8x8xf32> to vector<1x1x8x8xf32>
    tpu.vector_store %arg7[%c2_126, %c0_127, %c0_128, %c0_129], %237 {strides = array<i32>} : memref<4x8x8x8xf32, #tpu.memory_space<vmem>>, vector<1x1x8x8xf32>,
    %238 = vector.extract_strided_slice %231 {offsets = [1, 0, 0], sizes = [1, 16, 8], strides = [1, 1, 1]} : vector<8x16x8xf32> to vector<1x16x8xf32>
    %239 = vector.shape_cast %238 : vector<1x16x8xf32> to vector<16x8xf32>
    %cst_130 = arith.constant dense<0.000000e+00> : vector<8x8xf32>
    %240 = tpu.matmul %212, %239, %cst_130 {dimension_numbers = #tpu.dot_dimension_numbers<[1], [0], [0], [1], [0, 0, 1, 1], [], []>} : vector<8x16xf32>, vector<16x8xf32>, vector<8x8xf32> -> vector<8x8xf32>
    %c2_131 = arith.constant 2 : index
    %c1_132 = arith.constant 1 : index
    %c0_133 = arith.constant 0 : index
    %c0_134 = arith.constant 0 : index
    %241 = vector.load %arg7[%c2_131, %c1_132, %c0_133, %c0_134] : memref<4x8x8x8xf32, #tpu.memory_space<vmem>>, vector<1x1x8x8xf32>
    %242 = vector.shape_cast %241 : vector<1x1x8x8xf32> to vector<8x8xf32>
    %243 = vector.shape_cast %240 : vector<8x8xf32> to vector<1x1x8x8xf32>
    tpu.vector_store %arg7[%c2_131, %c1_132, %c0_133, %c0_134], %243 {strides = array<i32>} : memref<4x8x8x8xf32, #tpu.memory_space<vmem>>, vector<1x1x8x8xf32>,
    %244 = vector.extract_strided_slice %231 {offsets = [2, 0, 0], sizes = [1, 16, 8], strides = [1, 1, 1]} : vector<8x16x8xf32> to vector<1x16x8xf32>
    %245 = vector.shape_cast %244 : vector<1x16x8xf32> to vector<16x8xf32>
    %cst_135 = arith.constant dense<0.000000e+00> : vector<8x8xf32>
    %246 = tpu.matmul %212, %245, %cst_135 {dimension_numbers = #tpu.dot_dimension_numbers<[1], [0], [0], [1], [0, 0, 1, 1], [], []>} : vector<8x16xf32>, vector<16x8xf32>, vector<8x8xf32> -> vector<8x8xf32>
    %c2_136 = arith.constant 2 : index
    %c2_137 = arith.constant 2 : index
    %c0_138 = arith.constant 0 : index
    %c0_139 = arith.constant 0 : index
    %247 = vector.load %arg7[%c2_136, %c2_137, %c0_138, %c0_139] : memref<4x8x8x8xf32, #tpu.memory_space<vmem>>, vector<1x1x8x8xf32>
    %248 = vector.shape_cast %247 : vector<1x1x8x8xf32> to vector<8x8xf32>
    %249 = vector.shape_cast %246 : vector<8x8xf32> to vector<1x1x8x8xf32>
    tpu.vector_store %arg7[%c2_136, %c2_137, %c0_138, %c0_139], %249 {strides = array<i32>} : memref<4x8x8x8xf32, #tpu.memory_space<vmem>>, vector<1x1x8x8xf32>,
    %250 = vector.extract_strided_slice %231 {offsets = [3, 0, 0], sizes = [1, 16, 8], strides = [1, 1, 1]} : vector<8x16x8xf32> to vector<1x16x8xf32>
    %251 = vector.shape_cast %250 : vector<1x16x8xf32> to vector<16x8xf32>
    %cst_140 = arith.constant dense<0.000000e+00> : vector<8x8xf32>
    %252 = tpu.matmul %212, %251, %cst_140 {dimension_numbers = #tpu.dot_dimension_numbers<[1], [0], [0], [1], [0, 0, 1, 1], [], []>} : vector<8x16xf32>, vector<16x8xf32>, vector<8x8xf32> -> vector<8x8xf32>
    %c2_141 = arith.constant 2 : index
    %c3_142 = arith.constant 3 : index
    %c0_143 = arith.constant 0 : index
    %c0_144 = arith.constant 0 : index
    %253 = vector.load %arg7[%c2_141, %c3_142, %c0_143, %c0_144] : memref<4x8x8x8xf32, #tpu.memory_space<vmem>>, vector<1x1x8x8xf32>
    %254 = vector.shape_cast %253 : vector<1x1x8x8xf32> to vector<8x8xf32>
    %255 = vector.shape_cast %252 : vector<8x8xf32> to vector<1x1x8x8xf32>
    tpu.vector_store %arg7[%c2_141, %c3_142, %c0_143, %c0_144], %255 {strides = array<i32>} : memref<4x8x8x8xf32, #tpu.memory_space<vmem>>, vector<1x1x8x8xf32>,
    %256 = vector.extract_strided_slice %231 {offsets = [4, 0, 0], sizes = [1, 16, 8], strides = [1, 1, 1]} : vector<8x16x8xf32> to vector<1x16x8xf32>
    %257 = vector.shape_cast %256 : vector<1x16x8xf32> to vector<16x8xf32>
    %cst_145 = arith.constant dense<0.000000e+00> : vector<8x8xf32>
    %258 = tpu.matmul %212, %257, %cst_145 {dimension_numbers = #tpu.dot_dimension_numbers<[1], [0], [0], [1], [0, 0, 1, 1], [], []>} : vector<8x16xf32>, vector<16x8xf32>, vector<8x8xf32> -> vector<8x8xf32>
    %c2_146 = arith.constant 2 : index
    %c4_147 = arith.constant 4 : index
    %c0_148 = arith.constant 0 : index
    %c0_149 = arith.constant 0 : index
    %259 = vector.load %arg7[%c2_146, %c4_147, %c0_148, %c0_149] : memref<4x8x8x8xf32, #tpu.memory_space<vmem>>, vector<1x1x8x8xf32>
    %260 = vector.shape_cast %259 : vector<1x1x8x8xf32> to vector<8x8xf32>
    %261 = vector.shape_cast %258 : vector<8x8xf32> to vector<1x1x8x8xf32>
    tpu.vector_store %arg7[%c2_146, %c4_147, %c0_148, %c0_149], %261 {strides = array<i32>} : memref<4x8x8x8xf32, #tpu.memory_space<vmem>>, vector<1x1x8x8xf32>,
    %262 = vector.extract_strided_slice %231 {offsets = [5, 0, 0], sizes = [1, 16, 8], strides = [1, 1, 1]} : vector<8x16x8xf32> to vector<1x16x8xf32>
    %263 = vector.shape_cast %262 : vector<1x16x8xf32> to vector<16x8xf32>
    %cst_150 = arith.constant dense<0.000000e+00> : vector<8x8xf32>
    %264 = tpu.matmul %212, %263, %cst_150 {dimension_numbers = #tpu.dot_dimension_numbers<[1], [0], [0], [1], [0, 0, 1, 1], [], []>} : vector<8x16xf32>, vector<16x8xf32>, vector<8x8xf32> -> vector<8x8xf32>
    %c2_151 = arith.constant 2 : index
    %c5_152 = arith.constant 5 : index
    %c0_153 = arith.constant 0 : index
    %c0_154 = arith.constant 0 : index
    %265 = vector.load %arg7[%c2_151, %c5_152, %c0_153, %c0_154] : memref<4x8x8x8xf32, #tpu.memory_space<vmem>>, vector<1x1x8x8xf32>
    %266 = vector.shape_cast %265 : vector<1x1x8x8xf32> to vector<8x8xf32>
    %267 = vector.shape_cast %264 : vector<8x8xf32> to vector<1x1x8x8xf32>
    tpu.vector_store %arg7[%c2_151, %c5_152, %c0_153, %c0_154], %267 {strides = array<i32>} : memref<4x8x8x8xf32, #tpu.memory_space<vmem>>, vector<1x1x8x8xf32>,
    %268 = vector.extract_strided_slice %231 {offsets = [6, 0, 0], sizes = [1, 16, 8], strides = [1, 1, 1]} : vector<8x16x8xf32> to vector<1x16x8xf32>
    %269 = vector.shape_cast %268 : vector<1x16x8xf32> to vector<16x8xf32>
    %cst_155 = arith.constant dense<0.000000e+00> : vector<8x8xf32>
    %270 = tpu.matmul %212, %269, %cst_155 {dimension_numbers = #tpu.dot_dimension_numbers<[1], [0], [0], [1], [0, 0, 1, 1], [], []>} : vector<8x16xf32>, vector<16x8xf32>, vector<8x8xf32> -> vector<8x8xf32>
    %c2_156 = arith.constant 2 : index
    %c6_157 = arith.constant 6 : index
    %c0_158 = arith.constant 0 : index
    %c0_159 = arith.constant 0 : index
    %271 = vector.load %arg7[%c2_156, %c6_157, %c0_158, %c0_159] : memref<4x8x8x8xf32, #tpu.memory_space<vmem>>, vector<1x1x8x8xf32>
    %272 = vector.shape_cast %271 : vector<1x1x8x8xf32> to vector<8x8xf32>
    %273 = vector.shape_cast %270 : vector<8x8xf32> to vector<1x1x8x8xf32>
    tpu.vector_store %arg7[%c2_156, %c6_157, %c0_158, %c0_159], %273 {strides = array<i32>} : memref<4x8x8x8xf32, #tpu.memory_space<vmem>>, vector<1x1x8x8xf32>,
    %274 = vector.extract_strided_slice %231 {offsets = [7, 0, 0], sizes = [1, 16, 8], strides = [1, 1, 1]} : vector<8x16x8xf32> to vector<1x16x8xf32>
    %275 = vector.shape_cast %274 : vector<1x16x8xf32> to vector<16x8xf32>
    %cst_160 = arith.constant dense<0.000000e+00> : vector<8x8xf32>
    %276 = tpu.matmul %212, %275, %cst_160 {dimension_numbers = #tpu.dot_dimension_numbers<[1], [0], [0], [1], [0, 0, 1, 1], [], []>} : vector<8x16xf32>, vector<16x8xf32>, vector<8x8xf32> -> vector<8x8xf32>
    %c2_161 = arith.constant 2 : index
    %c7_162 = arith.constant 7 : index
    %c0_163 = arith.constant 0 : index
    %c0_164 = arith.constant 0 : index
    %277 = vector.load %arg7[%c2_161, %c7_162, %c0_163, %c0_164] : memref<4x8x8x8xf32, #tpu.memory_space<vmem>>, vector<1x1x8x8xf32>
    %278 = vector.shape_cast %277 : vector<1x1x8x8xf32> to vector<8x8xf32>
    %279 = vector.shape_cast %276 : vector<8x8xf32> to vector<1x1x8x8xf32>
    tpu.vector_store %arg7[%c2_161, %c7_162, %c0_163, %c0_164], %279 {strides = array<i32>} : memref<4x8x8x8xf32, #tpu.memory_space<vmem>>, vector<1x1x8x8xf32>,
    %c3_165 = arith.constant 3 : index
    %c0_166 = arith.constant 0 : index
    %c0_167 = arith.constant 0 : index
    %280 = vector.load %arg3[%c3_165, %c0_166, %c0_167] : memref<4x8x2xi32, #tpu.memory_space<vmem>>, vector<1x8x2xi32>
    %281 = vector.shape_cast %280 : vector<1x8x2xi32> to vector<8x2xi32>
    %c3_168 = arith.constant 3 : index
    %c0_169 = arith.constant 0 : index
    %c0_170 = arith.constant 0 : index
    %282 = vector.load %arg4[%c3_168, %c0_169, %c0_170] : memref<4x8x2xf32, #tpu.memory_space<vmem>>, vector<1x8x2xf32>
    %283 = vector.shape_cast %282 : vector<1x8x2xf32> to vector<8x2xf32>
    %c3_171 = arith.constant 3 : index
    %c0_172 = arith.constant 0 : index
    %c0_173 = arith.constant 0 : index
    %284 = vector.load %arg5[%c3_171, %c0_172, %c0_173] : memref<4x2x8xi32, #tpu.memory_space<vmem>>, vector<1x2x8xi32>
    %285 = vector.shape_cast %284 : vector<1x2x8xi32> to vector<2x8xi32>
    %c3_174 = arith.constant 3 : index
    %c0_175 = arith.constant 0 : index
    %c0_176 = arith.constant 0 : index
    %286 = vector.load %arg6[%c3_174, %c0_175, %c0_176] : memref<4x2x8xf32, #tpu.memory_space<vmem>>, vector<1x2x8xf32>
    %287 = vector.shape_cast %286 : vector<1x2x8xf32> to vector<2x8xf32>
    %288 = vector.extract_strided_slice %281 {offsets = [0, 0], sizes = [8, 1], strides = [1, 1]} : vector<8x2xi32> to vector<8x1xi32>
    %289 = vector.broadcast %288 : vector<8x1xi32> to vector<8x16xi32>
    %290 = arith.cmpi eq, %2, %289 : vector<8x16xi32>
    %291 = vector.extract_strided_slice %283 {offsets = [0, 0], sizes = [8, 1], strides = [1, 1]} : vector<8x2xf32> to vector<8x1xf32>
    %cst_177 = arith.constant 0.000000e+00 : f32
    %292 = vector.shape_cast %291 : vector<8x1xf32> to vector<8x1xf32>
    %293 = vector.broadcast %292 : vector<8x1xf32> to vector<8x16xf32>
    %294 = vector.broadcast %cst_177 : f32 to vector<8x16xf32>
    %295 = arith.select %290, %293, %294 : vector<8x16xi1>, vector<8x16xf32>
    %296 = vector.extract_strided_slice %281 {offsets = [0, 1], sizes = [8, 1], strides = [1, 1]} : vector<8x2xi32> to vector<8x1xi32>
    %297 = vector.broadcast %296 : vector<8x1xi32> to vector<8x16xi32>
    %298 = arith.cmpi eq, %2, %297 : vector<8x16xi32>
    %299 = vector.extract_strided_slice %283 {offsets = [0, 1], sizes = [8, 1], strides = [1, 1]} : vector<8x2xf32> to vector<8x1xf32>
    %cst_178 = arith.constant 0.000000e+00 : f32
    %300 = vector.shape_cast %299 : vector<8x1xf32> to vector<8x1xf32>
    %301 = vector.broadcast %300 : vector<8x1xf32> to vector<8x16xf32>
    %302 = vector.broadcast %cst_178 : f32 to vector<8x16xf32>
    %303 = arith.select %298, %301, %302 : vector<8x16xi1>, vector<8x16xf32>
    %304 = arith.addf %295, %303 : vector<8x16xf32>
    %305 = vector.extract_strided_slice %285 {offsets = [0, 0], sizes = [1, 8], strides = [1, 1]} : vector<2x8xi32> to vector<1x8xi32>
    %306 = vector.broadcast %305 : vector<1x8xi32> to vector<16x8xi32>
    %307 = arith.cmpi eq, %3, %306 : vector<16x8xi32>
    %308 = vector.extract_strided_slice %287 {offsets = [0, 0], sizes = [1, 8], strides = [1, 1]} : vector<2x8xf32> to vector<1x8xf32>
    %cst_179 = arith.constant 0.000000e+00 : f32
    %309 = vector.shape_cast %308 : vector<1x8xf32> to vector<1x8xf32>
    %310 = vector.broadcast %309 : vector<1x8xf32> to vector<16x8xf32>
    %311 = vector.broadcast %cst_179 : f32 to vector<16x8xf32>
    %312 = arith.select %307, %310, %311 : vector<16x8xi1>, vector<16x8xf32>
    %313 = vector.extract_strided_slice %285 {offsets = [1, 0], sizes = [1, 8], strides = [1, 1]} : vector<2x8xi32> to vector<1x8xi32>
    %314 = vector.broadcast %313 : vector<1x8xi32> to vector<16x8xi32>
    %315 = arith.cmpi eq, %3, %314 : vector<16x8xi32>
    %316 = vector.extract_strided_slice %287 {offsets = [1, 0], sizes = [1, 8], strides = [1, 1]} : vector<2x8xf32> to vector<1x8xf32>
    %cst_180 = arith.constant 0.000000e+00 : f32
    %317 = vector.shape_cast %316 : vector<1x8xf32> to vector<1x8xf32>
    %318 = vector.broadcast %317 : vector<1x8xf32> to vector<16x8xf32>
    %319 = vector.broadcast %cst_180 : f32 to vector<16x8xf32>
    %320 = arith.select %315, %318, %319 : vector<16x8xi1>, vector<16x8xf32>
    %321 = arith.addf %312, %320 : vector<16x8xf32>
    %cst_181 = arith.constant dense<0.000000e+00> : vector<128x8xf32>
    %322 = tpu.matmul %1, %321, %cst_181 {dimension_numbers = #tpu.dot_dimension_numbers<[1], [0], [0], [1], [0, 0, 1, 1], [], []>} : vector<128x16xf32>, vector<16x8xf32>, vector<128x8xf32> -> vector<128x8xf32>
    %323 = vector.shape_cast %322 : vector<128x8xf32> to vector<8x16x8xf32>
    %324 = vector.extract_strided_slice %323 {offsets = [0, 0, 0], sizes = [1, 16, 8], strides = [1, 1, 1]} : vector<8x16x8xf32> to vector<1x16x8xf32>
    %325 = vector.shape_cast %324 : vector<1x16x8xf32> to vector<16x8xf32>
    %cst_182 = arith.constant dense<0.000000e+00> : vector<8x8xf32>
    %326 = tpu.matmul %304, %325, %cst_182 {dimension_numbers = #tpu.dot_dimension_numbers<[1], [0], [0], [1], [0, 0, 1, 1], [], []>} : vector<8x16xf32>, vector<16x8xf32>, vector<8x8xf32> -> vector<8x8xf32>
    %c3_183 = arith.constant 3 : index
    %c0_184 = arith.constant 0 : index
    %c0_185 = arith.constant 0 : index
    %c0_186 = arith.constant 0 : index
    %327 = vector.load %arg7[%c3_183, %c0_184, %c0_185, %c0_186] : memref<4x8x8x8xf32, #tpu.memory_space<vmem>>, vector<1x1x8x8xf32>
    %328 = vector.shape_cast %327 : vector<1x1x8x8xf32> to vector<8x8xf32>
    %329 = vector.shape_cast %326 : vector<8x8xf32> to vector<1x1x8x8xf32>
    tpu.vector_store %arg7[%c3_183, %c0_184, %c0_185, %c0_186], %329 {strides = array<i32>} : memref<4x8x8x8xf32, #tpu.memory_space<vmem>>, vector<1x1x8x8xf32>,
    %330 = vector.extract_strided_slice %323 {offsets = [1, 0, 0], sizes = [1, 16, 8], strides = [1, 1, 1]} : vector<8x16x8xf32> to vector<1x16x8xf32>
    %331 = vector.shape_cast %330 : vector<1x16x8xf32> to vector<16x8xf32>
    %cst_187 = arith.constant dense<0.000000e+00> : vector<8x8xf32>
    %332 = tpu.matmul %304, %331, %cst_187 {dimension_numbers = #tpu.dot_dimension_numbers<[1], [0], [0], [1], [0, 0, 1, 1], [], []>} : vector<8x16xf32>, vector<16x8xf32>, vector<8x8xf32> -> vector<8x8xf32>
    %c3_188 = arith.constant 3 : index
    %c1_189 = arith.constant 1 : index
    %c0_190 = arith.constant 0 : index
    %c0_191 = arith.constant 0 : index
    %333 = vector.load %arg7[%c3_188, %c1_189, %c0_190, %c0_191] : memref<4x8x8x8xf32, #tpu.memory_space<vmem>>, vector<1x1x8x8xf32>
    %334 = vector.shape_cast %333 : vector<1x1x8x8xf32> to vector<8x8xf32>
    %335 = vector.shape_cast %332 : vector<8x8xf32> to vector<1x1x8x8xf32>
    tpu.vector_store %arg7[%c3_188, %c1_189, %c0_190, %c0_191], %335 {strides = array<i32>} : memref<4x8x8x8xf32, #tpu.memory_space<vmem>>, vector<1x1x8x8xf32>,
    %336 = vector.extract_strided_slice %323 {offsets = [2, 0, 0], sizes = [1, 16, 8], strides = [1, 1, 1]} : vector<8x16x8xf32> to vector<1x16x8xf32>
    %337 = vector.shape_cast %336 : vector<1x16x8xf32> to vector<16x8xf32>
    %cst_192 = arith.constant dense<0.000000e+00> : vector<8x8xf32>
    %338 = tpu.matmul %304, %337, %cst_192 {dimension_numbers = #tpu.dot_dimension_numbers<[1], [0], [0], [1], [0, 0, 1, 1], [], []>} : vector<8x16xf32>, vector<16x8xf32>, vector<8x8xf32> -> vector<8x8xf32>
    %c3_193 = arith.constant 3 : index
    %c2_194 = arith.constant 2 : index
    %c0_195 = arith.constant 0 : index
    %c0_196 = arith.constant 0 : index
    %339 = vector.load %arg7[%c3_193, %c2_194, %c0_195, %c0_196] : memref<4x8x8x8xf32, #tpu.memory_space<vmem>>, vector<1x1x8x8xf32>
    %340 = vector.shape_cast %339 : vector<1x1x8x8xf32> to vector<8x8xf32>
    %341 = vector.shape_cast %338 : vector<8x8xf32> to vector<1x1x8x8xf32>
    tpu.vector_store %arg7[%c3_193, %c2_194, %c0_195, %c0_196], %341 {strides = array<i32>} : memref<4x8x8x8xf32, #tpu.memory_space<vmem>>, vector<1x1x8x8xf32>,
    %342 = vector.extract_strided_slice %323 {offsets = [3, 0, 0], sizes = [1, 16, 8], strides = [1, 1, 1]} : vector<8x16x8xf32> to vector<1x16x8xf32>
    %343 = vector.shape_cast %342 : vector<1x16x8xf32> to vector<16x8xf32>
    %cst_197 = arith.constant dense<0.000000e+00> : vector<8x8xf32>
    %344 = tpu.matmul %304, %343, %cst_197 {dimension_numbers = #tpu.dot_dimension_numbers<[1], [0], [0], [1], [0, 0, 1, 1], [], []>} : vector<8x16xf32>, vector<16x8xf32>, vector<8x8xf32> -> vector<8x8xf32>
    %c3_198 = arith.constant 3 : index
    %c3_199 = arith.constant 3 : index
    %c0_200 = arith.constant 0 : index
    %c0_201 = arith.constant 0 : index
    %345 = vector.load %arg7[%c3_198, %c3_199, %c0_200, %c0_201] : memref<4x8x8x8xf32, #tpu.memory_space<vmem>>, vector<1x1x8x8xf32>
    %346 = vector.shape_cast %345 : vector<1x1x8x8xf32> to vector<8x8xf32>
    %347 = vector.shape_cast %344 : vector<8x8xf32> to vector<1x1x8x8xf32>
    tpu.vector_store %arg7[%c3_198, %c3_199, %c0_200, %c0_201], %347 {strides = array<i32>} : memref<4x8x8x8xf32, #tpu.memory_space<vmem>>, vector<1x1x8x8xf32>,
    %348 = vector.extract_strided_slice %323 {offsets = [4, 0, 0], sizes = [1, 16, 8], strides = [1, 1, 1]} : vector<8x16x8xf32> to vector<1x16x8xf32>
    %349 = vector.shape_cast %348 : vector<1x16x8xf32> to vector<16x8xf32>
    %cst_202 = arith.constant dense<0.000000e+00> : vector<8x8xf32>
    %350 = tpu.matmul %304, %349, %cst_202 {dimension_numbers = #tpu.dot_dimension_numbers<[1], [0], [0], [1], [0, 0, 1, 1], [], []>} : vector<8x16xf32>, vector<16x8xf32>, vector<8x8xf32> -> vector<8x8xf32>
    %c3_203 = arith.constant 3 : index
    %c4_204 = arith.constant 4 : index
    %c0_205 = arith.constant 0 : index
    %c0_206 = arith.constant 0 : index
    %351 = vector.load %arg7[%c3_203, %c4_204, %c0_205, %c0_206] : memref<4x8x8x8xf32, #tpu.memory_space<vmem>>, vector<1x1x8x8xf32>
    %352 = vector.shape_cast %351 : vector<1x1x8x8xf32> to vector<8x8xf32>
    %353 = vector.shape_cast %350 : vector<8x8xf32> to vector<1x1x8x8xf32>
    tpu.vector_store %arg7[%c3_203, %c4_204, %c0_205, %c0_206], %353 {strides = array<i32>} : memref<4x8x8x8xf32, #tpu.memory_space<vmem>>, vector<1x1x8x8xf32>,
    %354 = vector.extract_strided_slice %323 {offsets = [5, 0, 0], sizes = [1, 16, 8], strides = [1, 1, 1]} : vector<8x16x8xf32> to vector<1x16x8xf32>
    %355 = vector.shape_cast %354 : vector<1x16x8xf32> to vector<16x8xf32>
    %cst_207 = arith.constant dense<0.000000e+00> : vector<8x8xf32>
    %356 = tpu.matmul %304, %355, %cst_207 {dimension_numbers = #tpu.dot_dimension_numbers<[1], [0], [0], [1], [0, 0, 1, 1], [], []>} : vector<8x16xf32>, vector<16x8xf32>, vector<8x8xf32> -> vector<8x8xf32>
    %c3_208 = arith.constant 3 : index
    %c5_209 = arith.constant 5 : index
    %c0_210 = arith.constant 0 : index
    %c0_211 = arith.constant 0 : index
    %357 = vector.load %arg7[%c3_208, %c5_209, %c0_210, %c0_211] : memref<4x8x8x8xf32, #tpu.memory_space<vmem>>, vector<1x1x8x8xf32>
    %358 = vector.shape_cast %357 : vector<1x1x8x8xf32> to vector<8x8xf32>
    %359 = vector.shape_cast %356 : vector<8x8xf32> to vector<1x1x8x8xf32>
    tpu.vector_store %arg7[%c3_208, %c5_209, %c0_210, %c0_211], %359 {strides = array<i32>} : memref<4x8x8x8xf32, #tpu.memory_space<vmem>>, vector<1x1x8x8xf32>,
    %360 = vector.extract_strided_slice %323 {offsets = [6, 0, 0], sizes = [1, 16, 8], strides = [1, 1, 1]} : vector<8x16x8xf32> to vector<1x16x8xf32>
    %361 = vector.shape_cast %360 : vector<1x16x8xf32> to vector<16x8xf32>
    %cst_212 = arith.constant dense<0.000000e+00> : vector<8x8xf32>
    %362 = tpu.matmul %304, %361, %cst_212 {dimension_numbers = #tpu.dot_dimension_numbers<[1], [0], [0], [1], [0, 0, 1, 1], [], []>} : vector<8x16xf32>, vector<16x8xf32>, vector<8x8xf32> -> vector<8x8xf32>
    %c3_213 = arith.constant 3 : index
    %c6_214 = arith.constant 6 : index
    %c0_215 = arith.constant 0 : index
    %c0_216 = arith.constant 0 : index
    %363 = vector.load %arg7[%c3_213, %c6_214, %c0_215, %c0_216] : memref<4x8x8x8xf32, #tpu.memory_space<vmem>>, vector<1x1x8x8xf32>
    %364 = vector.shape_cast %363 : vector<1x1x8x8xf32> to vector<8x8xf32>
    %365 = vector.shape_cast %362 : vector<8x8xf32> to vector<1x1x8x8xf32>
    tpu.vector_store %arg7[%c3_213, %c6_214, %c0_215, %c0_216], %365 {strides = array<i32>} : memref<4x8x8x8xf32, #tpu.memory_space<vmem>>, vector<1x1x8x8xf32>,
    %366 = vector.extract_strided_slice %323 {offsets = [7, 0, 0], sizes = [1, 16, 8], strides = [1, 1, 1]} : vector<8x16x8xf32> to vector<1x16x8xf32>
    %367 = vector.shape_cast %366 : vector<1x16x8xf32> to vector<16x8xf32>
    %cst_217 = arith.constant dense<0.000000e+00> : vector<8x8xf32>
    %368 = tpu.matmul %304, %367, %cst_217 {dimension_numbers = #tpu.dot_dimension_numbers<[1], [0], [0], [1], [0, 0, 1, 1], [], []>} : vector<8x16xf32>, vector<16x8xf32>, vector<8x8xf32> -> vector<8x8xf32>
    %c3_218 = arith.constant 3 : index
    %c7_219 = arith.constant 7 : index
    %c0_220 = arith.constant 0 : index
    %c0_221 = arith.constant 0 : index
    %369 = vector.load %arg7[%c3_218, %c7_219, %c0_220, %c0_221] : memref<4x8x8x8xf32, #tpu.memory_space<vmem>>, vector<1x1x8x8xf32>
    %370 = vector.shape_cast %369 : vector<1x1x8x8xf32> to vector<8x8xf32>
    %371 = vector.shape_cast %368 : vector<8x8xf32> to vector<1x1x8x8xf32>
    tpu.vector_store %arg7[%c3_218, %c7_219, %c0_220, %c0_221], %371 {strides = array<i32>} : memref<4x8x8x8xf32, #tpu.memory_space<vmem>>, vector<1x1x8x8xf32>,
    return
  }
  func.func @transform_0(%arg0: i32, %arg1: i32) -> (i32, i32, i32) {
    %c0_i32 = arith.constant 0 : i32
    %c0_i32_0 = arith.constant 0 : i32
    %c0_i32_1 = arith.constant 0 : i32
    return %arg0, %c0_i32, %c0_i32_0 : i32, i32, i32
  }
  func.func @transform_1(%arg0: i32, %arg1: i32) -> (i32, i32, i32) {
    %c0_i32 = arith.constant 0 : i32
    %c0_i32_0 = arith.constant 0 : i32
    %c0_i32_1 = arith.constant 0 : i32
    return %arg1, %c0_i32, %c0_i32_0 : i32, i32, i32
  }
  func.func @transform_2(%arg0: i32, %arg1: i32) -> (i32, i32, i32) {
    %c0_i32 = arith.constant 0 : i32
    %c0_i32_0 = arith.constant 0 : i32
    %c0_i32_1 = arith.constant 0 : i32
    return %arg1, %c0_i32, %c0_i32_0 : i32, i32, i32
  }
  func.func @transform_3(%arg0: i32, %arg1: i32) -> (i32, i32, i32) {
    %c0_i32 = arith.constant 0 : i32
    %c0_i32_0 = arith.constant 0 : i32
    %c0_i32_1 = arith.constant 0 : i32
    return %arg1, %c0_i32, %c0_i32_0 : i32, i32, i32
  }
  func.func @transform_4(%arg0: i32, %arg1: i32) -> (i32, i32, i32) {
    %c0_i32 = arith.constant 0 : i32
    %c0_i32_0 = arith.constant 0 : i32
    %c0_i32_1 = arith.constant 0 : i32
    return %arg1, %c0_i32, %c0_i32_0 : i32, i32, i32
  }
  func.func @transform_5(%arg0: i32, %arg1: i32) -> (i32, i32, i32, i32) {
    %c0_i32 = arith.constant 0 : i32
    %c0_i32_0 = arith.constant 0 : i32
    %c0_i32_1 = arith.constant 0 : i32
    return %arg1, %arg0, %c0_i32, %c0_i32_0 : i32, i32, i32, i32
  }
}

module attributes {stable_mosaic.version = 11 : i64} {
  func.func @_cutout_kernel(%arg0: i32, %arg1: i32, %arg2: memref<8x16x16xf32, #tpu.memory_space<vmem>>, %arg3: memref<4x8x2xi32, #tpu.memory_space<vmem>>, %arg4: memref<4x8x2xf32, #tpu.memory_space<vmem>>, %arg5: memref<4x2x8xi32, #tpu.memory_space<vmem>>, %arg6: memref<4x2x8xf32, #tpu.memory_space<vmem>>, %arg7: memref<4x8x8x8xf32, #tpu.memory_space<vmem>>) attributes {dimension_semantics = [#tpu.dimension_semantics<parallel>, #tpu.dimension_semantics<parallel>], iteration_bounds = array<i64: 1, 1>, scalar_prefetch = 0 : i64, scratch_operands = 0 : i64, tpu.core_type = #tpu.core_type<tc>, window_params = [{transform_indices = @transform_0, window_bounds = array<i64: 8, 16, 16>}, {transform_indices = @transform_1, window_bounds = array<i64: 4, 8, 2>}, {transform_indices = @transform_2, window_bounds = array<i64: 4, 8, 2>}, {transform_indices = @transform_3, window_bounds = array<i64: 4, 2, 8>}, {transform_indices = @transform_4, window_bounds = array<i64: 4, 2, 8>}, {transform_indices = @transform_5, window_bounds = array<i64: 4, 8, 8, 8>}]} {
    %c0 = arith.constant 0 : index
    %c0_0 = arith.constant 0 : index
    %c0_1 = arith.constant 0 : index
    %0 = vector.load %arg2[%c0, %c0_0, %c0_1] : memref<8x16x16xf32, #tpu.memory_space<vmem>>, vector<8x16x16xf32>
    %1 = vector.shape_cast %0 : vector<8x16x16xf32> to vector<128x16xf32>
    %2 = tpu.iota {dimensions = array<i32: 1>} : vector<8x16xi32>
    %3 = tpu.iota {dimensions = array<i32: 0>} : vector<16x8xi32>
    %c0_2 = arith.constant 0 : index
    %c0_3 = arith.constant 0 : index
    %c0_4 = arith.constant 0 : index
    %4 = vector.load %arg3[%c0_2, %c0_3, %c0_4] : memref<4x8x2xi32, #tpu.memory_space<vmem>>, vector<1x8x2xi32>
    %5 = vector.shape_cast %4 : vector<1x8x2xi32> to vector<8x2xi32>
    %c0_5 = arith.constant 0 : index
    %c0_6 = arith.constant 0 : index
    %c0_7 = arith.constant 0 : index
    %6 = vector.load %arg4[%c0_5, %c0_6, %c0_7] : memref<4x8x2xf32, #tpu.memory_space<vmem>>, vector<1x8x2xf32>
    %7 = vector.shape_cast %6 : vector<1x8x2xf32> to vector<8x2xf32>
    %c0_8 = arith.constant 0 : index
    %c0_9 = arith.constant 0 : index
    %c0_10 = arith.constant 0 : index
    %8 = vector.load %arg5[%c0_8, %c0_9, %c0_10] : memref<4x2x8xi32, #tpu.memory_space<vmem>>, vector<1x2x8xi32>
    %9 = vector.shape_cast %8 : vector<1x2x8xi32> to vector<2x8xi32>
    %c0_11 = arith.constant 0 : index
    %c0_12 = arith.constant 0 : index
    %c0_13 = arith.constant 0 : index
    %10 = vector.load %arg6[%c0_11, %c0_12, %c0_13] : memref<4x2x8xf32, #tpu.memory_space<vmem>>, vector<1x2x8xf32>
    %11 = vector.shape_cast %10 : vector<1x2x8xf32> to vector<2x8xf32>
    %12 = vector.extract_strided_slice %5 {offsets = [0, 0], sizes = [8, 1], strides = [1, 1]} : vector<8x2xi32> to vector<8x1xi32>
    %13 = vector.broadcast %12 : vector<8x1xi32> to vector<8x16xi32>
    %14 = arith.cmpi eq, %2, %13 : vector<8x16xi32>
    %15 = vector.extract_strided_slice %7 {offsets = [0, 0], sizes = [8, 1], strides = [1, 1]} : vector<8x2xf32> to vector<8x1xf32>
    %cst = arith.constant 0.000000e+00 : f32
    %16 = vector.shape_cast %15 : vector<8x1xf32> to vector<8x1xf32>
    %17 = vector.broadcast %16 : vector<8x1xf32> to vector<8x16xf32>
    %18 = vector.broadcast %cst : f32 to vector<8x16xf32>
    %19 = arith.select %14, %17, %18 : vector<8x16xi1>, vector<8x16xf32>
    %20 = vector.extract_strided_slice %5 {offsets = [0, 1], sizes = [8, 1], strides = [1, 1]} : vector<8x2xi32> to vector<8x1xi32>
    %21 = vector.broadcast %20 : vector<8x1xi32> to vector<8x16xi32>
    %22 = arith.cmpi eq, %2, %21 : vector<8x16xi32>
    %23 = vector.extract_strided_slice %7 {offsets = [0, 1], sizes = [8, 1], strides = [1, 1]} : vector<8x2xf32> to vector<8x1xf32>
    %cst_14 = arith.constant 0.000000e+00 : f32
    %24 = vector.shape_cast %23 : vector<8x1xf32> to vector<8x1xf32>
    %25 = vector.broadcast %24 : vector<8x1xf32> to vector<8x16xf32>
    %26 = vector.broadcast %cst_14 : f32 to vector<8x16xf32>
    %27 = arith.select %22, %25, %26 : vector<8x16xi1>, vector<8x16xf32>
    %28 = arith.addf %19, %27 : vector<8x16xf32>
    %29 = vector.extract_strided_slice %9 {offsets = [0, 0], sizes = [1, 8], strides = [1, 1]} : vector<2x8xi32> to vector<1x8xi32>
    %30 = vector.broadcast %29 : vector<1x8xi32> to vector<16x8xi32>
    %31 = arith.cmpi eq, %3, %30 : vector<16x8xi32>
    %32 = vector.extract_strided_slice %11 {offsets = [0, 0], sizes = [1, 8], strides = [1, 1]} : vector<2x8xf32> to vector<1x8xf32>
    %cst_15 = arith.constant 0.000000e+00 : f32
    %33 = vector.shape_cast %32 : vector<1x8xf32> to vector<1x8xf32>
    %34 = vector.broadcast %33 : vector<1x8xf32> to vector<16x8xf32>
    %35 = vector.broadcast %cst_15 : f32 to vector<16x8xf32>
    %36 = arith.select %31, %34, %35 : vector<16x8xi1>, vector<16x8xf32>
    %37 = vector.extract_strided_slice %9 {offsets = [1, 0], sizes = [1, 8], strides = [1, 1]} : vector<2x8xi32> to vector<1x8xi32>
    %38 = vector.broadcast %37 : vector<1x8xi32> to vector<16x8xi32>
    %39 = arith.cmpi eq, %3, %38 : vector<16x8xi32>
    %40 = vector.extract_strided_slice %11 {offsets = [1, 0], sizes = [1, 8], strides = [1, 1]} : vector<2x8xf32> to vector<1x8xf32>
    %cst_16 = arith.constant 0.000000e+00 : f32
    %41 = vector.shape_cast %40 : vector<1x8xf32> to vector<1x8xf32>
    %42 = vector.broadcast %41 : vector<1x8xf32> to vector<16x8xf32>
    %43 = vector.broadcast %cst_16 : f32 to vector<16x8xf32>
    %44 = arith.select %39, %42, %43 : vector<16x8xi1>, vector<16x8xf32>
    %45 = arith.addf %36, %44 : vector<16x8xf32>
    %cst_17 = arith.constant dense<0.000000e+00> : vector<128x8xf32>
    %46 = tpu.matmul %1, %45, %cst_17 {dimension_numbers = #tpu.dot_dimension_numbers<[1], [0], [0], [1], [0, 0, 1, 1], [], []>} : vector<128x16xf32>, vector<16x8xf32>, vector<128x8xf32> -> vector<128x8xf32>
    %47 = vector.shape_cast %46 : vector<128x8xf32> to vector<8x16x8xf32>
    %48 = vector.extract_strided_slice %47 {offsets = [0, 0, 0], sizes = [1, 16, 8], strides = [1, 1, 1]} : vector<8x16x8xf32> to vector<1x16x8xf32>
    %49 = vector.shape_cast %48 : vector<1x16x8xf32> to vector<16x8xf32>
    %cst_18 = arith.constant dense<0.000000e+00> : vector<8x8xf32>
    %50 = tpu.matmul %28, %49, %cst_18 {dimension_numbers = #tpu.dot_dimension_numbers<[1], [0], [0], [1], [0, 0, 1, 1], [], []>} : vector<8x16xf32>, vector<16x8xf32>, vector<8x8xf32> -> vector<8x8xf32>
    %c0_19 = arith.constant 0 : index
    %c0_20 = arith.constant 0 : index
    %c0_21 = arith.constant 0 : index
    %c0_22 = arith.constant 0 : index
    %51 = vector.load %arg7[%c0_19, %c0_20, %c0_21, %c0_22] : memref<4x8x8x8xf32, #tpu.memory_space<vmem>>, vector<1x1x8x8xf32>
    %52 = vector.shape_cast %51 : vector<1x1x8x8xf32> to vector<8x8xf32>
    %53 = vector.shape_cast %50 : vector<8x8xf32> to vector<1x1x8x8xf32>
    tpu.vector_store %arg7[%c0_19, %c0_20, %c0_21, %c0_22], %53 {strides = array<i32>} : memref<4x8x8x8xf32, #tpu.memory_space<vmem>>, vector<1x1x8x8xf32>,
    %54 = vector.extract_strided_slice %47 {offsets = [1, 0, 0], sizes = [1, 16, 8], strides = [1, 1, 1]} : vector<8x16x8xf32> to vector<1x16x8xf32>
    %55 = vector.shape_cast %54 : vector<1x16x8xf32> to vector<16x8xf32>
    %cst_23 = arith.constant dense<0.000000e+00> : vector<8x8xf32>
    %56 = tpu.matmul %28, %55, %cst_23 {dimension_numbers = #tpu.dot_dimension_numbers<[1], [0], [0], [1], [0, 0, 1, 1], [], []>} : vector<8x16xf32>, vector<16x8xf32>, vector<8x8xf32> -> vector<8x8xf32>
    %c0_24 = arith.constant 0 : index
    %c1 = arith.constant 1 : index
    %c0_25 = arith.constant 0 : index
    %c0_26 = arith.constant 0 : index
    %57 = vector.load %arg7[%c0_24, %c1, %c0_25, %c0_26] : memref<4x8x8x8xf32, #tpu.memory_space<vmem>>, vector<1x1x8x8xf32>
    %58 = vector.shape_cast %57 : vector<1x1x8x8xf32> to vector<8x8xf32>
    %59 = vector.shape_cast %56 : vector<8x8xf32> to vector<1x1x8x8xf32>
    tpu.vector_store %arg7[%c0_24, %c1, %c0_25, %c0_26], %59 {strides = array<i32>} : memref<4x8x8x8xf32, #tpu.memory_space<vmem>>, vector<1x1x8x8xf32>,
    %60 = vector.extract_strided_slice %47 {offsets = [2, 0, 0], sizes = [1, 16, 8], strides = [1, 1, 1]} : vector<8x16x8xf32> to vector<1x16x8xf32>
    %61 = vector.shape_cast %60 : vector<1x16x8xf32> to vector<16x8xf32>
    %cst_27 = arith.constant dense<0.000000e+00> : vector<8x8xf32>
    %62 = tpu.matmul %28, %61, %cst_27 {dimension_numbers = #tpu.dot_dimension_numbers<[1], [0], [0], [1], [0, 0, 1, 1], [], []>} : vector<8x16xf32>, vector<16x8xf32>, vector<8x8xf32> -> vector<8x8xf32>
    %c0_28 = arith.constant 0 : index
    %c2 = arith.constant 2 : index
    %c0_29 = arith.constant 0 : index
    %c0_30 = arith.constant 0 : index
    %63 = vector.load %arg7[%c0_28, %c2, %c0_29, %c0_30] : memref<4x8x8x8xf32, #tpu.memory_space<vmem>>, vector<1x1x8x8xf32>
    %64 = vector.shape_cast %63 : vector<1x1x8x8xf32> to vector<8x8xf32>
    %65 = vector.shape_cast %62 : vector<8x8xf32> to vector<1x1x8x8xf32>
    tpu.vector_store %arg7[%c0_28, %c2, %c0_29, %c0_30], %65 {strides = array<i32>} : memref<4x8x8x8xf32, #tpu.memory_space<vmem>>, vector<1x1x8x8xf32>,
    %66 = vector.extract_strided_slice %47 {offsets = [3, 0, 0], sizes = [1, 16, 8], strides = [1, 1, 1]} : vector<8x16x8xf32> to vector<1x16x8xf32>
    %67 = vector.shape_cast %66 : vector<1x16x8xf32> to vector<16x8xf32>
    %cst_31 = arith.constant dense<0.000000e+00> : vector<8x8xf32>
    %68 = tpu.matmul %28, %67, %cst_31 {dimension_numbers = #tpu.dot_dimension_numbers<[1], [0], [0], [1], [0, 0, 1, 1], [], []>} : vector<8x16xf32>, vector<16x8xf32>, vector<8x8xf32> -> vector<8x8xf32>
    %c0_32 = arith.constant 0 : index
    %c3 = arith.constant 3 : index
    %c0_33 = arith.constant 0 : index
    %c0_34 = arith.constant 0 : index
    %69 = vector.load %arg7[%c0_32, %c3, %c0_33, %c0_34] : memref<4x8x8x8xf32, #tpu.memory_space<vmem>>, vector<1x1x8x8xf32>
    %70 = vector.shape_cast %69 : vector<1x1x8x8xf32> to vector<8x8xf32>
    %71 = vector.shape_cast %68 : vector<8x8xf32> to vector<1x1x8x8xf32>
    tpu.vector_store %arg7[%c0_32, %c3, %c0_33, %c0_34], %71 {strides = array<i32>} : memref<4x8x8x8xf32, #tpu.memory_space<vmem>>, vector<1x1x8x8xf32>,
    %72 = vector.extract_strided_slice %47 {offsets = [4, 0, 0], sizes = [1, 16, 8], strides = [1, 1, 1]} : vector<8x16x8xf32> to vector<1x16x8xf32>
    %73 = vector.shape_cast %72 : vector<1x16x8xf32> to vector<16x8xf32>
    %cst_35 = arith.constant dense<0.000000e+00> : vector<8x8xf32>
    %74 = tpu.matmul %28, %73, %cst_35 {dimension_numbers = #tpu.dot_dimension_numbers<[1], [0], [0], [1], [0, 0, 1, 1], [], []>} : vector<8x16xf32>, vector<16x8xf32>, vector<8x8xf32> -> vector<8x8xf32>
    %c0_36 = arith.constant 0 : index
    %c4 = arith.constant 4 : index
    %c0_37 = arith.constant 0 : index
    %c0_38 = arith.constant 0 : index
    %75 = vector.load %arg7[%c0_36, %c4, %c0_37, %c0_38] : memref<4x8x8x8xf32, #tpu.memory_space<vmem>>, vector<1x1x8x8xf32>
    %76 = vector.shape_cast %75 : vector<1x1x8x8xf32> to vector<8x8xf32>
    %77 = vector.shape_cast %74 : vector<8x8xf32> to vector<1x1x8x8xf32>
    tpu.vector_store %arg7[%c0_36, %c4, %c0_37, %c0_38], %77 {strides = array<i32>} : memref<4x8x8x8xf32, #tpu.memory_space<vmem>>, vector<1x1x8x8xf32>,
    %78 = vector.extract_strided_slice %47 {offsets = [5, 0, 0], sizes = [1, 16, 8], strides = [1, 1, 1]} : vector<8x16x8xf32> to vector<1x16x8xf32>
    %79 = vector.shape_cast %78 : vector<1x16x8xf32> to vector<16x8xf32>
    %cst_39 = arith.constant dense<0.000000e+00> : vector<8x8xf32>
    %80 = tpu.matmul %28, %79, %cst_39 {dimension_numbers = #tpu.dot_dimension_numbers<[1], [0], [0], [1], [0, 0, 1, 1], [], []>} : vector<8x16xf32>, vector<16x8xf32>, vector<8x8xf32> -> vector<8x8xf32>
    %c0_40 = arith.constant 0 : index
    %c5 = arith.constant 5 : index
    %c0_41 = arith.constant 0 : index
    %c0_42 = arith.constant 0 : index
    %81 = vector.load %arg7[%c0_40, %c5, %c0_41, %c0_42] : memref<4x8x8x8xf32, #tpu.memory_space<vmem>>, vector<1x1x8x8xf32>
    %82 = vector.shape_cast %81 : vector<1x1x8x8xf32> to vector<8x8xf32>
    %83 = vector.shape_cast %80 : vector<8x8xf32> to vector<1x1x8x8xf32>
    tpu.vector_store %arg7[%c0_40, %c5, %c0_41, %c0_42], %83 {strides = array<i32>} : memref<4x8x8x8xf32, #tpu.memory_space<vmem>>, vector<1x1x8x8xf32>,
    %84 = vector.extract_strided_slice %47 {offsets = [6, 0, 0], sizes = [1, 16, 8], strides = [1, 1, 1]} : vector<8x16x8xf32> to vector<1x16x8xf32>
    %85 = vector.shape_cast %84 : vector<1x16x8xf32> to vector<16x8xf32>
    %cst_43 = arith.constant dense<0.000000e+00> : vector<8x8xf32>
    %86 = tpu.matmul %28, %85, %cst_43 {dimension_numbers = #tpu.dot_dimension_numbers<[1], [0], [0], [1], [0, 0, 1, 1], [], []>} : vector<8x16xf32>, vector<16x8xf32>, vector<8x8xf32> -> vector<8x8xf32>
    %c0_44 = arith.constant 0 : index
    %c6 = arith.constant 6 : index
    %c0_45 = arith.constant 0 : index
    %c0_46 = arith.constant 0 : index
    %87 = vector.load %arg7[%c0_44, %c6, %c0_45, %c0_46] : memref<4x8x8x8xf32, #tpu.memory_space<vmem>>, vector<1x1x8x8xf32>
    %88 = vector.shape_cast %87 : vector<1x1x8x8xf32> to vector<8x8xf32>
    %89 = vector.shape_cast %86 : vector<8x8xf32> to vector<1x1x8x8xf32>
    tpu.vector_store %arg7[%c0_44, %c6, %c0_45, %c0_46], %89 {strides = array<i32>} : memref<4x8x8x8xf32, #tpu.memory_space<vmem>>, vector<1x1x8x8xf32>,
    %90 = vector.extract_strided_slice %47 {offsets = [7, 0, 0], sizes = [1, 16, 8], strides = [1, 1, 1]} : vector<8x16x8xf32> to vector<1x16x8xf32>
    %91 = vector.shape_cast %90 : vector<1x16x8xf32> to vector<16x8xf32>
    %cst_47 = arith.constant dense<0.000000e+00> : vector<8x8xf32>
    %92 = tpu.matmul %28, %91, %cst_47 {dimension_numbers = #tpu.dot_dimension_numbers<[1], [0], [0], [1], [0, 0, 1, 1], [], []>} : vector<8x16xf32>, vector<16x8xf32>, vector<8x8xf32> -> vector<8x8xf32>
    %c0_48 = arith.constant 0 : index
    %c7 = arith.constant 7 : index
    %c0_49 = arith.constant 0 : index
    %c0_50 = arith.constant 0 : index
    %93 = vector.load %arg7[%c0_48, %c7, %c0_49, %c0_50] : memref<4x8x8x8xf32, #tpu.memory_space<vmem>>, vector<1x1x8x8xf32>
    %94 = vector.shape_cast %93 : vector<1x1x8x8xf32> to vector<8x8xf32>
    %95 = vector.shape_cast %92 : vector<8x8xf32> to vector<1x1x8x8xf32>
    tpu.vector_store %arg7[%c0_48, %c7, %c0_49, %c0_50], %95 {strides = array<i32>} : memref<4x8x8x8xf32, #tpu.memory_space<vmem>>, vector<1x1x8x8xf32>,
    %c1_51 = arith.constant 1 : index
    %c0_52 = arith.constant 0 : index
    %c0_53 = arith.constant 0 : index
    %96 = vector.load %arg3[%c1_51, %c0_52, %c0_53] : memref<4x8x2xi32, #tpu.memory_space<vmem>>, vector<1x8x2xi32>
    %97 = vector.shape_cast %96 : vector<1x8x2xi32> to vector<8x2xi32>
    %c1_54 = arith.constant 1 : index
    %c0_55 = arith.constant 0 : index
    %c0_56 = arith.constant 0 : index
    %98 = vector.load %arg4[%c1_54, %c0_55, %c0_56] : memref<4x8x2xf32, #tpu.memory_space<vmem>>, vector<1x8x2xf32>
    %99 = vector.shape_cast %98 : vector<1x8x2xf32> to vector<8x2xf32>
    %c1_57 = arith.constant 1 : index
    %c0_58 = arith.constant 0 : index
    %c0_59 = arith.constant 0 : index
    %100 = vector.load %arg5[%c1_57, %c0_58, %c0_59] : memref<4x2x8xi32, #tpu.memory_space<vmem>>, vector<1x2x8xi32>
    %101 = vector.shape_cast %100 : vector<1x2x8xi32> to vector<2x8xi32>
    %c1_60 = arith.constant 1 : index
    %c0_61 = arith.constant 0 : index
    %c0_62 = arith.constant 0 : index
    %102 = vector.load %arg6[%c1_60, %c0_61, %c0_62] : memref<4x2x8xf32, #tpu.memory_space<vmem>>, vector<1x2x8xf32>
    %103 = vector.shape_cast %102 : vector<1x2x8xf32> to vector<2x8xf32>
    %104 = vector.extract_strided_slice %97 {offsets = [0, 0], sizes = [8, 1], strides = [1, 1]} : vector<8x2xi32> to vector<8x1xi32>
    %105 = vector.broadcast %104 : vector<8x1xi32> to vector<8x16xi32>
    %106 = arith.cmpi eq, %2, %105 : vector<8x16xi32>
    %107 = vector.extract_strided_slice %99 {offsets = [0, 0], sizes = [8, 1], strides = [1, 1]} : vector<8x2xf32> to vector<8x1xf32>
    %cst_63 = arith.constant 0.000000e+00 : f32
    %108 = vector.shape_cast %107 : vector<8x1xf32> to vector<8x1xf32>
    %109 = vector.broadcast %108 : vector<8x1xf32> to vector<8x16xf32>
    %110 = vector.broadcast %cst_63 : f32 to vector<8x16xf32>
    %111 = arith.select %106, %109, %110 : vector<8x16xi1>, vector<8x16xf32>
    %112 = vector.extract_strided_slice %97 {offsets = [0, 1], sizes = [8, 1], strides = [1, 1]} : vector<8x2xi32> to vector<8x1xi32>
    %113 = vector.broadcast %112 : vector<8x1xi32> to vector<8x16xi32>
    %114 = arith.cmpi eq, %2, %113 : vector<8x16xi32>
    %115 = vector.extract_strided_slice %99 {offsets = [0, 1], sizes = [8, 1], strides = [1, 1]} : vector<8x2xf32> to vector<8x1xf32>
    %cst_64 = arith.constant 0.000000e+00 : f32
    %116 = vector.shape_cast %115 : vector<8x1xf32> to vector<8x1xf32>
    %117 = vector.broadcast %116 : vector<8x1xf32> to vector<8x16xf32>
    %118 = vector.broadcast %cst_64 : f32 to vector<8x16xf32>
    %119 = arith.select %114, %117, %118 : vector<8x16xi1>, vector<8x16xf32>
    %120 = arith.addf %111, %119 : vector<8x16xf32>
    %121 = vector.extract_strided_slice %101 {offsets = [0, 0], sizes = [1, 8], strides = [1, 1]} : vector<2x8xi32> to vector<1x8xi32>
    %122 = vector.broadcast %121 : vector<1x8xi32> to vector<16x8xi32>
    %123 = arith.cmpi eq, %3, %122 : vector<16x8xi32>
    %124 = vector.extract_strided_slice %103 {offsets = [0, 0], sizes = [1, 8], strides = [1, 1]} : vector<2x8xf32> to vector<1x8xf32>
    %cst_65 = arith.constant 0.000000e+00 : f32
    %125 = vector.shape_cast %124 : vector<1x8xf32> to vector<1x8xf32>
    %126 = vector.broadcast %125 : vector<1x8xf32> to vector<16x8xf32>
    %127 = vector.broadcast %cst_65 : f32 to vector<16x8xf32>
    %128 = arith.select %123, %126, %127 : vector<16x8xi1>, vector<16x8xf32>
    %129 = vector.extract_strided_slice %101 {offsets = [1, 0], sizes = [1, 8], strides = [1, 1]} : vector<2x8xi32> to vector<1x8xi32>
    %130 = vector.broadcast %129 : vector<1x8xi32> to vector<16x8xi32>
    %131 = arith.cmpi eq, %3, %130 : vector<16x8xi32>
    %132 = vector.extract_strided_slice %103 {offsets = [1, 0], sizes = [1, 8], strides = [1, 1]} : vector<2x8xf32> to vector<1x8xf32>
    %cst_66 = arith.constant 0.000000e+00 : f32
    %133 = vector.shape_cast %132 : vector<1x8xf32> to vector<1x8xf32>
    %134 = vector.broadcast %133 : vector<1x8xf32> to vector<16x8xf32>
    %135 = vector.broadcast %cst_66 : f32 to vector<16x8xf32>
    %136 = arith.select %131, %134, %135 : vector<16x8xi1>, vector<16x8xf32>
    %137 = arith.addf %128, %136 : vector<16x8xf32>
    %cst_67 = arith.constant dense<0.000000e+00> : vector<128x8xf32>
    %138 = tpu.matmul %1, %137, %cst_67 {dimension_numbers = #tpu.dot_dimension_numbers<[1], [0], [0], [1], [0, 0, 1, 1], [], []>} : vector<128x16xf32>, vector<16x8xf32>, vector<128x8xf32> -> vector<128x8xf32>
    %139 = vector.shape_cast %138 : vector<128x8xf32> to vector<8x16x8xf32>
    %140 = vector.extract_strided_slice %139 {offsets = [0, 0, 0], sizes = [1, 16, 8], strides = [1, 1, 1]} : vector<8x16x8xf32> to vector<1x16x8xf32>
    %141 = vector.shape_cast %140 : vector<1x16x8xf32> to vector<16x8xf32>
    %cst_68 = arith.constant dense<0.000000e+00> : vector<8x8xf32>
    %142 = tpu.matmul %120, %141, %cst_68 {dimension_numbers = #tpu.dot_dimension_numbers<[1], [0], [0], [1], [0, 0, 1, 1], [], []>} : vector<8x16xf32>, vector<16x8xf32>, vector<8x8xf32> -> vector<8x8xf32>
    %c1_69 = arith.constant 1 : index
    %c0_70 = arith.constant 0 : index
    %c0_71 = arith.constant 0 : index
    %c0_72 = arith.constant 0 : index
    %143 = vector.load %arg7[%c1_69, %c0_70, %c0_71, %c0_72] : memref<4x8x8x8xf32, #tpu.memory_space<vmem>>, vector<1x1x8x8xf32>
    %144 = vector.shape_cast %143 : vector<1x1x8x8xf32> to vector<8x8xf32>
    %145 = vector.shape_cast %142 : vector<8x8xf32> to vector<1x1x8x8xf32>
    tpu.vector_store %arg7[%c1_69, %c0_70, %c0_71, %c0_72], %145 {strides = array<i32>} : memref<4x8x8x8xf32, #tpu.memory_space<vmem>>, vector<1x1x8x8xf32>,
    %146 = vector.extract_strided_slice %139 {offsets = [1, 0, 0], sizes = [1, 16, 8], strides = [1, 1, 1]} : vector<8x16x8xf32> to vector<1x16x8xf32>
    %147 = vector.shape_cast %146 : vector<1x16x8xf32> to vector<16x8xf32>
    %cst_73 = arith.constant dense<0.000000e+00> : vector<8x8xf32>
    %148 = tpu.matmul %120, %147, %cst_73 {dimension_numbers = #tpu.dot_dimension_numbers<[1], [0], [0], [1], [0, 0, 1, 1], [], []>} : vector<8x16xf32>, vector<16x8xf32>, vector<8x8xf32> -> vector<8x8xf32>
    %c1_74 = arith.constant 1 : index
    %c1_75 = arith.constant 1 : index
    %c0_76 = arith.constant 0 : index
    %c0_77 = arith.constant 0 : index
    %149 = vector.load %arg7[%c1_74, %c1_75, %c0_76, %c0_77] : memref<4x8x8x8xf32, #tpu.memory_space<vmem>>, vector<1x1x8x8xf32>
    %150 = vector.shape_cast %149 : vector<1x1x8x8xf32> to vector<8x8xf32>
    %151 = vector.shape_cast %148 : vector<8x8xf32> to vector<1x1x8x8xf32>
    tpu.vector_store %arg7[%c1_74, %c1_75, %c0_76, %c0_77], %151 {strides = array<i32>} : memref<4x8x8x8xf32, #tpu.memory_space<vmem>>, vector<1x1x8x8xf32>,
    %152 = vector.extract_strided_slice %139 {offsets = [2, 0, 0], sizes = [1, 16, 8], strides = [1, 1, 1]} : vector<8x16x8xf32> to vector<1x16x8xf32>
    %153 = vector.shape_cast %152 : vector<1x16x8xf32> to vector<16x8xf32>
    %cst_78 = arith.constant dense<0.000000e+00> : vector<8x8xf32>
    %154 = tpu.matmul %120, %153, %cst_78 {dimension_numbers = #tpu.dot_dimension_numbers<[1], [0], [0], [1], [0, 0, 1, 1], [], []>} : vector<8x16xf32>, vector<16x8xf32>, vector<8x8xf32> -> vector<8x8xf32>
    %c1_79 = arith.constant 1 : index
    %c2_80 = arith.constant 2 : index
    %c0_81 = arith.constant 0 : index
    %c0_82 = arith.constant 0 : index
    %155 = vector.load %arg7[%c1_79, %c2_80, %c0_81, %c0_82] : memref<4x8x8x8xf32, #tpu.memory_space<vmem>>, vector<1x1x8x8xf32>
    %156 = vector.shape_cast %155 : vector<1x1x8x8xf32> to vector<8x8xf32>
    %157 = vector.shape_cast %154 : vector<8x8xf32> to vector<1x1x8x8xf32>
    tpu.vector_store %arg7[%c1_79, %c2_80, %c0_81, %c0_82], %157 {strides = array<i32>} : memref<4x8x8x8xf32, #tpu.memory_space<vmem>>, vector<1x1x8x8xf32>,
    %158 = vector.extract_strided_slice %139 {offsets = [3, 0, 0], sizes = [1, 16, 8], strides = [1, 1, 1]} : vector<8x16x8xf32> to vector<1x16x8xf32>
    %159 = vector.shape_cast %158 : vector<1x16x8xf32> to vector<16x8xf32>
    %cst_83 = arith.constant dense<0.000000e+00> : vector<8x8xf32>
    %160 = tpu.matmul %120, %159, %cst_83 {dimension_numbers = #tpu.dot_dimension_numbers<[1], [0], [0], [1], [0, 0, 1, 1], [], []>} : vector<8x16xf32>, vector<16x8xf32>, vector<8x8xf32> -> vector<8x8xf32>
    %c1_84 = arith.constant 1 : index
    %c3_85 = arith.constant 3 : index
    %c0_86 = arith.constant 0 : index
    %c0_87 = arith.constant 0 : index
    %161 = vector.load %arg7[%c1_84, %c3_85, %c0_86, %c0_87] : memref<4x8x8x8xf32, #tpu.memory_space<vmem>>, vector<1x1x8x8xf32>
    %162 = vector.shape_cast %161 : vector<1x1x8x8xf32> to vector<8x8xf32>
    %163 = vector.shape_cast %160 : vector<8x8xf32> to vector<1x1x8x8xf32>
    tpu.vector_store %arg7[%c1_84, %c3_85, %c0_86, %c0_87], %163 {strides = array<i32>} : memref<4x8x8x8xf32, #tpu.memory_space<vmem>>, vector<1x1x8x8xf32>,
    %164 = vector.extract_strided_slice %139 {offsets = [4, 0, 0], sizes = [1, 16, 8], strides = [1, 1, 1]} : vector<8x16x8xf32> to vector<1x16x8xf32>
    %165 = vector.shape_cast %164 : vector<1x16x8xf32> to vector<16x8xf32>
    %cst_88 = arith.constant dense<0.000000e+00> : vector<8x8xf32>
    %166 = tpu.matmul %120, %165, %cst_88 {dimension_numbers = #tpu.dot_dimension_numbers<[1], [0], [0], [1], [0, 0, 1, 1], [], []>} : vector<8x16xf32>, vector<16x8xf32>, vector<8x8xf32> -> vector<8x8xf32>
    %c1_89 = arith.constant 1 : index
    %c4_90 = arith.constant 4 : index
    %c0_91 = arith.constant 0 : index
    %c0_92 = arith.constant 0 : index
    %167 = vector.load %arg7[%c1_89, %c4_90, %c0_91, %c0_92] : memref<4x8x8x8xf32, #tpu.memory_space<vmem>>, vector<1x1x8x8xf32>
    %168 = vector.shape_cast %167 : vector<1x1x8x8xf32> to vector<8x8xf32>
    %169 = vector.shape_cast %166 : vector<8x8xf32> to vector<1x1x8x8xf32>
    tpu.vector_store %arg7[%c1_89, %c4_90, %c0_91, %c0_92], %169 {strides = array<i32>} : memref<4x8x8x8xf32, #tpu.memory_space<vmem>>, vector<1x1x8x8xf32>,
    %170 = vector.extract_strided_slice %139 {offsets = [5, 0, 0], sizes = [1, 16, 8], strides = [1, 1, 1]} : vector<8x16x8xf32> to vector<1x16x8xf32>
    %171 = vector.shape_cast %170 : vector<1x16x8xf32> to vector<16x8xf32>
    %cst_93 = arith.constant dense<0.000000e+00> : vector<8x8xf32>
    %172 = tpu.matmul %120, %171, %cst_93 {dimension_numbers = #tpu.dot_dimension_numbers<[1], [0], [0], [1], [0, 0, 1, 1], [], []>} : vector<8x16xf32>, vector<16x8xf32>, vector<8x8xf32> -> vector<8x8xf32>
    %c1_94 = arith.constant 1 : index
    %c5_95 = arith.constant 5 : index
    %c0_96 = arith.constant 0 : index
    %c0_97 = arith.constant 0 : index
    %173 = vector.load %arg7[%c1_94, %c5_95, %c0_96, %c0_97] : memref<4x8x8x8xf32, #tpu.memory_space<vmem>>, vector<1x1x8x8xf32>
    %174 = vector.shape_cast %173 : vector<1x1x8x8xf32> to vector<8x8xf32>
    %175 = vector.shape_cast %172 : vector<8x8xf32> to vector<1x1x8x8xf32>
    tpu.vector_store %arg7[%c1_94, %c5_95, %c0_96, %c0_97], %175 {strides = array<i32>} : memref<4x8x8x8xf32, #tpu.memory_space<vmem>>, vector<1x1x8x8xf32>,
    %176 = vector.extract_strided_slice %139 {offsets = [6, 0, 0], sizes = [1, 16, 8], strides = [1, 1, 1]} : vector<8x16x8xf32> to vector<1x16x8xf32>
    %177 = vector.shape_cast %176 : vector<1x16x8xf32> to vector<16x8xf32>
    %cst_98 = arith.constant dense<0.000000e+00> : vector<8x8xf32>
    %178 = tpu.matmul %120, %177, %cst_98 {dimension_numbers = #tpu.dot_dimension_numbers<[1], [0], [0], [1], [0, 0, 1, 1], [], []>} : vector<8x16xf32>, vector<16x8xf32>, vector<8x8xf32> -> vector<8x8xf32>
    %c1_99 = arith.constant 1 : index
    %c6_100 = arith.constant 6 : index
    %c0_101 = arith.constant 0 : index
    %c0_102 = arith.constant 0 : index
    %179 = vector.load %arg7[%c1_99, %c6_100, %c0_101, %c0_102] : memref<4x8x8x8xf32, #tpu.memory_space<vmem>>, vector<1x1x8x8xf32>
    %180 = vector.shape_cast %179 : vector<1x1x8x8xf32> to vector<8x8xf32>
    %181 = vector.shape_cast %178 : vector<8x8xf32> to vector<1x1x8x8xf32>
    tpu.vector_store %arg7[%c1_99, %c6_100, %c0_101, %c0_102], %181 {strides = array<i32>} : memref<4x8x8x8xf32, #tpu.memory_space<vmem>>, vector<1x1x8x8xf32>,
    %182 = vector.extract_strided_slice %139 {offsets = [7, 0, 0], sizes = [1, 16, 8], strides = [1, 1, 1]} : vector<8x16x8xf32> to vector<1x16x8xf32>
    %183 = vector.shape_cast %182 : vector<1x16x8xf32> to vector<16x8xf32>
    %cst_103 = arith.constant dense<0.000000e+00> : vector<8x8xf32>
    %184 = tpu.matmul %120, %183, %cst_103 {dimension_numbers = #tpu.dot_dimension_numbers<[1], [0], [0], [1], [0, 0, 1, 1], [], []>} : vector<8x16xf32>, vector<16x8xf32>, vector<8x8xf32> -> vector<8x8xf32>
    %c1_104 = arith.constant 1 : index
    %c7_105 = arith.constant 7 : index
    %c0_106 = arith.constant 0 : index
    %c0_107 = arith.constant 0 : index
    %185 = vector.load %arg7[%c1_104, %c7_105, %c0_106, %c0_107] : memref<4x8x8x8xf32, #tpu.memory_space<vmem>>, vector<1x1x8x8xf32>
    %186 = vector.shape_cast %185 : vector<1x1x8x8xf32> to vector<8x8xf32>
    %187 = vector.shape_cast %184 : vector<8x8xf32> to vector<1x1x8x8xf32>
    tpu.vector_store %arg7[%c1_104, %c7_105, %c0_106, %c0_107], %187 {strides = array<i32>} : memref<4x8x8x8xf32, #tpu.memory_space<vmem>>, vector<1x1x8x8xf32>,
    %c2_108 = arith.constant 2 : index
    %c0_109 = arith.constant 0 : index
    %c0_110 = arith.constant 0 : index
    %188 = vector.load %arg3[%c2_108, %c0_109, %c0_110] : memref<4x8x2xi32, #tpu.memory_space<vmem>>, vector<1x8x2xi32>
    %189 = vector.shape_cast %188 : vector<1x8x2xi32> to vector<8x2xi32>
    %c2_111 = arith.constant 2 : index
    %c0_112 = arith.constant 0 : index
    %c0_113 = arith.constant 0 : index
    %190 = vector.load %arg4[%c2_111, %c0_112, %c0_113] : memref<4x8x2xf32, #tpu.memory_space<vmem>>, vector<1x8x2xf32>
    %191 = vector.shape_cast %190 : vector<1x8x2xf32> to vector<8x2xf32>
    %c2_114 = arith.constant 2 : index
    %c0_115 = arith.constant 0 : index
    %c0_116 = arith.constant 0 : index
    %192 = vector.load %arg5[%c2_114, %c0_115, %c0_116] : memref<4x2x8xi32, #tpu.memory_space<vmem>>, vector<1x2x8xi32>
    %193 = vector.shape_cast %192 : vector<1x2x8xi32> to vector<2x8xi32>
    %c2_117 = arith.constant 2 : index
    %c0_118 = arith.constant 0 : index
    %c0_119 = arith.constant 0 : index
    %194 = vector.load %arg6[%c2_117, %c0_118, %c0_119] : memref<4x2x8xf32, #tpu.memory_space<vmem>>, vector<1x2x8xf32>
    %195 = vector.shape_cast %194 : vector<1x2x8xf32> to vector<2x8xf32>
    %196 = vector.extract_strided_slice %189 {offsets = [0, 0], sizes = [8, 1], strides = [1, 1]} : vector<8x2xi32> to vector<8x1xi32>
    %197 = vector.broadcast %196 : vector<8x1xi32> to vector<8x16xi32>
    %198 = arith.cmpi eq, %2, %197 : vector<8x16xi32>
    %199 = vector.extract_strided_slice %191 {offsets = [0, 0], sizes = [8, 1], strides = [1, 1]} : vector<8x2xf32> to vector<8x1xf32>
    %cst_120 = arith.constant 0.000000e+00 : f32
    %200 = vector.shape_cast %199 : vector<8x1xf32> to vector<8x1xf32>
    %201 = vector.broadcast %200 : vector<8x1xf32> to vector<8x16xf32>
    %202 = vector.broadcast %cst_120 : f32 to vector<8x16xf32>
    %203 = arith.select %198, %201, %202 : vector<8x16xi1>, vector<8x16xf32>
    %204 = vector.extract_strided_slice %189 {offsets = [0, 1], sizes = [8, 1], strides = [1, 1]} : vector<8x2xi32> to vector<8x1xi32>
    %205 = vector.broadcast %204 : vector<8x1xi32> to vector<8x16xi32>
    %206 = arith.cmpi eq, %2, %205 : vector<8x16xi32>
    %207 = vector.extract_strided_slice %191 {offsets = [0, 1], sizes = [8, 1], strides = [1, 1]} : vector<8x2xf32> to vector<8x1xf32>
    %cst_121 = arith.constant 0.000000e+00 : f32
    %208 = vector.shape_cast %207 : vector<8x1xf32> to vector<8x1xf32>
    %209 = vector.broadcast %208 : vector<8x1xf32> to vector<8x16xf32>
    %210 = vector.broadcast %cst_121 : f32 to vector<8x16xf32>
    %211 = arith.select %206, %209, %210 : vector<8x16xi1>, vector<8x16xf32>
    %212 = arith.addf %203, %211 : vector<8x16xf32>
    %213 = vector.extract_strided_slice %193 {offsets = [0, 0], sizes = [1, 8], strides = [1, 1]} : vector<2x8xi32> to vector<1x8xi32>
    %214 = vector.broadcast %213 : vector<1x8xi32> to vector<16x8xi32>
    %215 = arith.cmpi eq, %3, %214 : vector<16x8xi32>
    %216 = vector.extract_strided_slice %195 {offsets = [0, 0], sizes = [1, 8], strides = [1, 1]} : vector<2x8xf32> to vector<1x8xf32>
    %cst_122 = arith.constant 0.000000e+00 : f32
    %217 = vector.shape_cast %216 : vector<1x8xf32> to vector<1x8xf32>
    %218 = vector.broadcast %217 : vector<1x8xf32> to vector<16x8xf32>
    %219 = vector.broadcast %cst_122 : f32 to vector<16x8xf32>
    %220 = arith.select %215, %218, %219 : vector<16x8xi1>, vector<16x8xf32>
    %221 = vector.extract_strided_slice %193 {offsets = [1, 0], sizes = [1, 8], strides = [1, 1]} : vector<2x8xi32> to vector<1x8xi32>
    %222 = vector.broadcast %221 : vector<1x8xi32> to vector<16x8xi32>
    %223 = arith.cmpi eq, %3, %222 : vector<16x8xi32>
    %224 = vector.extract_strided_slice %195 {offsets = [1, 0], sizes = [1, 8], strides = [1, 1]} : vector<2x8xf32> to vector<1x8xf32>
    %cst_123 = arith.constant 0.000000e+00 : f32
    %225 = vector.shape_cast %224 : vector<1x8xf32> to vector<1x8xf32>
    %226 = vector.broadcast %225 : vector<1x8xf32> to vector<16x8xf32>
    %227 = vector.broadcast %cst_123 : f32 to vector<16x8xf32>
    %228 = arith.select %223, %226, %227 : vector<16x8xi1>, vector<16x8xf32>
    %229 = arith.addf %220, %228 : vector<16x8xf32>
    %cst_124 = arith.constant dense<0.000000e+00> : vector<128x8xf32>
    %230 = tpu.matmul %1, %229, %cst_124 {dimension_numbers = #tpu.dot_dimension_numbers<[1], [0], [0], [1], [0, 0, 1, 1], [], []>} : vector<128x16xf32>, vector<16x8xf32>, vector<128x8xf32> -> vector<128x8xf32>
    %231 = vector.shape_cast %230 : vector<128x8xf32> to vector<8x16x8xf32>
    %232 = vector.extract_strided_slice %231 {offsets = [0, 0, 0], sizes = [1, 16, 8], strides = [1, 1, 1]} : vector<8x16x8xf32> to vector<1x16x8xf32>
    %233 = vector.shape_cast %232 : vector<1x16x8xf32> to vector<16x8xf32>
    %cst_125 = arith.constant dense<0.000000e+00> : vector<8x8xf32>
    %234 = tpu.matmul %212, %233, %cst_125 {dimension_numbers = #tpu.dot_dimension_numbers<[1], [0], [0], [1], [0, 0, 1, 1], [], []>} : vector<8x16xf32>, vector<16x8xf32>, vector<8x8xf32> -> vector<8x8xf32>
    %c2_126 = arith.constant 2 : index
    %c0_127 = arith.constant 0 : index
    %c0_128 = arith.constant 0 : index
    %c0_129 = arith.constant 0 : index
    %235 = vector.load %arg7[%c2_126, %c0_127, %c0_128, %c0_129] : memref<4x8x8x8xf32, #tpu.memory_space<vmem>>, vector<1x1x8x8xf32>
    %236 = vector.shape_cast %235 : vector<1x1x8x8xf32> to vector<8x8xf32>
    %237 = vector.shape_cast %234 : vector<8x8xf32> to vector<1x1x8x8xf32>
    tpu.vector_store %arg7[%c2_126, %c0_127, %c0_128, %c0_129], %237 {strides = array<i32>} : memref<4x8x8x8xf32, #tpu.memory_space<vmem>>, vector<1x1x8x8xf32>,
    %238 = vector.extract_strided_slice %231 {offsets = [1, 0, 0], sizes = [1, 16, 8], strides = [1, 1, 1]} : vector<8x16x8xf32> to vector<1x16x8xf32>
    %239 = vector.shape_cast %238 : vector<1x16x8xf32> to vector<16x8xf32>
    %cst_130 = arith.constant dense<0.000000e+00> : vector<8x8xf32>
    %240 = tpu.matmul %212, %239, %cst_130 {dimension_numbers = #tpu.dot_dimension_numbers<[1], [0], [0], [1], [0, 0, 1, 1], [], []>} : vector<8x16xf32>, vector<16x8xf32>, vector<8x8xf32> -> vector<8x8xf32>
    %c2_131 = arith.constant 2 : index
    %c1_132 = arith.constant 1 : index
    %c0_133 = arith.constant 0 : index
    %c0_134 = arith.constant 0 : index
    %241 = vector.load %arg7[%c2_131, %c1_132, %c0_133, %c0_134] : memref<4x8x8x8xf32, #tpu.memory_space<vmem>>, vector<1x1x8x8xf32>
    %242 = vector.shape_cast %241 : vector<1x1x8x8xf32> to vector<8x8xf32>
    %243 = vector.shape_cast %240 : vector<8x8xf32> to vector<1x1x8x8xf32>
    tpu.vector_store %arg7[%c2_131, %c1_132, %c0_133, %c0_134], %243 {strides = array<i32>} : memref<4x8x8x8xf32, #tpu.memory_space<vmem>>, vector<1x1x8x8xf32>,
    %244 = vector.extract_strided_slice %231 {offsets = [2, 0, 0], sizes = [1, 16, 8], strides = [1, 1, 1]} : vector<8x16x8xf32> to vector<1x16x8xf32>
    %245 = vector.shape_cast %244 : vector<1x16x8xf32> to vector<16x8xf32>
    %cst_135 = arith.constant dense<0.000000e+00> : vector<8x8xf32>
    %246 = tpu.matmul %212, %245, %cst_135 {dimension_numbers = #tpu.dot_dimension_numbers<[1], [0], [0], [1], [0, 0, 1, 1], [], []>} : vector<8x16xf32>, vector<16x8xf32>, vector<8x8xf32> -> vector<8x8xf32>
    %c2_136 = arith.constant 2 : index
    %c2_137 = arith.constant 2 : index
    %c0_138 = arith.constant 0 : index
    %c0_139 = arith.constant 0 : index
    %247 = vector.load %arg7[%c2_136, %c2_137, %c0_138, %c0_139] : memref<4x8x8x8xf32, #tpu.memory_space<vmem>>, vector<1x1x8x8xf32>
    %248 = vector.shape_cast %247 : vector<1x1x8x8xf32> to vector<8x8xf32>
    %249 = vector.shape_cast %246 : vector<8x8xf32> to vector<1x1x8x8xf32>
    tpu.vector_store %arg7[%c2_136, %c2_137, %c0_138, %c0_139], %249 {strides = array<i32>} : memref<4x8x8x8xf32, #tpu.memory_space<vmem>>, vector<1x1x8x8xf32>,
    %250 = vector.extract_strided_slice %231 {offsets = [3, 0, 0], sizes = [1, 16, 8], strides = [1, 1, 1]} : vector<8x16x8xf32> to vector<1x16x8xf32>
    %251 = vector.shape_cast %250 : vector<1x16x8xf32> to vector<16x8xf32>
    %cst_140 = arith.constant dense<0.000000e+00> : vector<8x8xf32>
    %252 = tpu.matmul %212, %251, %cst_140 {dimension_numbers = #tpu.dot_dimension_numbers<[1], [0], [0], [1], [0, 0, 1, 1], [], []>} : vector<8x16xf32>, vector<16x8xf32>, vector<8x8xf32> -> vector<8x8xf32>
    %c2_141 = arith.constant 2 : index
    %c3_142 = arith.constant 3 : index
    %c0_143 = arith.constant 0 : index
    %c0_144 = arith.constant 0 : index
    %253 = vector.load %arg7[%c2_141, %c3_142, %c0_143, %c0_144] : memref<4x8x8x8xf32, #tpu.memory_space<vmem>>, vector<1x1x8x8xf32>
    %254 = vector.shape_cast %253 : vector<1x1x8x8xf32> to vector<8x8xf32>
    %255 = vector.shape_cast %252 : vector<8x8xf32> to vector<1x1x8x8xf32>
    tpu.vector_store %arg7[%c2_141, %c3_142, %c0_143, %c0_144], %255 {strides = array<i32>} : memref<4x8x8x8xf32, #tpu.memory_space<vmem>>, vector<1x1x8x8xf32>,
    %256 = vector.extract_strided_slice %231 {offsets = [4, 0, 0], sizes = [1, 16, 8], strides = [1, 1, 1]} : vector<8x16x8xf32> to vector<1x16x8xf32>
    %257 = vector.shape_cast %256 : vector<1x16x8xf32> to vector<16x8xf32>
    %cst_145 = arith.constant dense<0.000000e+00> : vector<8x8xf32>
    %258 = tpu.matmul %212, %257, %cst_145 {dimension_numbers = #tpu.dot_dimension_numbers<[1], [0], [0], [1], [0, 0, 1, 1], [], []>} : vector<8x16xf32>, vector<16x8xf32>, vector<8x8xf32> -> vector<8x8xf32>
    %c2_146 = arith.constant 2 : index
    %c4_147 = arith.constant 4 : index
    %c0_148 = arith.constant 0 : index
    %c0_149 = arith.constant 0 : index
    %259 = vector.load %arg7[%c2_146, %c4_147, %c0_148, %c0_149] : memref<4x8x8x8xf32, #tpu.memory_space<vmem>>, vector<1x1x8x8xf32>
    %260 = vector.shape_cast %259 : vector<1x1x8x8xf32> to vector<8x8xf32>
    %261 = vector.shape_cast %258 : vector<8x8xf32> to vector<1x1x8x8xf32>
    tpu.vector_store %arg7[%c2_146, %c4_147, %c0_148, %c0_149], %261 {strides = array<i32>} : memref<4x8x8x8xf32, #tpu.memory_space<vmem>>, vector<1x1x8x8xf32>,
    %262 = vector.extract_strided_slice %231 {offsets = [5, 0, 0], sizes = [1, 16, 8], strides = [1, 1, 1]} : vector<8x16x8xf32> to vector<1x16x8xf32>
    %263 = vector.shape_cast %262 : vector<1x16x8xf32> to vector<16x8xf32>
    %cst_150 = arith.constant dense<0.000000e+00> : vector<8x8xf32>
    %264 = tpu.matmul %212, %263, %cst_150 {dimension_numbers = #tpu.dot_dimension_numbers<[1], [0], [0], [1], [0, 0, 1, 1], [], []>} : vector<8x16xf32>, vector<16x8xf32>, vector<8x8xf32> -> vector<8x8xf32>
    %c2_151 = arith.constant 2 : index
    %c5_152 = arith.constant 5 : index
    %c0_153 = arith.constant 0 : index
    %c0_154 = arith.constant 0 : index
    %265 = vector.load %arg7[%c2_151, %c5_152, %c0_153, %c0_154] : memref<4x8x8x8xf32, #tpu.memory_space<vmem>>, vector<1x1x8x8xf32>
    %266 = vector.shape_cast %265 : vector<1x1x8x8xf32> to vector<8x8xf32>
    %267 = vector.shape_cast %264 : vector<8x8xf32> to vector<1x1x8x8xf32>
    tpu.vector_store %arg7[%c2_151, %c5_152, %c0_153, %c0_154], %267 {strides = array<i32>} : memref<4x8x8x8xf32, #tpu.memory_space<vmem>>, vector<1x1x8x8xf32>,
    %268 = vector.extract_strided_slice %231 {offsets = [6, 0, 0], sizes = [1, 16, 8], strides = [1, 1, 1]} : vector<8x16x8xf32> to vector<1x16x8xf32>
    %269 = vector.shape_cast %268 : vector<1x16x8xf32> to vector<16x8xf32>
    %cst_155 = arith.constant dense<0.000000e+00> : vector<8x8xf32>
    %270 = tpu.matmul %212, %269, %cst_155 {dimension_numbers = #tpu.dot_dimension_numbers<[1], [0], [0], [1], [0, 0, 1, 1], [], []>} : vector<8x16xf32>, vector<16x8xf32>, vector<8x8xf32> -> vector<8x8xf32>
    %c2_156 = arith.constant 2 : index
    %c6_157 = arith.constant 6 : index
    %c0_158 = arith.constant 0 : index
    %c0_159 = arith.constant 0 : index
    %271 = vector.load %arg7[%c2_156, %c6_157, %c0_158, %c0_159] : memref<4x8x8x8xf32, #tpu.memory_space<vmem>>, vector<1x1x8x8xf32>
    %272 = vector.shape_cast %271 : vector<1x1x8x8xf32> to vector<8x8xf32>
    %273 = vector.shape_cast %270 : vector<8x8xf32> to vector<1x1x8x8xf32>
    tpu.vector_store %arg7[%c2_156, %c6_157, %c0_158, %c0_159], %273 {strides = array<i32>} : memref<4x8x8x8xf32, #tpu.memory_space<vmem>>, vector<1x1x8x8xf32>,
    %274 = vector.extract_strided_slice %231 {offsets = [7, 0, 0], sizes = [1, 16, 8], strides = [1, 1, 1]} : vector<8x16x8xf32> to vector<1x16x8xf32>
    %275 = vector.shape_cast %274 : vector<1x16x8xf32> to vector<16x8xf32>
    %cst_160 = arith.constant dense<0.000000e+00> : vector<8x8xf32>
    %276 = tpu.matmul %212, %275, %cst_160 {dimension_numbers = #tpu.dot_dimension_numbers<[1], [0], [0], [1], [0, 0, 1, 1], [], []>} : vector<8x16xf32>, vector<16x8xf32>, vector<8x8xf32> -> vector<8x8xf32>
    %c2_161 = arith.constant 2 : index
    %c7_162 = arith.constant 7 : index
    %c0_163 = arith.constant 0 : index
    %c0_164 = arith.constant 0 : index
    %277 = vector.load %arg7[%c2_161, %c7_162, %c0_163, %c0_164] : memref<4x8x8x8xf32, #tpu.memory_space<vmem>>, vector<1x1x8x8xf32>
    %278 = vector.shape_cast %277 : vector<1x1x8x8xf32> to vector<8x8xf32>
    %279 = vector.shape_cast %276 : vector<8x8xf32> to vector<1x1x8x8xf32>
    tpu.vector_store %arg7[%c2_161, %c7_162, %c0_163, %c0_164], %279 {strides = array<i32>} : memref<4x8x8x8xf32, #tpu.memory_space<vmem>>, vector<1x1x8x8xf32>,
    %c3_165 = arith.constant 3 : index
    %c0_166 = arith.constant 0 : index
    %c0_167 = arith.constant 0 : index
    %280 = vector.load %arg3[%c3_165, %c0_166, %c0_167] : memref<4x8x2xi32, #tpu.memory_space<vmem>>, vector<1x8x2xi32>
    %281 = vector.shape_cast %280 : vector<1x8x2xi32> to vector<8x2xi32>
    %c3_168 = arith.constant 3 : index
    %c0_169 = arith.constant 0 : index
    %c0_170 = arith.constant 0 : index
    %282 = vector.load %arg4[%c3_168, %c0_169, %c0_170] : memref<4x8x2xf32, #tpu.memory_space<vmem>>, vector<1x8x2xf32>
    %283 = vector.shape_cast %282 : vector<1x8x2xf32> to vector<8x2xf32>
    %c3_171 = arith.constant 3 : index
    %c0_172 = arith.constant 0 : index
    %c0_173 = arith.constant 0 : index
    %284 = vector.load %arg5[%c3_171, %c0_172, %c0_173] : memref<4x2x8xi32, #tpu.memory_space<vmem>>, vector<1x2x8xi32>
    %285 = vector.shape_cast %284 : vector<1x2x8xi32> to vector<2x8xi32>
    %c3_174 = arith.constant 3 : index
    %c0_175 = arith.constant 0 : index
    %c0_176 = arith.constant 0 : index
    %286 = vector.load %arg6[%c3_174, %c0_175, %c0_176] : memref<4x2x8xf32, #tpu.memory_space<vmem>>, vector<1x2x8xf32>
    %287 = vector.shape_cast %286 : vector<1x2x8xf32> to vector<2x8xf32>
    %288 = vector.extract_strided_slice %281 {offsets = [0, 0], sizes = [8, 1], strides = [1, 1]} : vector<8x2xi32> to vector<8x1xi32>
    %289 = vector.broadcast %288 : vector<8x1xi32> to vector<8x16xi32>
    %290 = arith.cmpi eq, %2, %289 : vector<8x16xi32>
    %291 = vector.extract_strided_slice %283 {offsets = [0, 0], sizes = [8, 1], strides = [1, 1]} : vector<8x2xf32> to vector<8x1xf32>
    %cst_177 = arith.constant 0.000000e+00 : f32
    %292 = vector.shape_cast %291 : vector<8x1xf32> to vector<8x1xf32>
    %293 = vector.broadcast %292 : vector<8x1xf32> to vector<8x16xf32>
    %294 = vector.broadcast %cst_177 : f32 to vector<8x16xf32>
    %295 = arith.select %290, %293, %294 : vector<8x16xi1>, vector<8x16xf32>
    %296 = vector.extract_strided_slice %281 {offsets = [0, 1], sizes = [8, 1], strides = [1, 1]} : vector<8x2xi32> to vector<8x1xi32>
    %297 = vector.broadcast %296 : vector<8x1xi32> to vector<8x16xi32>
    %298 = arith.cmpi eq, %2, %297 : vector<8x16xi32>
    %299 = vector.extract_strided_slice %283 {offsets = [0, 1], sizes = [8, 1], strides = [1, 1]} : vector<8x2xf32> to vector<8x1xf32>
    %cst_178 = arith.constant 0.000000e+00 : f32
    %300 = vector.shape_cast %299 : vector<8x1xf32> to vector<8x1xf32>
    %301 = vector.broadcast %300 : vector<8x1xf32> to vector<8x16xf32>
    %302 = vector.broadcast %cst_178 : f32 to vector<8x16xf32>
    %303 = arith.select %298, %301, %302 : vector<8x16xi1>, vector<8x16xf32>
    %304 = arith.addf %295, %303 : vector<8x16xf32>
    %305 = vector.extract_strided_slice %285 {offsets = [0, 0], sizes = [1, 8], strides = [1, 1]} : vector<2x8xi32> to vector<1x8xi32>
    %306 = vector.broadcast %305 : vector<1x8xi32> to vector<16x8xi32>
    %307 = arith.cmpi eq, %3, %306 : vector<16x8xi32>
    %308 = vector.extract_strided_slice %287 {offsets = [0, 0], sizes = [1, 8], strides = [1, 1]} : vector<2x8xf32> to vector<1x8xf32>
    %cst_179 = arith.constant 0.000000e+00 : f32
    %309 = vector.shape_cast %308 : vector<1x8xf32> to vector<1x8xf32>
    %310 = vector.broadcast %309 : vector<1x8xf32> to vector<16x8xf32>
    %311 = vector.broadcast %cst_179 : f32 to vector<16x8xf32>
    %312 = arith.select %307, %310, %311 : vector<16x8xi1>, vector<16x8xf32>
    %313 = vector.extract_strided_slice %285 {offsets = [1, 0], sizes = [1, 8], strides = [1, 1]} : vector<2x8xi32> to vector<1x8xi32>
    %314 = vector.broadcast %313 : vector<1x8xi32> to vector<16x8xi32>
    %315 = arith.cmpi eq, %3, %314 : vector<16x8xi32>
    %316 = vector.extract_strided_slice %287 {offsets = [1, 0], sizes = [1, 8], strides = [1, 1]} : vector<2x8xf32> to vector<1x8xf32>
    %cst_180 = arith.constant 0.000000e+00 : f32
    %317 = vector.shape_cast %316 : vector<1x8xf32> to vector<1x8xf32>
    %318 = vector.broadcast %317 : vector<1x8xf32> to vector<16x8xf32>
    %319 = vector.broadcast %cst_180 : f32 to vector<16x8xf32>
    %320 = arith.select %315, %318, %319 : vector<16x8xi1>, vector<16x8xf32>
    %321 = arith.addf %312, %320 : vector<16x8xf32>
    %cst_181 = arith.constant dense<0.000000e+00> : vector<128x8xf32>
    %322 = tpu.matmul %1, %321, %cst_181 {dimension_numbers = #tpu.dot_dimension_numbers<[1], [0], [0], [1], [0, 0, 1, 1], [], []>} : vector<128x16xf32>, vector<16x8xf32>, vector<128x8xf32> -> vector<128x8xf32>
    %323 = vector.shape_cast %322 : vector<128x8xf32> to vector<8x16x8xf32>
    %324 = vector.extract_strided_slice %323 {offsets = [0, 0, 0], sizes = [1, 16, 8], strides = [1, 1, 1]} : vector<8x16x8xf32> to vector<1x16x8xf32>
    %325 = vector.shape_cast %324 : vector<1x16x8xf32> to vector<16x8xf32>
    %cst_182 = arith.constant dense<0.000000e+00> : vector<8x8xf32>
    %326 = tpu.matmul %304, %325, %cst_182 {dimension_numbers = #tpu.dot_dimension_numbers<[1], [0], [0], [1], [0, 0, 1, 1], [], []>} : vector<8x16xf32>, vector<16x8xf32>, vector<8x8xf32> -> vector<8x8xf32>
    %c3_183 = arith.constant 3 : index
    %c0_184 = arith.constant 0 : index
    %c0_185 = arith.constant 0 : index
    %c0_186 = arith.constant 0 : index
    %327 = vector.load %arg7[%c3_183, %c0_184, %c0_185, %c0_186] : memref<4x8x8x8xf32, #tpu.memory_space<vmem>>, vector<1x1x8x8xf32>
    %328 = vector.shape_cast %327 : vector<1x1x8x8xf32> to vector<8x8xf32>
    %329 = vector.shape_cast %326 : vector<8x8xf32> to vector<1x1x8x8xf32>
    tpu.vector_store %arg7[%c3_183, %c0_184, %c0_185, %c0_186], %329 {strides = array<i32>} : memref<4x8x8x8xf32, #tpu.memory_space<vmem>>, vector<1x1x8x8xf32>,
    %330 = vector.extract_strided_slice %323 {offsets = [1, 0, 0], sizes = [1, 16, 8], strides = [1, 1, 1]} : vector<8x16x8xf32> to vector<1x16x8xf32>
    %331 = vector.shape_cast %330 : vector<1x16x8xf32> to vector<16x8xf32>
    %cst_187 = arith.constant dense<0.000000e+00> : vector<8x8xf32>
    %332 = tpu.matmul %304, %331, %cst_187 {dimension_numbers = #tpu.dot_dimension_numbers<[1], [0], [0], [1], [0, 0, 1, 1], [], []>} : vector<8x16xf32>, vector<16x8xf32>, vector<8x8xf32> -> vector<8x8xf32>
    %c3_188 = arith.constant 3 : index
    %c1_189 = arith.constant 1 : index
    %c0_190 = arith.constant 0 : index
    %c0_191 = arith.constant 0 : index
    %333 = vector.load %arg7[%c3_188, %c1_189, %c0_190, %c0_191] : memref<4x8x8x8xf32, #tpu.memory_space<vmem>>, vector<1x1x8x8xf32>
    %334 = vector.shape_cast %333 : vector<1x1x8x8xf32> to vector<8x8xf32>
    %335 = vector.shape_cast %332 : vector<8x8xf32> to vector<1x1x8x8xf32>
    tpu.vector_store %arg7[%c3_188, %c1_189, %c0_190, %c0_191], %335 {strides = array<i32>} : memref<4x8x8x8xf32, #tpu.memory_space<vmem>>, vector<1x1x8x8xf32>,
    %336 = vector.extract_strided_slice %323 {offsets = [2, 0, 0], sizes = [1, 16, 8], strides = [1, 1, 1]} : vector<8x16x8xf32> to vector<1x16x8xf32>
    %337 = vector.shape_cast %336 : vector<1x16x8xf32> to vector<16x8xf32>
    %cst_192 = arith.constant dense<0.000000e+00> : vector<8x8xf32>
    %338 = tpu.matmul %304, %337, %cst_192 {dimension_numbers = #tpu.dot_dimension_numbers<[1], [0], [0], [1], [0, 0, 1, 1], [], []>} : vector<8x16xf32>, vector<16x8xf32>, vector<8x8xf32> -> vector<8x8xf32>
    %c3_193 = arith.constant 3 : index
    %c2_194 = arith.constant 2 : index
    %c0_195 = arith.constant 0 : index
    %c0_196 = arith.constant 0 : index
    %339 = vector.load %arg7[%c3_193, %c2_194, %c0_195, %c0_196] : memref<4x8x8x8xf32, #tpu.memory_space<vmem>>, vector<1x1x8x8xf32>
    %340 = vector.shape_cast %339 : vector<1x1x8x8xf32> to vector<8x8xf32>
    %341 = vector.shape_cast %338 : vector<8x8xf32> to vector<1x1x8x8xf32>
    tpu.vector_store %arg7[%c3_193, %c2_194, %c0_195, %c0_196], %341 {strides = array<i32>} : memref<4x8x8x8xf32, #tpu.memory_space<vmem>>, vector<1x1x8x8xf32>,
    %342 = vector.extract_strided_slice %323 {offsets = [3, 0, 0], sizes = [1, 16, 8], strides = [1, 1, 1]} : vector<8x16x8xf32> to vector<1x16x8xf32>
    %343 = vector.shape_cast %342 : vector<1x16x8xf32> to vector<16x8xf32>
    %cst_197 = arith.constant dense<0.000000e+00> : vector<8x8xf32>
    %344 = tpu.matmul %304, %343, %cst_197 {dimension_numbers = #tpu.dot_dimension_numbers<[1], [0], [0], [1], [0, 0, 1, 1], [], []>} : vector<8x16xf32>, vector<16x8xf32>, vector<8x8xf32> -> vector<8x8xf32>
    %c3_198 = arith.constant 3 : index
    %c3_199 = arith.constant 3 : index
    %c0_200 = arith.constant 0 : index
    %c0_201 = arith.constant 0 : index
    %345 = vector.load %arg7[%c3_198, %c3_199, %c0_200, %c0_201] : memref<4x8x8x8xf32, #tpu.memory_space<vmem>>, vector<1x1x8x8xf32>
    %346 = vector.shape_cast %345 : vector<1x1x8x8xf32> to vector<8x8xf32>
    %347 = vector.shape_cast %344 : vector<8x8xf32> to vector<1x1x8x8xf32>
    tpu.vector_store %arg7[%c3_198, %c3_199, %c0_200, %c0_201], %347 {strides = array<i32>} : memref<4x8x8x8xf32, #tpu.memory_space<vmem>>, vector<1x1x8x8xf32>,
    %348 = vector.extract_strided_slice %323 {offsets = [4, 0, 0], sizes = [1, 16, 8], strides = [1, 1, 1]} : vector<8x16x8xf32> to vector<1x16x8xf32>
    %349 = vector.shape_cast %348 : vector<1x16x8xf32> to vector<16x8xf32>
    %cst_202 = arith.constant dense<0.000000e+00> : vector<8x8xf32>
    %350 = tpu.matmul %304, %349, %cst_202 {dimension_numbers = #tpu.dot_dimension_numbers<[1], [0], [0], [1], [0, 0, 1, 1], [], []>} : vector<8x16xf32>, vector<16x8xf32>, vector<8x8xf32> -> vector<8x8xf32>
    %c3_203 = arith.constant 3 : index
    %c4_204 = arith.constant 4 : index
    %c0_205 = arith.constant 0 : index
    %c0_206 = arith.constant 0 : index
    %351 = vector.load %arg7[%c3_203, %c4_204, %c0_205, %c0_206] : memref<4x8x8x8xf32, #tpu.memory_space<vmem>>, vector<1x1x8x8xf32>
    %352 = vector.shape_cast %351 : vector<1x1x8x8xf32> to vector<8x8xf32>
    %353 = vector.shape_cast %350 : vector<8x8xf32> to vector<1x1x8x8xf32>
    tpu.vector_store %arg7[%c3_203, %c4_204, %c0_205, %c0_206], %353 {strides = array<i32>} : memref<4x8x8x8xf32, #tpu.memory_space<vmem>>, vector<1x1x8x8xf32>,
    %354 = vector.extract_strided_slice %323 {offsets = [5, 0, 0], sizes = [1, 16, 8], strides = [1, 1, 1]} : vector<8x16x8xf32> to vector<1x16x8xf32>
    %355 = vector.shape_cast %354 : vector<1x16x8xf32> to vector<16x8xf32>
    %cst_207 = arith.constant dense<0.000000e+00> : vector<8x8xf32>
    %356 = tpu.matmul %304, %355, %cst_207 {dimension_numbers = #tpu.dot_dimension_numbers<[1], [0], [0], [1], [0, 0, 1, 1], [], []>} : vector<8x16xf32>, vector<16x8xf32>, vector<8x8xf32> -> vector<8x8xf32>
    %c3_208 = arith.constant 3 : index
    %c5_209 = arith.constant 5 : index
    %c0_210 = arith.constant 0 : index
    %c0_211 = arith.constant 0 : index
    %357 = vector.load %arg7[%c3_208, %c5_209, %c0_210, %c0_211] : memref<4x8x8x8xf32, #tpu.memory_space<vmem>>, vector<1x1x8x8xf32>
    %358 = vector.shape_cast %357 : vector<1x1x8x8xf32> to vector<8x8xf32>
    %359 = vector.shape_cast %356 : vector<8x8xf32> to vector<1x1x8x8xf32>
    tpu.vector_store %arg7[%c3_208, %c5_209, %c0_210, %c0_211], %359 {strides = array<i32>} : memref<4x8x8x8xf32, #tpu.memory_space<vmem>>, vector<1x1x8x8xf32>,
    %360 = vector.extract_strided_slice %323 {offsets = [6, 0, 0], sizes = [1, 16, 8], strides = [1, 1, 1]} : vector<8x16x8xf32> to vector<1x16x8xf32>
    %361 = vector.shape_cast %360 : vector<1x16x8xf32> to vector<16x8xf32>
    %cst_212 = arith.constant dense<0.000000e+00> : vector<8x8xf32>
    %362 = tpu.matmul %304, %361, %cst_212 {dimension_numbers = #tpu.dot_dimension_numbers<[1], [0], [0], [1], [0, 0, 1, 1], [], []>} : vector<8x16xf32>, vector<16x8xf32>, vector<8x8xf32> -> vector<8x8xf32>
    %c3_213 = arith.constant 3 : index
    %c6_214 = arith.constant 6 : index
    %c0_215 = arith.constant 0 : index
    %c0_216 = arith.constant 0 : index
    %363 = vector.load %arg7[%c3_213, %c6_214, %c0_215, %c0_216] : memref<4x8x8x8xf32, #tpu.memory_space<vmem>>, vector<1x1x8x8xf32>
    %364 = vector.shape_cast %363 : vector<1x1x8x8xf32> to vector<8x8xf32>
    %365 = vector.shape_cast %362 : vector<8x8xf32> to vector<1x1x8x8xf32>
    tpu.vector_store %arg7[%c3_213, %c6_214, %c0_215, %c0_216], %365 {strides = array<i32>} : memref<4x8x8x8xf32, #tpu.memory_space<vmem>>, vector<1x1x8x8xf32>,
    %366 = vector.extract_strided_slice %323 {offsets = [7, 0, 0], sizes = [1, 16, 8], strides = [1, 1, 1]} : vector<8x16x8xf32> to vector<1x16x8xf32>
    %367 = vector.shape_cast %366 : vector<1x16x8xf32> to vector<16x8xf32>
    %cst_217 = arith.constant dense<0.000000e+00> : vector<8x8xf32>
    %368 = tpu.matmul %304, %367, %cst_217 {dimension_numbers = #tpu.dot_dimension_numbers<[1], [0], [0], [1], [0, 0, 1, 1], [], []>} : vector<8x16xf32>, vector<16x8xf32>, vector<8x8xf32> -> vector<8x8xf32>
    %c3_218 = arith.constant 3 : index
    %c7_219 = arith.constant 7 : index
    %c0_220 = arith.constant 0 : index
    %c0_221 = arith.constant 0 : index
    %369 = vector.load %arg7[%c3_218, %c7_219, %c0_220, %c0_221] : memref<4x8x8x8xf32, #tpu.memory_space<vmem>>, vector<1x1x8x8xf32>
    %370 = vector.shape_cast %369 : vector<1x1x8x8xf32> to vector<8x8xf32>
    %371 = vector.shape_cast %368 : vector<8x8xf32> to vector<1x1x8x8xf32>
    tpu.vector_store %arg7[%c3_218, %c7_219, %c0_220, %c0_221], %371 {strides = array<i32>} : memref<4x8x8x8xf32, #tpu.memory_space<vmem>>, vector<1x1x8x8xf32>,
    return
  }
  func.func @transform_0(%arg0: i32, %arg1: i32) -> (i32, i32, i32) {
    %c0_i32 = arith.constant 0 : i32
    %c0_i32_0 = arith.constant 0 : i32
    %c0_i32_1 = arith.constant 0 : i32
    return %arg0, %c0_i32, %c0_i32_0 : i32, i32, i32
  }
  func.func @transform_1(%arg0: i32, %arg1: i32) -> (i32, i32, i32) {
    %c0_i32 = arith.constant 0 : i32
    %c0_i32_0 = arith.constant 0 : i32
    %c0_i32_1 = arith.constant 0 : i32
    return %arg1, %c0_i32, %c0_i32_0 : i32, i32, i32
  }
  func.func @transform_2(%arg0: i32, %arg1: i32) -> (i32, i32, i32) {
    %c0_i32 = arith.constant 0 : i32
    %c0_i32_0 = arith.constant 0 : i32
    %c0_i32_1 = arith.constant 0 : i32
    return %arg1, %c0_i32, %c0_i32_0 : i32, i32, i32
  }
  func.func @transform_3(%arg0: i32, %arg1: i32) -> (i32, i32, i32) {
    %c0_i32 = arith.constant 0 : i32
    %c0_i32_0 = arith.constant 0 : i32
    %c0_i32_1 = arith.constant 0 : i32
    return %arg1, %c0_i32, %c0_i32_0 : i32, i32, i32
  }
  func.func @transform_4(%arg0: i32, %arg1: i32) -> (i32, i32, i32) {
    %c0_i32 = arith.constant 0 : i32
    %c0_i32_0 = arith.constant 0 : i32
    %c0_i32_1 = arith.constant 0 : i32
    return %arg1, %c0_i32, %c0_i32_0 : i32, i32, i32
  }
  func.func @transform_5(%arg0: i32, %arg1: i32) -> (i32, i32, i32, i32) {
    %c0_i32 = arith.constant 0 : i32
    %c0_i32_0 = arith.constant 0 : i32
    %c0_i32_1 = arith.constant 0 : i32
    return %arg1, %arg0, %c0_i32, %c0_i32_0 : i32, i32, i32, i32
  }
}

</mosaic_0001>

<bundles_post_ra>
// kernel: _make_cutouts_fwd.1
= control target key start
LH: loop header
LB: loop body
LE: loop exit
PB: predicated region body
PF: predicated region fallthrough
CT: control target
= control target key end

     0   :  { %v37_v0 = vlaneseq  ;;  %vm92_vm0 = vcmask 130048   ;;  %v3976_v3 = vmov 0   ;;  %s4494_s0 = inlined_call_operand.vmem [shape: f32[8,16,16], index: 0, kind: input, shape index: {}]   ;;  %s4495_s1 = inlined_call_operand.vmem [shape: s32[4,8,2], index: 1, kind: input, shape index: {}]   ;;  %s4496_s2 = inlined_call_operand.vmem [shape: f32[4,8,2], index: 2, kind: input, shape index: {}]   ;;  %s4497_s3 = inlined_call_operand.vmem [shape: s32[4,2,8], index: 3, kind: input, shape index: {}]   ;;  %s4498_s4 = inlined_call_operand.vmem [shape: f32[4,2,8], index: 4, kind: input, shape index: {}]   ;;  %s4499_s5 = inlined_call_operand.hbm [shape: f32[4,8,8,8], index: 5, kind: output, shape index: {}]  }
   0x1   :  { %v4017_v1 = vld [vmem:[%s4494_s0] sm:$0xff]  ;;  %3949 = vset.pattern.permute.xlu1 %v3976_v3  ;;  %3947 = vset.pattern.permute.xlu0 %v3976_v3 }
   0x2   :  { %3495 = vmatprep.mubr.msk.f32.mxu0 %vm92_vm0, %v4017_v1  ;;  %v4022_v2 = vshrl.u32 %v37_v0, 7  ;;  %v44_v4 = vld [vmem:[%s4497_s3] sm:$0x3]  ;;  %v3241_v6 = vld [vmem:[%s4497_s3 + $0x2] sm:$0x3] }
   0x3   :  { %v45_v5 = vld [vmem:[%s4498_s4] sm:$0x3]  ;;  %v3242_v10 = vld [vmem:[%s4498_s4 + $0x2] sm:$0x3]  ;;  %v3269_v25 = vld [vmem:[%s4497_s3 + $0x4] sm:$0x3] }
   0x4   :  { %v4036_v7 = vadd.s32 8, %v4022_v2  ;;  %v4039_v8 = vsub.s32 0, %v4022_v2  ;;  %v4042_v9 = vsub.s32 1, %v4022_v2  ;;  %v43_v19 = vld [vmem:[%s4496_s2] sm:$0xff] }
   0x5   :  { %v42_v20 = vld [vmem:[%s4495_s1] sm:$0xff]  ;;  %52 = vperm.xlu1 %3949, %v43_v19  }
   0x6   :  { %v69_v11 = vrot.slane %v44_v4, %v4039_v8  ;;  %v75_v12 = vrot.slane %v45_v5, %v4039_v8  ;;  %v81_v13 = vrot.slane %v44_v4, %v4042_v9  ;;  %v87_v14 = vrot.slane %v45_v5, %v4042_v9  ;;  %47 = vperm.xlu0 %3947, %v42_v20   ;;  %v3270_v28 = vld [vmem:[%s4498_s4 + $0x4] sm:$0x3] }
   0x7   :  { %v896_v15 = vrot.slane %v3241_v6, %v4039_v8  ;;  %v902_v16 = vrot.slane %v3242_v10, %v4039_v8  ;;  %v908_v17 = vrot.slane %v3241_v6, %v4042_v9  ;;  %v914_v18 = vrot.slane %v3242_v10, %v4042_v9 }
   0x8   :  { %vm70_vm1 = vcmp.eq.s32.totalorder %v4022_v2, %v69_v11  ;;  %vm71_vm2 = vcmp.eq.s32.totalorder %v4036_v7, %v69_v11  ;;  %vm82_vm3 = vcmp.eq.s32.totalorder %v4022_v2, %v81_v13  ;;  %vm83_vm4 = vcmp.eq.s32.totalorder %v4036_v7, %v81_v13 }
   0x9   :  { %v76_v21 = vsel %vm70_vm1, %v75_v12, 0.0  ;;  %v77_v22 = vsel %vm71_vm2, %v75_v12, 0.0  ;;  %v88_v23 = vsel %vm82_vm3, %v87_v14, 0.0  ;;  %v89_v24 = vsel %vm83_vm4, %v87_v14, 0.0 }
   0xa   :  { %v90_v26 = vadd.f32 %v88_v23, %v76_v21  ;;  %v91_v27 = vadd.f32 %v89_v24, %v77_v22  ;;  %vm897_vm5 = vcmp.eq.s32.totalorder %v4022_v2, %v896_v15  ;;  %vm898_vm6 = vcmp.eq.s32.totalorder %v4036_v7, %v896_v15 }
   0xb   :  { %v903_v29 = vsel %vm897_vm5, %v902_v16, 0.0  ;;  %v904_v30 = vsel %vm898_vm6, %v902_v16, 0.0  ;;  %vm909_vm7 = vcmp.eq.s32.totalorder %v4022_v2, %v908_v17  ;;  %vm910_vm8 = vcmp.eq.s32.totalorder %v4036_v7, %v908_v17 }
   0xc   :  { %10 = vsyncpa [#allocation3], 0  ;;  %v3827_v31 = vpack.c.bf16 %v91_v27, %v90_v26  ;;  %v915_v32 = vsel %vm909_vm7, %v914_v18, 0.0  ;;  %v916_v33 = vsel %vm910_vm8, %v914_v18, 0.0  ;;  %v1674_v34 = vrot.slane %v3269_v25, %v4039_v8  ;;  %v4084_v41 = vld [vmem:[%s4494_s0 + $0x8] sm:$0xff]  ;;  %v4093_v46 = vld [vmem:[%s4494_s0 + $0x10] sm:$0xff] }
   0xd   :  { %v3977_v35 = vmov 1   ;;  %v917_v36 = vadd.f32 %v915_v32, %v903_v29  ;;  %v918_v37 = vadd.f32 %v916_v33, %v904_v30  ;;  %v1680_v38 = vrot.slane %v3270_v28, %v4039_v8  ;;  %v3239_v45 = vld [vmem:[%s4495_s1 + $0x8] sm:$0xff]  ;;  %v4104_v51 = vld [vmem:[%s4494_s0 + $0x18] sm:$0xff]  ;;  %v4109_v52 = vld [vmem:[%s4494_s0 + $0x20] sm:$0xff] }
   0xe   :  { %3950 = vset.pattern.permute.xlu1 %v3977_v35  ;;  %v1686_v39 = vrot.slane %v3269_v25, %v4042_v9  ;;  %3828 = vmatprep.subr.bf16.mxu0 %v3827_v31  ;;  %vm1675_vm9 = vcmp.eq.s32.totalorder %v4022_v2, %v1674_v34  ;;  %vm1676_vm10 = vcmp.eq.s32.totalorder %v4036_v7, %v1674_v34  ;;  %v3240_v54 = vld [vmem:[%s4496_s2 + $0x8] sm:$0xff]  ;;  %v4126_v56 = vld [vmem:[%s4494_s0 + $0x30] sm:$0xff]  ;;  %v4138_v58 = vld [vmem:[%s4494_s0 + $0x38] sm:$0xff]  ;;  %v3978_v21 = vmov 0.0|0.0  }
   0xf   :  { %61 = vperm.xlu1 %3950, %v43_v19   ;;  %v1692_v40 = vrot.slane %v3270_v28, %v4042_v9  ;;  %3948 = vset.pattern.permute.xlu0 %v3977_v35  ;;  %v3855_v42 = vpack.c.bf16 %v918_v37, %v917_v36  ;;  %v1681_v43 = vsel %vm1675_vm9, %v1680_v38, 0.0  ;;  %v1682_v44 = vsel %vm1676_vm10, %v1680_v38, 0.0  ;;  %v4121_v55 = vld [vmem:[%s4494_s0 + $0x28] sm:$0xff]  ;;  %v3267_v57 = vld [vmem:[%s4495_s1 + $0x10] sm:$0xff]  ;;  %v4143_v59 = vld [vmem:[%s4494_s0 + $0x40] sm:$0xff] }
  0x10   :  { %3830 = vmatpush3.bf16.msra.mxu0 %v3827_v31  ;;  %vm1687_vm11 = vcmp.eq.s32.totalorder %v4022_v2, %v1686_v39  ;;  %57 = vperm.xlu0 %3948, %v42_v20   ;;  %vm1688_vm12 = vcmp.eq.s32.totalorder %v4036_v7, %v1686_v39  ;;  %v3268_v60 = vld [vmem:[%s4496_s2 + $0x10] sm:$0xff]  ;;  %v4155_v61 = vld [vmem:[%s4494_s0 + $0x48] sm:$0xff]  ;;  %v3297_v62 = vld [vmem:[%s4497_s3 + $0x6] sm:$0x3]  ;;  %vm3979_vm2 = vmmov 0   ;;  %v3980_v22 = vmov 0.0  }
  0x11   :  { %v1693_v47 = vsel %vm1687_vm11, %v1692_v40, 0.0  ;;  %3856 = vmatprep.subr.bf16.mxu0 %v3855_v42  ;;  %v1694_v48 = vsel %vm1688_vm12, %v1692_v40, 0.0  ;;  %v4163_v63 = vld [vmem:[%s4494_s0 + $0x50] sm:$0xff]  ;;  %v3298_v4 = vld [vmem:[%s4498_s4 + $0x6] sm:$0x3]  ;;  %v2452_v5 = vrot.slane %v3297_v62, %v4039_v8  ;;  %v2464_v6 = vrot.slane %v3297_v62, %v4042_v9  ;;  %v4180_v10 = vld [vmem:[%s4494_s0 + $0x58] sm:$0xff]  ;;  %3831 = vmatprep.subr.bf16.mxu1 %v3978_v21 }
  0x12   :  { %v1695_v49 = vadd.f32 %v1693_v47, %v1681_v43  ;;  %v1696_v50 = vadd.f32 %v1694_v48, %v1682_v44  ;;  %v4185_v11 = vld [vmem:[%s4494_s0 + $0x60] sm:$0xff]  ;;  %v3296_v12 = vld [vmem:[%s4496_s2 + $0x18] sm:$0xff]  ;;  %v2458_v13 = vrot.slane %v3298_v4, %v4039_v8  ;;  %v2470_v14 = vrot.slane %v3298_v4, %v4042_v9  ;;  %v4203_v8 = vld [vmem:[%s4494_s0 + $0x68] sm:$0xff]  ;;  %3523 = vmatprep.mubr.msk.f32.mxu1 %vm3979_vm2, %v3980_v22 }
  0x13   :  { %3951 = vset.pattern.permute.xlu1 %v3976_v3  ;;  %3496 = vmatmul.mubr.msk.f32.vlgmr.msra.gmra.mrb[0].mxu0 %vm92_vm0, %v4084_v41  ;;  %v3295_v3 = vld [vmem:[%s4495_s1 + $0x18] sm:$0xff]  ;;  %vm2453_vm13 = vcmp.eq.s32.totalorder %v4022_v2, %v2452_v5  ;;  %vm2454_vm14 = vcmp.eq.s32.totalorder %v4036_v7, %v2452_v5  ;;  %vm2465_vm15 = vcmp.eq.s32.totalorder %v4022_v2, %v2464_v6  ;;  %v4208_v9 = vld [vmem:[%s4494_s0 + $0x70] sm:$0xff]  ;;  %v4315_v24 = vand.u32 127, %v37_v0 }
  0x14   :  { %874 = vperm.xlu1 %3951, %v3239_v45   ;;  %3858 = vmatpush3.bf16.msra.mxu0 %v3855_v42  ;;  %v3883_v53 = vpack.c.bf16 %v1696_v50, %v1695_v49  ;;  %vm2466_vm1 = vcmp.eq.s32.totalorder %v4036_v7, %v2464_v6  ;;  %v2459_v15 = vsel %vm2453_vm13, %v2458_v13, 0.0  ;;  %v2460_v16 = vsel %vm2454_vm14, %v2458_v13, 0.0  ;;  %v36_v7 = vld [vmem:[%s4494_s0 + $0x78] sm:$0xff]  ;;  %s3981_s0 = smov [#allocation2]  }
  0x15   :  { %3498 = vmatprep.mubr.msk.f32.mxu0 %vm92_vm0, %v4093_v46  ;;  %884 = vperm.xlu0 %3948, %v3239_v45   ;;  %v2471_v2 = vsel %vm2465_vm15, %v2470_v14, 0.0  ;;  %v2472_v17 = vsel %vm2466_vm1, %v2470_v14, 0.0  ;;  %vm359_vm11 = vcmask 64512   ;;  %s3204_s28 = sshll.u32 %s3981_s0, 4  ;;  %s3205_s28 = int_to_ptr.vmem [resolvable:$true] %s3204_s28 }
  0x16   :  { %3884 = vmatprep.subr.bf16.mxu0 %v3883_v53  ;;  %v2473_v18 = vadd.f32 %v2471_v2, %v2459_v15  ;;  %v2474_v19 = vadd.f32 %v2472_v17, %v2460_v16  ;;  %s3952_s29 = scalar_lea.vmem %s3205_s28, 4096  ;;  %p3957_p1 = scmp.lt.s32.totalorder %s3205_s28, %s3205_s28 }
  0x17   :  { %3499 = vmatmul.mubr.msk.f32.gmra.mrb[2].mxu0 %vm92_vm0, %v4104_v51  ;;  %p3953_p0 = scmp.ne.s32.totalorder %s3205_s28, %s3952_s29  ;;  %p3958_p2 = scmp.lt.s32.totalorder %s3952_s29, %s3952_s29 }
  0x18   :  { %3501 = vmatprep.mubr.msk.f32.mxu0 %vm92_vm0, %v4109_v52  ;;  %879 = vperm.xlu1 %3951, %v3240_v54   ;;  %v3911_v20 = vpack.c.bf16 %v2474_v19, %v2473_v18 }
  0x19   :  { %888 = vperm.xlu0 %3948, %v3240_v54   ;;  %p3959_p3 = por %p3958_p2, %p3957_p1 }
  0x1b   :  { %3502 = vmatmul.mubr.msk.f32.gmra.mrb[4].mxu0 %vm92_vm0, %v4121_v55  ;;  %p3960_p4 = pnand %p3959_p3, %p3953_p0 }
  0x1c   :  { %3504 = vmatprep.mubr.msk.f32.mxu0 %vm92_vm0, %v4126_v56  ;;  %1652 = vperm.xlu1 %3951, %v3267_v57  }
  0x1d   :  { %1662 = vperm.xlu0 %3948, %v3267_v57  }
  0x1f   :  { %3505 = vmatmul.mubr.msk.f32.gmra.mrb[6].mxu0 %vm92_vm0, %v4138_v58 }
  0x20   :  { %3507 = vmatprep.mubr.msk.f32.mxu0 %vm92_vm0, %v4143_v59  ;;  %1657 = vperm.xlu1 %3951, %v3268_v60  }
  0x21   :  { %1666 = vperm.xlu0 %3948, %v3268_v60  }
  0x23   :  { %3508 = vmatmul.mubr.msk.f32.gmra.mrb[8].mxu0 %vm92_vm0, %v4155_v61 }
  0x24   :  { %3510 = vmatprep.mubr.msk.f32.mxu0 %vm92_vm0, %v4163_v63  ;;  %2430 = vperm.xlu1 %3951, %v3295_v3  }
  0x25   :  { %2440 = vperm.xlu0 %3948, %v3295_v3  }
  0x27   :  { %3511 = vmatmul.mubr.msk.f32.gmra.mrb[10].mxu0 %vm92_vm0, %v4180_v10 }
  0x28   :  { %3513 = vmatprep.mubr.msk.f32.mxu0 %vm92_vm0, %v4185_v11  ;;  %2435 = vperm.xlu1 %3951, %v3296_v12  }
  0x29   :  { %2444 = vperm.xlu0 %3948, %v3296_v12  }
  0x2b   :  { %3514 = vmatmul.mubr.msk.f32.gmra.mrb[12].mxu0 %vm92_vm0, %v4203_v8 }
  0x2c   :  { %3516 = vmatprep.mubr.msk.f32.mxu0 %vm92_vm0, %v4208_v9 }
  0x2f   :  { %3517 = vmatmul.mubr.msk.f32.gmra.mrb[14].mxu0 %vm92_vm0, %v36_v7 }
  0x30   :  { %3579 = vmatprep.mubr.msk.f32.mxu0 %vm92_vm0, %v4017_v1 }
  0x33   :  { %3580 = vmatmul.mubr.msk.f32.vlgmr.msra.gmra.mrb[16].mxu0 %vm92_vm0, %v4084_v41 }
  0x34   :  { %3886 = vmatpush3.bf16.msra.mxu0 %v3883_v53  ;;  %3582 = vmatprep.mubr.msk.f32.mxu0 %vm92_vm0, %v4093_v46 }
  0x35   :  { %3912 = vmatprep.subr.bf16.mxu0 %v3911_v20 }
  0x37   :  { %3583 = vmatmul.mubr.msk.f32.gmra.mrb[18].mxu0 %vm92_vm0, %v4104_v51 }
  0x38   :  { %3585 = vmatprep.mubr.msk.f32.mxu0 %vm92_vm0, %v4109_v52 }
  0x3b   :  { %3586 = vmatmul.mubr.msk.f32.gmra.mrb[20].mxu0 %vm92_vm0, %v4121_v55 }
  0x3c   :  { %3588 = vmatprep.mubr.msk.f32.mxu0 %vm92_vm0, %v4126_v56 }
  0x3f   :  { %3589 = vmatmul.mubr.msk.f32.gmra.mrb[22].mxu0 %vm92_vm0, %v4138_v58 }
  0x40   :  { %3591 = vmatprep.mubr.msk.f32.mxu0 %vm92_vm0, %v4143_v59 }
  0x43   :  { %3592 = vmatmul.mubr.msk.f32.gmra.mrb[24].mxu0 %vm92_vm0, %v4155_v61 }
  0x44   :  { %3594 = vmatprep.mubr.msk.f32.mxu0 %vm92_vm0, %v4163_v63 }
  0x47   :  { %3595 = vmatmul.mubr.msk.f32.gmra.mrb[26].mxu0 %vm92_vm0, %v4180_v10 }
  0x48   :  { %3597 = vmatprep.mubr.msk.f32.mxu0 %vm92_vm0, %v4185_v11 }
  0x4b   :  { %3598 = vmatmul.mubr.msk.f32.gmra.mrb[28].mxu0 %vm92_vm0, %v4203_v8 }
  0x4c   :  { %3600 = vmatprep.mubr.msk.f32.mxu0 %vm92_vm0, %v4208_v9 }
  0x4f   :  { %3601 = vmatmul.mubr.msk.f32.gmra.mrb[30].mxu0 %vm92_vm0, %v36_v7 }
  0x50   :  { %3663 = vmatprep.mubr.msk.f32.mxu0 %vm92_vm0, %v4017_v1 }
  0x53   :  { %3664 = vmatmul.mubr.msk.f32.vlgmr.msra.gmra.mrb[32].mxu0 %vm92_vm0, %v4084_v41 }
  0x54   :  { %3914 = vmatpush3.bf16.msra.mxu0 %v3911_v20  ;;  %3666 = vmatprep.mubr.msk.f32.mxu0 %vm92_vm0, %v4093_v46 }
  0x57   :  { %3667 = vmatmul.mubr.msk.f32.gmra.mrb[34].mxu0 %vm92_vm0, %v4104_v51 }
  0x58   :  { %3669 = vmatprep.mubr.msk.f32.mxu0 %vm92_vm0, %v4109_v52 }
  0x5b   :  { %3670 = vmatmul.mubr.msk.f32.gmra.mrb[36].mxu0 %vm92_vm0, %v4121_v55 }
  0x5c   :  { %3672 = vmatprep.mubr.msk.f32.mxu0 %vm92_vm0, %v4126_v56 }
  0x5f   :  { %3673 = vmatmul.mubr.msk.f32.gmra.mrb[38].mxu0 %vm92_vm0, %v4138_v58 }
  0x60   :  { %3675 = vmatprep.mubr.msk.f32.mxu0 %vm92_vm0, %v4143_v59 }
  0x63   :  { %3676 = vmatmul.mubr.msk.f32.gmra.mrb[40].mxu0 %vm92_vm0, %v4155_v61 }
  0x64   :  { %3678 = vmatprep.mubr.msk.f32.mxu0 %vm92_vm0, %v4163_v63 }
  0x67   :  { %3679 = vmatmul.mubr.msk.f32.gmra.mrb[42].mxu0 %vm92_vm0, %v4180_v10 }
  0x68   :  { %3681 = vmatprep.mubr.msk.f32.mxu0 %vm92_vm0, %v4185_v11 }
  0x6b   :  { %3682 = vmatmul.mubr.msk.f32.gmra.mrb[44].mxu0 %vm92_vm0, %v4203_v8 }
  0x6c   :  { %3684 = vmatprep.mubr.msk.f32.mxu0 %vm92_vm0, %v4208_v9 }
  0x6f   :  { %3685 = vmatmul.mubr.msk.f32.gmra.mrb[46].mxu0 %vm92_vm0, %v36_v7 }
  0x70   :  { %3747 = vmatprep.mubr.msk.f32.mxu0 %vm92_vm0, %v4017_v1 }
  0x73   :  { %3748 = vmatmul.mubr.msk.f32.vlgmr.msra.gmra.mrb[48].mxu0 %vm92_vm0, %v4084_v41 }
  0x74   :  { %3750 = vmatprep.mubr.msk.f32.mxu0 %vm92_vm0, %v4093_v46 }
  0x77   :  { %3751 = vmatmul.mubr.msk.f32.gmra.mrb[50].mxu0 %vm92_vm0, %v4104_v51 }
  0x78   :  { %3753 = vmatprep.mubr.msk.f32.mxu0 %vm92_vm0, %v4109_v52 }
  0x7b   :  { %3754 = vmatmul.mubr.msk.f32.gmra.mrb[52].mxu0 %vm92_vm0, %v4121_v55 }
  0x7c   :  { %3756 = vmatprep.mubr.msk.f32.mxu0 %vm92_vm0, %v4126_v56 }
  0x7f   :  { %3757 = vmatmul.mubr.msk.f32.gmra.mrb[54].mxu0 %vm92_vm0, %v4138_v58 }
  0x80   :  { %3759 = vmatprep.mubr.msk.f32.mxu0 %vm92_vm0, %v4143_v59 }
  0x83   :  { %3760 = vmatmul.mubr.msk.f32.gmra.mrb[56].mxu0 %vm92_vm0, %v4155_v61 }
  0x84   :  { %3762 = vmatprep.mubr.msk.f32.mxu0 %vm92_vm0, %v4163_v63  ;;  %v53_v23 = vpop.permute.xlu1 %52 }
  0x85   :  { %v48_v1 = vpop.permute.xlu0 %47 }
  0x86   :  { %vm49_vm3 = vcmp.eq.s32.totalorder %v4315_v24, %v48_v1 }
  0x87   :  { %3763 = vmatmul.mubr.msk.f32.gmra.mrb[58].mxu0 %vm92_vm0, %v4180_v10  ;;  %v55_v29 = vsel %vm49_vm3, %v53_v23, 0.0 }
  0x88   :  { %3765 = vmatprep.mubr.msk.f32.mxu0 %vm92_vm0, %v4185_v11 }
  0x8b   :  { %3766 = vmatmul.mubr.msk.f32.gmra.mrb[60].mxu0 %vm92_vm0, %v4203_v8 }
  0x8c   :  { %3768 = vmatprep.mubr.msk.f32.mxu0 %vm92_vm0, %v4208_v9 }
  0x8e   :  { %v62_v27 = vpop.permute.xlu1 %61 }
  0x8f   :  { %3769 = vmatmul.mubr.msk.f32.gmra.mrb[62].mxu0 %vm92_vm0, %v36_v7  ;;  %v58_v25 = vpop.permute.xlu0 %57 }
  0x90   :  { %vm59_vm4 = vcmp.eq.s32.totalorder %v4315_v24, %v58_v25 }
  0x91   :  { %v64_v30 = vsel %vm59_vm4, %v62_v27, 0.0 }
  0x92   :  { %v65_v33 = vadd.f32 %v64_v30, %v55_v29 }
  0x93   :  { %v875_v49 = vpop.permute.xlu1 %874 }
  0x94   :  { %v885_v51 = vpop.permute.xlu0 %884  ;;  %vm876_vm5 = vcmp.eq.s32.totalorder %v4315_v24, %v875_v49 }
  0x95   :  { %vm886_vm6 = vcmp.eq.s32.totalorder %v4315_v24, %v885_v51 }
  0x97   :  { %v880_v55 = vpop.permute.xlu1 %879 }
  0x98   :  { %v889_v57 = vpop.permute.xlu0 %888  ;;  %v882_v59 = vsel %vm876_vm5, %v880_v55, 0.0 }
  0x99   :  { %v891_v60 = vsel %vm886_vm6, %v889_v57, 0.0 }
  0x9a   :  { %v892_v63 = vadd.f32 %v891_v60, %v882_v59 }
  0x9b   :  { %v1653_v18 = vpop.permute.xlu1 %1652 }
  0x9c   :  { %v1663_v20 = vpop.permute.xlu0 %1662  ;;  %vm1654_vm7 = vcmp.eq.s32.totalorder %v4315_v24, %v1653_v18 }
  0x9d   :  { %vm1664_vm8 = vcmp.eq.s32.totalorder %v4315_v24, %v1663_v20 }
  0xe6   :  { %v3497_v26 = vpop.f32.mrb[0].mxu0 }
  0xe7   :  { %v207_v28 = vpop.f32.mrb[1].mxu0 }
  0xe8   :  { %v3832_v31 = vpack.c.bf16 %v3497_v26, %v207_v28  ;;  %v1658_v26 = vpop.permute.xlu1 %1657  ;;  %v1667_v28 = vpop.permute.xlu0 %1666 }
  0xe9   :  { %v1660_v30 = vsel %vm1654_vm7, %v1658_v26, 0.0 }
  0xea   :  { %v3500_v32 = vpop.f32.mrb[2].mxu0  ;;  %3833 = vmatpush3.bf16.msra.mxu1 %v3832_v31  ;;  %v1669_v31 = vsel %vm1664_vm8, %v1667_v28, 0.0 }
  0xeb   :  { %v217_v34 = vpop.f32.mrb[3].mxu0  ;;  %3834 = vmatprep.subr.bf16.mxu1 %v3978_v21 }
  0xec   :  { %v3835_v35 = vpack.c.bf16 %v3500_v32, %v217_v34  ;;  %v1670_v34 = vadd.f32 %v1669_v31, %v1660_v30 }
  0xed   :  { %3524 = vmatmul.mubr.msk.f32.vlgmr.msra.gmra.mrb[0].mxu1 %vm92_vm0, %v65_v33 }
  0xee   :  { %v3503_v0 = vpop.f32.mrb[4].mxu0  ;;  %3836 = vmatpush3.bf16.msra.mxu1 %v3835_v35  ;;  %3530 = vmatprep.mubr.msk.f32.mxu1 %vm3979_vm2, %v3980_v22 }
  0xef   :  { %v227_v36 = vpop.f32.mrb[5].mxu0  ;;  %3837 = vmatprep.subr.bf16.mxu1 %v3978_v21 }
  0xf0   :  { %v3838_v37 = vpack.c.bf16 %v3503_v0, %v227_v36 }
  0xf1   :  { %3531 = vmatmul.mubr.msk.f32.vlgmr.msra.gmra.mrb[2].mxu1 %vm92_vm0, %v65_v33 }
  0xf2   :  { %v3506_v38 = vpop.f32.mrb[6].mxu0  ;;  %3839 = vmatpush3.bf16.msra.mxu1 %v3838_v37  ;;  %3537 = vmatprep.mubr.msk.f32.mxu1 %vm3979_vm2, %v3980_v22 }
  0xf3   :  { %v237_v39 = vpop.f32.mrb[7].mxu0  ;;  %3840 = vmatprep.subr.bf16.mxu1 %v3978_v21 }
  0xf4   :  { %v3841_v40 = vpack.c.bf16 %v3506_v38, %v237_v39 }
  0xf5   :  { %3538 = vmatmul.mubr.msk.f32.vlgmr.msra.gmra.mrb[4].mxu1 %vm92_vm0, %v65_v33 }
  0xf6   :  { %v3509_v41 = vpop.f32.mrb[8].mxu0  ;;  %3842 = vmatpush3.bf16.msra.mxu1 %v3841_v40  ;;  %3544 = vmatprep.mubr.msk.f32.mxu1 %vm3979_vm2, %v3980_v22 }
  0xf7   :  { %v247_v42 = vpop.f32.mrb[9].mxu0  ;;  %3843 = vmatprep.subr.bf16.mxu1 %v3978_v21 }
  0xf8   :  { %v3844_v43 = vpack.c.bf16 %v3509_v41, %v247_v42 }
  0xf9   :  { %3545 = vmatmul.mubr.msk.f32.vlgmr.msra.gmra.mrb[6].mxu1 %vm92_vm0, %v65_v33 }
  0xfa   :  { %v3512_v44 = vpop.f32.mrb[10].mxu0  ;;  %3845 = vmatpush3.bf16.msra.mxu1 %v3844_v43  ;;  %3551 = vmatprep.mubr.msk.f32.mxu1 %vm3979_vm2, %v3980_v22 }
  0xfb   :  { %v257_v45 = vpop.f32.mrb[11].mxu0  ;;  %3846 = vmatprep.subr.bf16.mxu1 %v3978_v21 }
  0xfc   :  { %v3847_v46 = vpack.c.bf16 %v3512_v44, %v257_v45 }
  0xfd   :  { %3552 = vmatmul.mubr.msk.f32.vlgmr.msra.gmra.mrb[8].mxu1 %vm92_vm0, %v65_v33 }
  0xfe   :  { %v3515_v47 = vpop.f32.mrb[12].mxu0  ;;  %3848 = vmatpush3.bf16.msra.mxu1 %v3847_v46  ;;  %3558 = vmatprep.mubr.msk.f32.mxu1 %vm3979_vm2, %v3980_v22 }
  0xff   :  { %v267_v48 = vpop.f32.mrb[13].mxu0  ;;  %3849 = vmatprep.subr.bf16.mxu1 %v3978_v21 }
 0x100   :  { %v3850_v50 = vpack.c.bf16 %v3515_v47, %v267_v48  ;;  %v2431_v48 = vpop.permute.xlu1 %2430 }
 0x101   :  { %3559 = vmatmul.mubr.msk.f32.vlgmr.msra.gmra.mrb[10].mxu1 %vm92_vm0, %v65_v33  ;;  %vm2432_vm9 = vcmp.eq.s32.totalorder %v4315_v24, %v2431_v48 }
 0x102   :  { %v3518_v52 = vpop.f32.mrb[14].mxu0  ;;  %3851 = vmatpush3.bf16.msra.mxu1 %v3850_v50  ;;  %3565 = vmatprep.mubr.msk.f32.mxu1 %vm3979_vm2, %v3980_v22  ;;  %v2441_v50 = vpop.permute.xlu0 %2440 }
 0x103   :  { %v277_v53 = vpop.f32.mrb[15].mxu0  ;;  %3852 = vmatprep.subr.bf16.mxu1 %v3978_v21  ;;  %vm2442_vm10 = vcmp.eq.s32.totalorder %v4315_v24, %v2441_v50 }
 0x104   :  { %v3853_v54 = vpack.c.bf16 %v3518_v52, %v277_v53 }
 0x105   :  { %3566 = vmatmul.mubr.msk.f32.vlgmr.msra.gmra.mrb[12].mxu1 %vm92_vm0, %v65_v33 }
 0x106   :  { %3854 = vmatpush3.bf16.msra.mxu1 %v3853_v54  ;;  %v3581_v56 = vpop.f32.mrb[16].mxu0  ;;  %3572 = vmatprep.mubr.msk.f32.mxu1 %vm3979_vm2, %v3980_v22  ;;  %v2445_v57 = vpop.permute.xlu0 %2444 }
 0x107   :  { %v985_v58 = vpop.f32.mrb[17].mxu0  ;;  %3859 = vmatprep.subr.bf16.mxu1 %v3978_v21 }
 0x108   :  { %v3860_v61 = vpack.c.bf16 %v3581_v56, %v985_v58  ;;  %v2436_v56 = vpop.permute.xlu1 %2435 }
 0x109   :  { %3573 = vmatmul.mubr.msk.f32.vlgmr.msra.gmra.mrb[14].mxu1 %vm92_vm0, %v65_v33  ;;  %v2438_v60 = vsel %vm2432_vm9, %v2436_v56, 0.0 }
 0x10a   :  { %v3584_v62 = vpop.f32.mrb[18].mxu0  ;;  %3861 = vmatpush3.bf16.msra.mxu1 %v3860_v61  ;;  %3607 = vmatprep.mubr.msk.f32.mxu1 %vm3979_vm2, %v3980_v22  ;;  %v2447_v61 = vsel %vm2442_vm10, %v2445_v57, 0.0 }
 0x10b   :  { %v995_v3 = vpop.f32.mrb[19].mxu0  ;;  %3862 = vmatprep.subr.bf16.mxu1 %v3978_v21  ;;  %v2448_v24 = vadd.f32 %v2447_v61, %v2438_v60 }
 0x10c   :  { %v3863_v4 = vpack.c.bf16 %v3584_v62, %v995_v3 }
 0x10d   :  { %3608 = vmatmul.mubr.msk.f32.vlgmr.msra.gmra.mrb[16].mxu1 %vm92_vm0, %v892_v63 }
 0x10e   :  { %v3587_v5 = vpop.f32.mrb[20].mxu0  ;;  %3864 = vmatpush3.bf16.msra.mxu1 %v3863_v4  ;;  %3614 = vmatprep.mubr.msk.f32.mxu1 %vm3979_vm2, %v3980_v22 }
 0x10f   :  { %v1005_v6 = vpop.f32.mrb[21].mxu0  ;;  %3865 = vmatprep.subr.bf16.mxu1 %v3978_v21 }
 0x110   :  { %v3866_v10 = vpack.c.bf16 %v3587_v5, %v1005_v6 }
 0x111   :  { %3615 = vmatmul.mubr.msk.f32.vlgmr.msra.gmra.mrb[18].mxu1 %vm92_vm0, %v892_v63 }
 0x112   :  { %v3590_v11 = vpop.f32.mrb[22].mxu0  ;;  %3867 = vmatpush3.bf16.msra.mxu1 %v3866_v10  ;;  %3621 = vmatprep.mubr.msk.f32.mxu1 %vm3979_vm2, %v3980_v22 }
 0x113   :  { %v1015_v12 = vpop.f32.mrb[23].mxu0  ;;  %3868 = vmatprep.subr.bf16.mxu1 %v3978_v21 }
 0x114   :  { %v3869_v13 = vpack.c.bf16 %v3590_v11, %v1015_v12 }
 0x115   :  { %3622 = vmatmul.mubr.msk.f32.vlgmr.msra.gmra.mrb[20].mxu1 %vm92_vm0, %v892_v63 }
 0x116   :  { %v3593_v14 = vpop.f32.mrb[24].mxu0  ;;  %3870 = vmatpush3.bf16.msra.mxu1 %v3869_v13  ;;  %3628 = vmatprep.mubr.msk.f32.mxu1 %vm3979_vm2, %v3980_v22 }
 0x117   :  { %v1025_v8 = vpop.f32.mrb[25].mxu0  ;;  %3871 = vmatprep.subr.bf16.mxu1 %v3978_v21 }
 0x118   :  { %v3872_v9 = vpack.c.bf16 %v3593_v14, %v1025_v8 }
 0x119   :  { %3629 = vmatmul.mubr.msk.f32.vlgmr.msra.gmra.mrb[22].mxu1 %vm92_vm0, %v892_v63 }
 0x11a   :  { %v3596_v15 = vpop.f32.mrb[26].mxu0  ;;  %3873 = vmatpush3.bf16.msra.mxu1 %v3872_v9  ;;  %3635 = vmatprep.mubr.msk.f32.mxu1 %vm3979_vm2, %v3980_v22 }
 0x11b   :  { %v1035_v16 = vpop.f32.mrb[27].mxu0  ;;  %3874 = vmatprep.subr.bf16.mxu1 %v3978_v21 }
 0x11c   :  { %v3875_v2 = vpack.c.bf16 %v3596_v15, %v1035_v16 }
 0x11d   :  { %3636 = vmatmul.mubr.msk.f32.vlgmr.msra.gmra.mrb[24].mxu1 %vm92_vm0, %v892_v63 }
 0x11e   :  { %v3599_v17 = vpop.f32.mrb[28].mxu0  ;;  %3876 = vmatpush3.bf16.msra.mxu1 %v3875_v2  ;;  %3642 = vmatprep.mubr.msk.f32.mxu1 %vm3979_vm2, %v3980_v22 }
 0x11f   :  { %v1045_v7 = vpop.f32.mrb[29].mxu0  ;;  %3877 = vmatprep.subr.bf16.mxu1 %v3978_v21 }
 0x120   :  { %v3878_v19 = vpack.c.bf16 %v3599_v17, %v1045_v7 }
 0x121   :  { %3643 = vmatmul.mubr.msk.f32.vlgmr.msra.gmra.mrb[26].mxu1 %vm92_vm0, %v892_v63 }
 0x122   :  { %v3602_v1 = vpop.f32.mrb[30].mxu0  ;;  %3879 = vmatpush3.bf16.msra.mxu1 %v3878_v19  ;;  %3649 = vmatprep.mubr.msk.f32.mxu1 %vm3979_vm2, %v3980_v22 }
 0x123   :  { %v1055_v23 = vpop.f32.mrb[31].mxu0  ;;  %3880 = vmatprep.subr.bf16.mxu1 %v3978_v21 }
 0x124   :  { %v3881_v25 = vpack.c.bf16 %v3602_v1, %v1055_v23 }
 0x125   :  { %3650 = vmatmul.mubr.msk.f32.vlgmr.msra.gmra.mrb[28].mxu1 %vm92_vm0, %v892_v63 }
 0x126   :  { %3882 = vmatpush3.bf16.msra.mxu1 %v3881_v25  ;;  %v3665_v27 = vpop.f32.mrb[32].mxu0  ;;  %3656 = vmatprep.mubr.msk.f32.mxu1 %vm3979_vm2, %v3980_v22 }
 0x127   :  { %v1763_v29 = vpop.f32.mrb[33].mxu0  ;;  %3887 = vmatprep.subr.bf16.mxu1 %v3978_v21 }
 0x128   :  { %v3888_v32 = vpack.c.bf16 %v3665_v27, %v1763_v29 }
 0x129   :  { %3657 = vmatmul.mubr.msk.f32.vlgmr.msra.gmra.mrb[30].mxu1 %vm92_vm0, %v892_v63 }
 0x12a   :  { %v3668_v33 = vpop.f32.mrb[34].mxu0  ;;  %3889 = vmatpush3.bf16.msra.mxu1 %v3888_v32  ;;  %3691 = vmatprep.mubr.msk.f32.mxu1 %vm3979_vm2, %v3980_v22 }
 0x12b   :  { %v1773_v35 = vpop.f32.mrb[35].mxu0  ;;  %3890 = vmatprep.subr.bf16.mxu1 %v3978_v21 }
 0x12c   :  { %v3891_v0 = vpack.c.bf16 %v3668_v33, %v1773_v35 }
 0x12d   :  { %3692 = vmatmul.mubr.msk.f32.vlgmr.msra.gmra.mrb[32].mxu1 %vm92_vm0, %v1670_v34 }
 0x12e   :  { %v3671_v36 = vpop.f32.mrb[36].mxu0  ;;  %3892 = vmatpush3.bf16.msra.mxu1 %v3891_v0  ;;  %3698 = vmatprep.mubr.msk.f32.mxu1 %vm3979_vm2, %v3980_v22 }
 0x12f   :  { %v1783_v37 = vpop.f32.mrb[37].mxu0  ;;  %3893 = vmatprep.subr.bf16.mxu1 %v3978_v21 }
 0x130   :  { %v3894_v38 = vpack.c.bf16 %v3671_v36, %v1783_v37 }
 0x131   :  { %3699 = vmatmul.mubr.msk.f32.vlgmr.msra.gmra.mrb[34].mxu1 %vm92_vm0, %v1670_v34 }
 0x132   :  { %v3674_v39 = vpop.f32.mrb[38].mxu0  ;;  %3895 = vmatpush3.bf16.msra.mxu1 %v3894_v38  ;;  %3705 = vmatprep.mubr.msk.f32.mxu1 %vm3979_vm2, %v3980_v22 }
 0x133   :  { %v1793_v40 = vpop.f32.mrb[39].mxu0  ;;  %3896 = vmatprep.subr.bf16.mxu1 %v3978_v21 }
 0x134   :  { %v3897_v41 = vpack.c.bf16 %v3674_v39, %v1793_v40 }
 0x135   :  { %3706 = vmatmul.mubr.msk.f32.vlgmr.msra.gmra.mrb[36].mxu1 %vm92_vm0, %v1670_v34 }
 0x136   :  { %v3677_v42 = vpop.f32.mrb[40].mxu0  ;;  %3898 = vmatpush3.bf16.msra.mxu1 %v3897_v41  ;;  %3712 = vmatprep.mubr.msk.f32.mxu1 %vm3979_vm2, %v3980_v22 }
 0x137   :  { %v1803_v43 = vpop.f32.mrb[41].mxu0  ;;  %3899 = vmatprep.subr.bf16.mxu1 %v3978_v21 }
 0x138   :  { %v3900_v44 = vpack.c.bf16 %v3677_v42, %v1803_v43 }
 0x139   :  { %3713 = vmatmul.mubr.msk.f32.vlgmr.msra.gmra.mrb[38].mxu1 %vm92_vm0, %v1670_v34 }
 0x13a   :  { %v3680_v45 = vpop.f32.mrb[42].mxu0  ;;  %3901 = vmatpush3.bf16.msra.mxu1 %v3900_v44  ;;  %3719 = vmatprep.mubr.msk.f32.mxu1 %vm3979_vm2, %v3980_v22 }
 0x13b   :  { %v1813_v46 = vpop.f32.mrb[43].mxu0  ;;  %3902 = vmatprep.subr.bf16.mxu1 %v3978_v21 }
 0x13c   :  { %v3903_v47 = vpack.c.bf16 %v3680_v45, %v1813_v46 }
 0x13d   :  { %3720 = vmatmul.mubr.msk.f32.vlgmr.msra.gmra.mrb[40].mxu1 %vm92_vm0, %v1670_v34 }
 0x13e   :  { %v3683_v49 = vpop.f32.mrb[44].mxu0  ;;  %3904 = vmatpush3.bf16.msra.mxu1 %v3903_v47  ;;  %3726 = vmatprep.mubr.msk.f32.mxu1 %vm3979_vm2, %v3980_v22 }
 0x13f   :  { %v1823_v51 = vpop.f32.mrb[45].mxu0  ;;  %3905 = vmatprep.subr.bf16.mxu1 %v3978_v21 }
 0x140   :  { %v3906_v52 = vpack.c.bf16 %v3683_v49, %v1823_v51 }
 0x141   :  { %3727 = vmatmul.mubr.msk.f32.vlgmr.msra.gmra.mrb[42].mxu1 %vm92_vm0, %v1670_v34 }
 0x142   :  { %v3686_v53 = vpop.f32.mrb[46].mxu0  ;;  %3907 = vmatpush3.bf16.msra.mxu1 %v3906_v52  ;;  %3733 = vmatprep.mubr.msk.f32.mxu1 %vm3979_vm2, %v3980_v22 }
 0x143   :  { %v1833_v54 = vpop.f32.mrb[47].mxu0  ;;  %3908 = vmatprep.subr.bf16.mxu1 %v3978_v21 }
 0x144   :  { %v3909_v55 = vpack.c.bf16 %v3686_v53, %v1833_v54 }
 0x145   :  { %3734 = vmatmul.mubr.msk.f32.vlgmr.msra.gmra.mrb[44].mxu1 %vm92_vm0, %v1670_v34 }
 0x146   :  { %3910 = vmatpush3.bf16.msra.mxu1 %v3909_v55  ;;  %v3749_v58 = vpop.f32.mrb[48].mxu0  ;;  %3740 = vmatprep.mubr.msk.f32.mxu1 %vm3979_vm2, %v3980_v22 }
 0x147   :  { %v2541_v59 = vpop.f32.mrb[49].mxu0  ;;  %3915 = vmatprep.subr.bf16.mxu1 %v3978_v21 }
 0x148   :  { %v3916_v62 = vpack.c.bf16 %v3749_v58, %v2541_v59 }
 0x149   :  { %3741 = vmatmul.mubr.msk.f32.vlgmr.msra.gmra.mrb[46].mxu1 %vm92_vm0, %v1670_v34 }
 0x14a   :  { %v3752_v63 = vpop.f32.mrb[50].mxu0  ;;  %3917 = vmatpush3.bf16.msra.mxu1 %v3916_v62  ;;  %3775 = vmatprep.mubr.msk.f32.mxu1 %vm3979_vm2, %v3980_v22 }
 0x14b   :  { %v2551_v3 = vpop.f32.mrb[51].mxu0  ;;  %3918 = vmatprep.subr.bf16.mxu1 %v3978_v21 }
 0x14c   :  { %v3919_v4 = vpack.c.bf16 %v3752_v63, %v2551_v3 }
 0x14d   :  { %3776 = vmatmul.mubr.msk.f32.vlgmr.msra.gmra.mrb[48].mxu1 %vm92_vm0, %v2448_v24 }
 0x14e   :  { %v3755_v5 = vpop.f32.mrb[52].mxu0  ;;  %3920 = vmatpush3.bf16.msra.mxu1 %v3919_v4  ;;  %3782 = vmatprep.mubr.msk.f32.mxu1 %vm3979_vm2, %v3980_v22 }
 0x14f   :  { %v2561_v6 = vpop.f32.mrb[53].mxu0  ;;  %3921 = vmatprep.subr.bf16.mxu1 %v3978_v21 }
 0x150   :  { %v3922_v10 = vpack.c.bf16 %v3755_v5, %v2561_v6 }
 0x151   :  { %3783 = vmatmul.mubr.msk.f32.vlgmr.msra.gmra.mrb[50].mxu1 %vm92_vm0, %v2448_v24 }
 0x152   :  { %v3758_v11 = vpop.f32.mrb[54].mxu0  ;;  %3923 = vmatpush3.bf16.msra.mxu1 %v3922_v10  ;;  %3789 = vmatprep.mubr.msk.f32.mxu1 %vm3979_vm2, %v3980_v22 }
 0x153   :  { %v2571_v12 = vpop.f32.mrb[55].mxu0  ;;  %3924 = vmatprep.subr.bf16.mxu1 %v3978_v21 }
 0x154   :  { %v3925_v13 = vpack.c.bf16 %v3758_v11, %v2571_v12 }
 0x155   :  { %3790 = vmatmul.mubr.msk.f32.vlgmr.msra.gmra.mrb[52].mxu1 %vm92_vm0, %v2448_v24 }
 0x156   :  { %v3761_v14 = vpop.f32.mrb[56].mxu0  ;;  %3926 = vmatpush3.bf16.msra.mxu1 %v3925_v13  ;;  %3796 = vmatprep.mubr.msk.f32.mxu1 %vm3979_vm2, %v3980_v22 }
 0x157   :  { %v2581_v8 = vpop.f32.mrb[57].mxu0  ;;  %3927 = vmatprep.subr.bf16.mxu1 %v3978_v21 }
 0x158   :  { %v3928_v9 = vpack.c.bf16 %v3761_v14, %v2581_v8 }
 0x159   :  { %3797 = vmatmul.mubr.msk.f32.vlgmr.msra.gmra.mrb[54].mxu1 %vm92_vm0, %v2448_v24 }
 0x15a   :  { %v3764_v15 = vpop.f32.mrb[58].mxu0  ;;  %3929 = vmatpush3.bf16.msra.mxu1 %v3928_v9  ;;  %3803 = vmatprep.mubr.msk.f32.mxu1 %vm3979_vm2, %v3980_v22 }
 0x15b   :  { %v2591_v16 = vpop.f32.mrb[59].mxu0  ;;  %3930 = vmatprep.subr.bf16.mxu1 %v3978_v21 }
 0x15c   :  { %v3931_v2 = vpack.c.bf16 %v3764_v15, %v2591_v16 }
 0x15d   :  { %3804 = vmatmul.mubr.msk.f32.vlgmr.msra.gmra.mrb[56].mxu1 %vm92_vm0, %v2448_v24 }
 0x15e   :  { %v3767_v17 = vpop.f32.mrb[60].mxu0  ;;  %3932 = vmatpush3.bf16.msra.mxu1 %v3931_v2  ;;  %3810 = vmatprep.mubr.msk.f32.mxu1 %vm3979_vm2, %v3980_v22 }
 0x15f   :  { %v2601_v7 = vpop.f32.mrb[61].mxu0  ;;  %3933 = vmatprep.subr.bf16.mxu1 %v3978_v21 }
 0x160   :  { %v3934_v18 = vpack.c.bf16 %v3767_v17, %v2601_v7 }
 0x161   :  { %3811 = vmatmul.mubr.msk.f32.vlgmr.msra.gmra.mrb[58].mxu1 %vm92_vm0, %v2448_v24 }
 0x162   :  { %v3770_v19 = vpop.f32.mrb[62].mxu0  ;;  %3935 = vmatpush3.bf16.msra.mxu1 %v3934_v18  ;;  %3817 = vmatprep.mubr.msk.f32.mxu1 %vm3979_vm2, %v3980_v22 }
 0x163   :  { %v2611_v20 = vpop.f32.mrb[63].mxu0  ;;  %3936 = vmatprep.subr.bf16.mxu1 %v3978_v21 }
 0x164   :  { %v3937_v1 = vpack.c.bf16 %v3770_v19, %v2611_v20 }
 0x165   :  { %3818 = vmatmul.mubr.msk.f32.vlgmr.msra.gmra.mrb[60].mxu1 %vm92_vm0, %v2448_v24 }
 0x166   :  { %3938 = vmatpush3.bf16.msra.mxu1 %v3937_v1  ;;  %3824 = vmatprep.mubr.msk.f32.mxu1 %vm3979_vm2, %v3980_v22 }
 0x169   :  { %3825 = vmatmul.mubr.msk.f32.vlgmr.msra.gmra.mrb[62].mxu1 %vm92_vm0, %v2448_v24 }
 0x1c0   :  { %v355_v23 = vpop.f32.mrb[0].mxu1 }
 0x1c1   :  { %360 = vst.msk [vmem:[#allocation2] sm:$0xff] %vm359_vm11, %v355_v23  ;;  %v3525_v25 = vpop.f32.mrb[1].mxu1 }
 0x1c4   :  { %v427_v26 = vpop.f32.mrb[2].mxu1 }
 0x1c5   :  { %432 = vst.msk [vmem:[#allocation2 + $0x8] sm:$0xff] %vm359_vm11, %v427_v26  ;;  %v3532_v27 = vpop.f32.mrb[3].mxu1 }
 0x1c8   :  { %v499_v28 = vpop.f32.mrb[4].mxu1 }
 0x1c9   :  { %504 = vst.msk [vmem:[#allocation2 + $0x10] sm:$0xff] %vm359_vm11, %v499_v28  ;;  %v3539_v21 = vpop.f32.mrb[5].mxu1 }
 0x1cc   :  { %v571_v29 = vpop.f32.mrb[6].mxu1 }
 0x1cd   :  { %576 = vst.msk [vmem:[#allocation2 + $0x18] sm:$0xff] %vm359_vm11, %v571_v29  ;;  %v3546_v30 = vpop.f32.mrb[7].mxu1 }
 0x1d0   :  { %v643_v22 = vpop.f32.mrb[8].mxu1 }
 0x1d1   :  { %648 = vst.msk [vmem:[#allocation2 + $0x20] sm:$0xff] %vm359_vm11, %v643_v22  ;;  %v3553_v31 = vpop.f32.mrb[9].mxu1 }
 0x1d4   :  { %v715_v32 = vpop.f32.mrb[10].mxu1 }
 0x1d5   :  { %720 = vst.msk [vmem:[#allocation2 + $0x28] sm:$0xff] %vm359_vm11, %v715_v32  ;;  %v3560_v33 = vpop.f32.mrb[11].mxu1 }
 0x1d8   :  { %v787_v34 = vpop.f32.mrb[12].mxu1 }
 0x1d9   :  { %792 = vst.msk [vmem:[#allocation2 + $0x30] sm:$0xff] %vm359_vm11, %v787_v34  ;;  %v3567_v35 = vpop.f32.mrb[13].mxu1 }
 0x1dc   :  { %v859_v0 = vpop.f32.mrb[14].mxu1 }
 0x1dd   :  { %864 = vst.msk [vmem:[#allocation2 + $0x38] sm:$0xff] %vm359_vm11, %v859_v0  ;;  %v3574_v36 = vpop.f32.mrb[15].mxu1 }
 0x1e0   :  { %v1133_v37 = vpop.f32.mrb[16].mxu1 }
 0x1e1   :  { %1138 = vst.msk [vmem:[#allocation2 + $0x40] sm:$0xff] %vm359_vm11, %v1133_v37  ;;  %v3609_v38 = vpop.f32.mrb[17].mxu1 }
 0x1e4   :  { %v1205_v39 = vpop.f32.mrb[18].mxu1 }
 0x1e5   :  { %1210 = vst.msk [vmem:[#allocation2 + $0x48] sm:$0xff] %vm359_vm11, %v1205_v39  ;;  %v3616_v40 = vpop.f32.mrb[19].mxu1 }
 0x1e8   :  { %v1277_v41 = vpop.f32.mrb[20].mxu1 }
 0x1e9   :  { %1282 = vst.msk [vmem:[#allocation2 + $0x50] sm:$0xff] %vm359_vm11, %v1277_v41  ;;  %v3623_v42 = vpop.f32.mrb[21].mxu1 }
 0x1ec   :  { %v1349_v43 = vpop.f32.mrb[22].mxu1 }
 0x1ed   :  { %1354 = vst.msk [vmem:[#allocation2 + $0x58] sm:$0xff] %vm359_vm11, %v1349_v43  ;;  %v3630_v44 = vpop.f32.mrb[23].mxu1 }
 0x1f0   :  { %v1421_v45 = vpop.f32.mrb[24].mxu1 }
 0x1f1   :  { %1426 = vst.msk [vmem:[#allocation2 + $0x60] sm:$0xff] %vm359_vm11, %v1421_v45  ;;  %v3637_v46 = vpop.f32.mrb[25].mxu1 }
 0x1f4   :  { %v1493_v47 = vpop.f32.mrb[26].mxu1 }
 0x1f5   :  { %1498 = vst.msk [vmem:[#allocation2 + $0x68] sm:$0xff] %vm359_vm11, %v1493_v47  ;;  %v3644_v48 = vpop.f32.mrb[27].mxu1 }
 0x1f8   :  { %v1565_v49 = vpop.f32.mrb[28].mxu1 }
 0x1f9   :  { %1570 = vst.msk [vmem:[#allocation2 + $0x70] sm:$0xff] %vm359_vm11, %v1565_v49  ;;  %v3651_v50 = vpop.f32.mrb[29].mxu1 }
 0x1fc   :  { %v1637_v51 = vpop.f32.mrb[30].mxu1 }
 0x1fd   :  { %1642 = vst.msk [vmem:[#allocation2 + $0x78] sm:$0xff] %vm359_vm11, %v1637_v51  ;;  %v3658_v52 = vpop.f32.mrb[31].mxu1 }
 0x200   :  { %v1911_v53 = vpop.f32.mrb[32].mxu1 }
 0x201   :  { %1916 = vst.msk [vmem:[#allocation2 + $0x80] sm:$0xff] %vm359_vm11, %v1911_v53  ;;  %v3693_v54 = vpop.f32.mrb[33].mxu1 }
 0x204   :  { %v1983_v55 = vpop.f32.mrb[34].mxu1 }
 0x205   :  { %1988 = vst.msk [vmem:[#allocation2 + $0x88] sm:$0xff] %vm359_vm11, %v1983_v55  ;;  %v3700_v56 = vpop.f32.mrb[35].mxu1 }
 0x208   :  { %v2055_v57 = vpop.f32.mrb[36].mxu1 }
 0x209   :  { %2060 = vst.msk [vmem:[#allocation2 + $0x90] sm:$0xff] %vm359_vm11, %v2055_v57  ;;  %v3707_v58 = vpop.f32.mrb[37].mxu1 }
 0x20c   :  { %v2127_v59 = vpop.f32.mrb[38].mxu1 }
 0x20d   :  { %2132 = vst.msk [vmem:[#allocation2 + $0x98] sm:$0xff] %vm359_vm11, %v2127_v59  ;;  %v3714_v60 = vpop.f32.mrb[39].mxu1 }
 0x210   :  { %v2199_v61 = vpop.f32.mrb[40].mxu1 }
 0x211   :  { %2204 = vst.msk [vmem:[#allocation2 + $0xa0] sm:$0xff] %vm359_vm11, %v2199_v61  ;;  %v3721_v62 = vpop.f32.mrb[41].mxu1 }
 0x214   :  { %v2271_v63 = vpop.f32.mrb[42].mxu1 }
 0x215   :  { %2276 = vst.msk [vmem:[#allocation2 + $0xa8] sm:$0xff] %vm359_vm11, %v2271_v63  ;;  %v3728_v24 = vpop.f32.mrb[43].mxu1 }
 0x218   :  { %v2343_v3 = vpop.f32.mrb[44].mxu1 }
 0x219   :  { %2348 = vst.msk [vmem:[#allocation2 + $0xb0] sm:$0xff] %vm359_vm11, %v2343_v3  ;;  %v3735_v4 = vpop.f32.mrb[45].mxu1 }
 0x21c   :  { %v2415_v5 = vpop.f32.mrb[46].mxu1 }
 0x21d   :  { %2420 = vst.msk [vmem:[#allocation2 + $0xb8] sm:$0xff] %vm359_vm11, %v2415_v5  ;;  %v3742_v6 = vpop.f32.mrb[47].mxu1 }
 0x220   :  { %v2689_v10 = vpop.f32.mrb[48].mxu1 }
 0x221   :  { %2694 = vst.msk [vmem:[#allocation2 + $0xc0] sm:$0xff] %vm359_vm11, %v2689_v10  ;;  %v3777_v11 = vpop.f32.mrb[49].mxu1 }
 0x224   :  { %v2761_v12 = vpop.f32.mrb[50].mxu1 }
 0x225   :  { %2766 = vst.msk [vmem:[#allocation2 + $0xc8] sm:$0xff] %vm359_vm11, %v2761_v12  ;;  %v3784_v13 = vpop.f32.mrb[51].mxu1 }
 0x228   :  { %v2833_v14 = vpop.f32.mrb[52].mxu1 }
 0x229   :  { %2838 = vst.msk [vmem:[#allocation2 + $0xd0] sm:$0xff] %vm359_vm11, %v2833_v14  ;;  %v3791_v8 = vpop.f32.mrb[53].mxu1 }
 0x22c   :  { %v2905_v9 = vpop.f32.mrb[54].mxu1 }
 0x22d   :  { %2910 = vst.msk [vmem:[#allocation2 + $0xd8] sm:$0xff] %vm359_vm11, %v2905_v9  ;;  %v3798_v15 = vpop.f32.mrb[55].mxu1 }
 0x230   :  { %v2977_v16 = vpop.f32.mrb[56].mxu1 }
 0x231   :  { %2982 = vst.msk [vmem:[#allocation2 + $0xe0] sm:$0xff] %vm359_vm11, %v2977_v16  ;;  %v3805_v2 = vpop.f32.mrb[57].mxu1 }
 0x234   :  { %v3049_v17 = vpop.f32.mrb[58].mxu1 }
 0x235   :  { %3054 = vst.msk [vmem:[#allocation2 + $0xe8] sm:$0xff] %vm359_vm11, %v3049_v17  ;;  %v3812_v7 = vpop.f32.mrb[59].mxu1 }
 0x238   :  { %v3121_v18 = vpop.f32.mrb[60].mxu1 }
 0x239   :  { %3126 = vst.msk [vmem:[#allocation2 + $0xf0] sm:$0xff] %vm359_vm11, %v3121_v18  ;;  %v3819_v19 = vpop.f32.mrb[61].mxu1 }
 0x23c   :  { %v3193_v20 = vpop.f32.mrb[62].mxu1 }
 0x23d   :  { %3198 = vst.msk [vmem:[#allocation2 + $0xf8] sm:$0xff] %vm359_vm11, %v3193_v20  ;;  %v3826_v1 = vpop.f32.mrb[63].mxu1 }
 0x23e   :  { %3963 = shalt.err (!%p3960_p4)
}
 0x23f   :  { %s3964_s7 = scalar_lea.hbm %s4499_s5, 4096 }
 0x240   :  { %p3965_p5 = scmp.ne.s32.totalorder %s4499_s5, %s3964_s7  ;;  %p3968_p6 = scmp.lt.u32.totalorder %s3964_s7, %s4499_s5 }
 0x242   :  { %p3970_p7 = pnand %p3968_p6, %p3965_p5 }
 0x244   :  { %3973 = shalt.err (!%p3970_p7)
}
 0x245   :  { %s3982_s12 = smov 128   ;;  %s3983_s13 = smov 8  }
 0x246   :  { %3210 = dma.vmem_to_hbm [thread:$0]  %s3205_s28, 4096, %s4499_s5, [#allocation3], %s3982_s12, %s3982_s12, %s3983_s13  }
 0x247   :  { %3974 = dma.done.wait [#allocation3], 4096  }
 0x248   :  { %3975 = vsyncadd [#allocation3], 4294963200 }
 0x249   :  { %3214 = vsyncpa [#allocation3], 1 }

// kernel: _make_cutouts_fwd.1
= control target key start
LH: loop header
LB: loop body
LE: loop exit
PB: predicated region body
PF: predicated region fallthrough
CT: control target
= control target key end

     0   :  { %v37_v0 = vlaneseq  ;;  %vm92_vm0 = vcmask 130048   ;;  %v3976_v3 = vmov 0   ;;  %s4494_s0 = inlined_call_operand.vmem [shape: f32[8,16,16], index: 0, kind: input, shape index: {}]   ;;  %s4495_s1 = inlined_call_operand.vmem [shape: s32[4,8,2], index: 1, kind: input, shape index: {}]   ;;  %s4496_s2 = inlined_call_operand.vmem [shape: f32[4,8,2], index: 2, kind: input, shape index: {}]   ;;  %s4497_s3 = inlined_call_operand.vmem [shape: s32[4,2,8], index: 3, kind: input, shape index: {}]   ;;  %s4498_s4 = inlined_call_operand.vmem [shape: f32[4,2,8], index: 4, kind: input, shape index: {}]   ;;  %s4499_s5 = inlined_call_operand.hbm [shape: f32[4,8,8,8], index: 5, kind: output, shape index: {}]  }
   0x1   :  { %v4017_v1 = vld [vmem:[%s4494_s0] sm:$0xff]  ;;  %3949 = vset.pattern.permute.xlu1 %v3976_v3  ;;  %3947 = vset.pattern.permute.xlu0 %v3976_v3 }
   0x2   :  { %3495 = vmatprep.mubr.msk.f32.mxu0 %vm92_vm0, %v4017_v1  ;;  %v4022_v2 = vshrl.u32 %v37_v0, 7  ;;  %v44_v4 = vld [vmem:[%s4497_s3] sm:$0x3]  ;;  %v3241_v6 = vld [vmem:[%s4497_s3 + $0x2] sm:$0x3] }
   0x3   :  { %v45_v5 = vld [vmem:[%s4498_s4] sm:$0x3]  ;;  %v3242_v10 = vld [vmem:[%s4498_s4 + $0x2] sm:$0x3]  ;;  %v3269_v25 = vld [vmem:[%s4497_s3 + $0x4] sm:$0x3] }
   0x4   :  { %v4036_v7 = vadd.s32 8, %v4022_v2  ;;  %v4039_v8 = vsub.s32 0, %v4022_v2  ;;  %v4042_v9 = vsub.s32 1, %v4022_v2  ;;  %v43_v19 = vld [vmem:[%s4496_s2] sm:$0xff] }
   0x5   :  { %v42_v20 = vld [vmem:[%s4495_s1] sm:$0xff]  ;;  %52 = vperm.xlu1 %3949, %v43_v19  }
   0x6   :  { %v69_v11 = vrot.slane %v44_v4, %v4039_v8  ;;  %v75_v12 = vrot.slane %v45_v5, %v4039_v8  ;;  %v81_v13 = vrot.slane %v44_v4, %v4042_v9  ;;  %v87_v14 = vrot.slane %v45_v5, %v4042_v9  ;;  %47 = vperm.xlu0 %3947, %v42_v20   ;;  %v3270_v28 = vld [vmem:[%s4498_s4 + $0x4] sm:$0x3] }
   0x7   :  { %v896_v15 = vrot.slane %v3241_v6, %v4039_v8  ;;  %v902_v16 = vrot.slane %v3242_v10, %v4039_v8  ;;  %v908_v17 = vrot.slane %v3241_v6, %v4042_v9  ;;  %v914_v18 = vrot.slane %v3242_v10, %v4042_v9 }
   0x8   :  { %vm70_vm1 = vcmp.eq.s32.totalorder %v4022_v2, %v69_v11  ;;  %vm71_vm2 = vcmp.eq.s32.totalorder %v4036_v7, %v69_v11  ;;  %vm82_vm3 = vcmp.eq.s32.totalorder %v4022_v2, %v81_v13  ;;  %vm83_vm4 = vcmp.eq.s32.totalorder %v4036_v7, %v81_v13 }
   0x9   :  { %v76_v21 = vsel %vm70_vm1, %v75_v12, 0.0  ;;  %v77_v22 = vsel %vm71_vm2, %v75_v12, 0.0  ;;  %v88_v23 = vsel %vm82_vm3, %v87_v14, 0.0  ;;  %v89_v24 = vsel %vm83_vm4, %v87_v14, 0.0 }
   0xa   :  { %v90_v26 = vadd.f32 %v88_v23, %v76_v21  ;;  %v91_v27 = vadd.f32 %v89_v24, %v77_v22  ;;  %vm897_vm5 = vcmp.eq.s32.totalorder %v4022_v2, %v896_v15  ;;  %vm898_vm6 = vcmp.eq.s32.totalorder %v4036_v7, %v896_v15 }
   0xb   :  { %v903_v29 = vsel %vm897_vm5, %v902_v16, 0.0  ;;  %v904_v30 = vsel %vm898_vm6, %v902_v16, 0.0  ;;  %vm909_vm7 = vcmp.eq.s32.totalorder %v4022_v2, %v908_v17  ;;  %vm910_vm8 = vcmp.eq.s32.totalorder %v4036_v7, %v908_v17 }
   0xc   :  { %10 = vsyncpa [#allocation3], 0  ;;  %v3827_v31 = vpack.c.bf16 %v91_v27, %v90_v26  ;;  %v915_v32 = vsel %vm909_vm7, %v914_v18, 0.0  ;;  %v916_v33 = vsel %vm910_vm8, %v914_v18, 0.0  ;;  %v1674_v34 = vrot.slane %v3269_v25, %v4039_v8  ;;  %v4084_v41 = vld [vmem:[%s4494_s0 + $0x8] sm:$0xff]  ;;  %v4093_v46 = vld [vmem:[%s4494_s0 + $0x10] sm:$0xff] }
   0xd   :  { %v3977_v35 = vmov 1   ;;  %v917_v36 = vadd.f32 %v915_v32, %v903_v29  ;;  %v918_v37 = vadd.f32 %v916_v33, %v904_v30  ;;  %v1680_v38 = vrot.slane %v3270_v28, %v4039_v8  ;;  %v3239_v45 = vld [vmem:[%s4495_s1 + $0x8] sm:$0xff]  ;;  %v4104_v51 = vld [vmem:[%s4494_s0 + $0x18] sm:$0xff]  ;;  %v4109_v52 = vld [vmem:[%s4494_s0 + $0x20] sm:$0xff] }
   0xe   :  { %3950 = vset.pattern.permute.xlu1 %v3977_v35  ;;  %v1686_v39 = vrot.slane %v3269_v25, %v4042_v9  ;;  %3828 = vmatprep.subr.bf16.mxu0 %v3827_v31  ;;  %vm1675_vm9 = vcmp.eq.s32.totalorder %v4022_v2, %v1674_v34  ;;  %vm1676_vm10 = vcmp.eq.s32.totalorder %v4036_v7, %v1674_v34  ;;  %v3240_v54 = vld [vmem:[%s4496_s2 + $0x8] sm:$0xff]  ;;  %v4126_v56 = vld [vmem:[%s4494_s0 + $0x30] sm:$0xff]  ;;  %v4138_v58 = vld [vmem:[%s4494_s0 + $0x38] sm:$0xff]  ;;  %v3978_v21 = vmov 0.0|0.0  }
   0xf   :  { %61 = vperm.xlu1 %3950, %v43_v19   ;;  %v1692_v40 = vrot.slane %v3270_v28, %v4042_v9  ;;  %3948 = vset.pattern.permute.xlu0 %v3977_v35  ;;  %v3855_v42 = vpack.c.bf16 %v918_v37, %v917_v36  ;;  %v1681_v43 = vsel %vm1675_vm9, %v1680_v38, 0.0  ;;  %v1682_v44 = vsel %vm1676_vm10, %v1680_v38, 0.0  ;;  %v4121_v55 = vld [vmem:[%s4494_s0 + $0x28] sm:$0xff]  ;;  %v3267_v57 = vld [vmem:[%s4495_s1 + $0x10] sm:$0xff]  ;;  %v4143_v59 = vld [vmem:[%s4494_s0 + $0x40] sm:$0xff] }
  0x10   :  { %3830 = vmatpush3.bf16.msra.mxu0 %v3827_v31  ;;  %vm1687_vm11 = vcmp.eq.s32.totalorder %v4022_v2, %v1686_v39  ;;  %57 = vperm.xlu0 %3948, %v42_v20   ;;  %vm1688_vm12 = vcmp.eq.s32.totalorder %v4036_v7, %v1686_v39  ;;  %v3268_v60 = vld [vmem:[%s4496_s2 + $0x10] sm:$0xff]  ;;  %v4155_v61 = vld [vmem:[%s4494_s0 + $0x48] sm:$0xff]  ;;  %v3297_v62 = vld [vmem:[%s4497_s3 + $0x6] sm:$0x3]  ;;  %vm3979_vm2 = vmmov 0   ;;  %v3980_v22 = vmov 0.0  }
  0x11   :  { %v1693_v47 = vsel %vm1687_vm11, %v1692_v40, 0.0  ;;  %3856 = vmatprep.subr.bf16.mxu0 %v3855_v42  ;;  %v1694_v48 = vsel %vm1688_vm12, %v1692_v40, 0.0  ;;  %v4163_v63 = vld [vmem:[%s4494_s0 + $0x50] sm:$0xff]  ;;  %v3298_v4 = vld [vmem:[%s4498_s4 + $0x6] sm:$0x3]  ;;  %v2452_v5 = vrot.slane %v3297_v62, %v4039_v8  ;;  %v2464_v6 = vrot.slane %v3297_v62, %v4042_v9  ;;  %v4180_v10 = vld [vmem:[%s4494_s0 + $0x58] sm:$0xff]  ;;  %3831 = vmatprep.subr.bf16.mxu1 %v3978_v21 }
  0x12   :  { %v1695_v49 = vadd.f32 %v1693_v47, %v1681_v43  ;;  %v1696_v50 = vadd.f32 %v1694_v48, %v1682_v44  ;;  %v4185_v11 = vld [vmem:[%s4494_s0 + $0x60] sm:$0xff]  ;;  %v3296_v12 = vld [vmem:[%s4496_s2 + $0x18] sm:$0xff]  ;;  %v2458_v13 = vrot.slane %v3298_v4, %v4039_v8  ;;  %v2470_v14 = vrot.slane %v3298_v4, %v4042_v9  ;;  %v4203_v8 = vld [vmem:[%s4494_s0 + $0x68] sm:$0xff]  ;;  %3523 = vmatprep.mubr.msk.f32.mxu1 %vm3979_vm2, %v3980_v22 }
  0x13   :  { %3951 = vset.pattern.permute.xlu1 %v3976_v3  ;;  %3496 = vmatmul.mubr.msk.f32.vlgmr.msra.gmra.mrb[0].mxu0 %vm92_vm0, %v4084_v41  ;;  %v3295_v3 = vld [vmem:[%s4495_s1 + $0x18] sm:$0xff]  ;;  %vm2453_vm13 = vcmp.eq.s32.totalorder %v4022_v2, %v2452_v5  ;;  %vm2454_vm14 = vcmp.eq.s32.totalorder %v4036_v7, %v2452_v5  ;;  %vm2465_vm15 = vcmp.eq.s32.totalorder %v4022_v2, %v2464_v6  ;;  %v4208_v9 = vld [vmem:[%s4494_s0 + $0x70] sm:$0xff]  ;;  %v4315_v24 = vand.u32 127, %v37_v0 }
  0x14   :  { %874 = vperm.xlu1 %3951, %v3239_v45   ;;  %3858 = vmatpush3.bf16.msra.mxu0 %v3855_v42  ;;  %v3883_v53 = vpack.c.bf16 %v1696_v50, %v1695_v49  ;;  %vm2466_vm1 = vcmp.eq.s32.totalorder %v4036_v7, %v2464_v6  ;;  %v2459_v15 = vsel %vm2453_vm13, %v2458_v13, 0.0  ;;  %v2460_v16 = vsel %vm2454_vm14, %v2458_v13, 0.0  ;;  %v36_v7 = vld [vmem:[%s4494_s0 + $0x78] sm:$0xff]  ;;  %s3981_s0 = smov [#allocation2]  }
  0x15   :  { %3498 = vmatprep.mubr.msk.f32.mxu0 %vm92_vm0, %v4093_v46  ;;  %884 = vperm.xlu0 %3948, %v3239_v45   ;;  %v2471_v2 = vsel %vm2465_vm15, %v2470_v14, 0.0  ;;  %v2472_v17 = vsel %vm2466_vm1, %v2470_v14, 0.0  ;;  %vm359_vm11 = vcmask 64512   ;;  %s3204_s28 = sshll.u32 %s3981_s0, 4  ;;  %s3205_s28 = int_to_ptr.vmem [resolvable:$true] %s3204_s28 }
  0x16   :  { %3884 = vmatprep.subr.bf16.mxu0 %v3883_v53  ;;  %v2473_v18 = vadd.f32 %v2471_v2, %v2459_v15  ;;  %v2474_v19 = vadd.f32 %v2472_v17, %v2460_v16  ;;  %s3952_s29 = scalar_lea.vmem %s3205_s28, 4096  ;;  %p3957_p1 = scmp.lt.s32.totalorder %s3205_s28, %s3205_s28 }
  0x17   :  { %3499 = vmatmul.mubr.msk.f32.gmra.mrb[2].mxu0 %vm92_vm0, %v4104_v51  ;;  %p3953_p0 = scmp.ne.s32.totalorder %s3205_s28, %s3952_s29  ;;  %p3958_p2 = scmp.lt.s32.totalorder %s3952_s29, %s3952_s29 }
  0x18   :  { %3501 = vmatprep.mubr.msk.f32.mxu0 %vm92_vm0, %v4109_v52  ;;  %879 = vperm.xlu1 %3951, %v3240_v54   ;;  %v3911_v20 = vpack.c.bf16 %v2474_v19, %v2473_v18 }
  0x19   :  { %888 = vperm.xlu0 %3948, %v3240_v54   ;;  %p3959_p3 = por %p3958_p2, %p3957_p1 }
  0x1b   :  { %3502 = vmatmul.mubr.msk.f32.gmra.mrb[4].mxu0 %vm92_vm0, %v4121_v55  ;;  %p3960_p4 = pnand %p3959_p3, %p3953_p0 }
  0x1c   :  { %3504 = vmatprep.mubr.msk.f32.mxu0 %vm92_vm0, %v4126_v56  ;;  %1652 = vperm.xlu1 %3951, %v3267_v57  }
  0x1d   :  { %1662 = vperm.xlu0 %3948, %v3267_v57  }
  0x1f   :  { %3505 = vmatmul.mubr.msk.f32.gmra.mrb[6].mxu0 %vm92_vm0, %v4138_v58 }
  0x20   :  { %3507 = vmatprep.mubr.msk.f32.mxu0 %vm92_vm0, %v4143_v59  ;;  %1657 = vperm.xlu1 %3951, %v3268_v60  }
  0x21   :  { %1666 = vperm.xlu0 %3948, %v3268_v60  }
  0x23   :  { %3508 = vmatmul.mubr.msk.f32.gmra.mrb[8].mxu0 %vm92_vm0, %v4155_v61 }
  0x24   :  { %3510 = vmatprep.mubr.msk.f32.mxu0 %vm92_vm0, %v4163_v63  ;;  %2430 = vperm.xlu1 %3951, %v3295_v3  }
  0x25   :  { %2440 = vperm.xlu0 %3948, %v3295_v3  }
  0x27   :  { %3511 = vmatmul.mubr.msk.f32.gmra.mrb[10].mxu0 %vm92_vm0, %v4180_v10 }
  0x28   :  { %3513 = vmatprep.mubr.msk.f32.mxu0 %vm92_vm0, %v4185_v11  ;;  %2435 = vperm.xlu1 %3951, %v3296_v12  }
  0x29   :  { %2444 = vperm.xlu0 %3948, %v3296_v12  }
  0x2b   :  { %3514 = vmatmul.mubr.msk.f32.gmra.mrb[12].mxu0 %vm92_vm0, %v4203_v8 }
  0x2c   :  { %3516 = vmatprep.mubr.msk.f32.mxu0 %vm92_vm0, %v4208_v9 }
  0x2f   :  { %3517 = vmatmul.mubr.msk.f32.gmra.mrb[14].mxu0 %vm92_vm0, %v36_v7 }
  0x30   :  { %3579 = vmatprep.mubr.msk.f32.mxu0 %vm92_vm0, %v4017_v1 }
  0x33   :  { %3580 = vmatmul.mubr.msk.f32.vlgmr.msra.gmra.mrb[16].mxu0 %vm92_vm0, %v4084_v41 }
  0x34   :  { %3886 = vmatpush3.bf16.msra.mxu0 %v3883_v53  ;;  %3582 = vmatprep.mubr.msk.f32.mxu0 %vm92_vm0, %v4093_v46 }
  0x35   :  { %3912 = vmatprep.subr.bf16.mxu0 %v3911_v20 }
  0x37   :  { %3583 = vmatmul.mubr.msk.f32.gmra.mrb[18].mxu0 %vm92_vm0, %v4104_v51 }
  0x38   :  { %3585 = vmatprep.mubr.msk.f32.mxu0 %vm92_vm0, %v4109_v52 }
  0x3b   :  { %3586 = vmatmul.mubr.msk.f32.gmra.mrb[20].mxu0 %vm92_vm0, %v4121_v55 }
  0x3c   :  { %3588 = vmatprep.mubr.msk.f32.mxu0 %vm92_vm0, %v4126_v56 }
  0x3f   :  { %3589 = vmatmul.mubr.msk.f32.gmra.mrb[22].mxu0 %vm92_vm0, %v4138_v58 }
  0x40   :  { %3591 = vmatprep.mubr.msk.f32.mxu0 %vm92_vm0, %v4143_v59 }
  0x43   :  { %3592 = vmatmul.mubr.msk.f32.gmra.mrb[24].mxu0 %vm92_vm0, %v4155_v61 }
  0x44   :  { %3594 = vmatprep.mubr.msk.f32.mxu0 %vm92_vm0, %v4163_v63 }
  0x47   :  { %3595 = vmatmul.mubr.msk.f32.gmra.mrb[26].mxu0 %vm92_vm0, %v4180_v10 }
  0x48   :  { %3597 = vmatprep.mubr.msk.f32.mxu0 %vm92_vm0, %v4185_v11 }
  0x4b   :  { %3598 = vmatmul.mubr.msk.f32.gmra.mrb[28].mxu0 %vm92_vm0, %v4203_v8 }
  0x4c   :  { %3600 = vmatprep.mubr.msk.f32.mxu0 %vm92_vm0, %v4208_v9 }
  0x4f   :  { %3601 = vmatmul.mubr.msk.f32.gmra.mrb[30].mxu0 %vm92_vm0, %v36_v7 }
  0x50   :  { %3663 = vmatprep.mubr.msk.f32.mxu0 %vm92_vm0, %v4017_v1 }
  0x53   :  { %3664 = vmatmul.mubr.msk.f32.vlgmr.msra.gmra.mrb[32].mxu0 %vm92_vm0, %v4084_v41 }
  0x54   :  { %3914 = vmatpush3.bf16.msra.mxu0 %v3911_v20  ;;  %3666 = vmatprep.mubr.msk.f32.mxu0 %vm92_vm0, %v4093_v46 }
  0x57   :  { %3667 = vmatmul.mubr.msk.f32.gmra.mrb[34].mxu0 %vm92_vm0, %v4104_v51 }
  0x58   :  { %3669 = vmatprep.mubr.msk.f32.mxu0 %vm92_vm0, %v4109_v52 }
  0x5b   :  { %3670 = vmatmul.mubr.msk.f32.gmra.mrb[36].mxu0 %vm92_vm0, %v4121_v55 }
  0x5c   :  { %3672 = vmatprep.mubr.msk.f32.mxu0 %vm92_vm0, %v4126_v56 }
  0x5f   :  { %3673 = vmatmul.mubr.msk.f32.gmra.mrb[38].mxu0 %vm92_vm0, %v4138_v58 }
  0x60   :  { %3675 = vmatprep.mubr.msk.f32.mxu0 %vm92_vm0, %v4143_v59 }
  0x63   :  { %3676 = vmatmul.mubr.msk.f32.gmra.mrb[40].mxu0 %vm92_vm0, %v4155_v61 }
  0x64   :  { %3678 = vmatprep.mubr.msk.f32.mxu0 %vm92_vm0, %v4163_v63 }
  0x67   :  { %3679 = vmatmul.mubr.msk.f32.gmra.mrb[42].mxu0 %vm92_vm0, %v4180_v10 }
  0x68   :  { %3681 = vmatprep.mubr.msk.f32.mxu0 %vm92_vm0, %v4185_v11 }
  0x6b   :  { %3682 = vmatmul.mubr.msk.f32.gmra.mrb[44].mxu0 %vm92_vm0, %v4203_v8 }
  0x6c   :  { %3684 = vmatprep.mubr.msk.f32.mxu0 %vm92_vm0, %v4208_v9 }
  0x6f   :  { %3685 = vmatmul.mubr.msk.f32.gmra.mrb[46].mxu0 %vm92_vm0, %v36_v7 }
  0x70   :  { %3747 = vmatprep.mubr.msk.f32.mxu0 %vm92_vm0, %v4017_v1 }
  0x73   :  { %3748 = vmatmul.mubr.msk.f32.vlgmr.msra.gmra.mrb[48].mxu0 %vm92_vm0, %v4084_v41 }
  0x74   :  { %3750 = vmatprep.mubr.msk.f32.mxu0 %vm92_vm0, %v4093_v46 }
  0x77   :  { %3751 = vmatmul.mubr.msk.f32.gmra.mrb[50].mxu0 %vm92_vm0, %v4104_v51 }
  0x78   :  { %3753 = vmatprep.mubr.msk.f32.mxu0 %vm92_vm0, %v4109_v52 }
  0x7b   :  { %3754 = vmatmul.mubr.msk.f32.gmra.mrb[52].mxu0 %vm92_vm0, %v4121_v55 }
  0x7c   :  { %3756 = vmatprep.mubr.msk.f32.mxu0 %vm92_vm0, %v4126_v56 }
  0x7f   :  { %3757 = vmatmul.mubr.msk.f32.gmra.mrb[54].mxu0 %vm92_vm0, %v4138_v58 }
  0x80   :  { %3759 = vmatprep.mubr.msk.f32.mxu0 %vm92_vm0, %v4143_v59 }
  0x83   :  { %3760 = vmatmul.mubr.msk.f32.gmra.mrb[56].mxu0 %vm92_vm0, %v4155_v61 }
  0x84   :  { %3762 = vmatprep.mubr.msk.f32.mxu0 %vm92_vm0, %v4163_v63  ;;  %v53_v23 = vpop.permute.xlu1 %52 }
  0x85   :  { %v48_v1 = vpop.permute.xlu0 %47 }
  0x86   :  { %vm49_vm3 = vcmp.eq.s32.totalorder %v4315_v24, %v48_v1 }
  0x87   :  { %3763 = vmatmul.mubr.msk.f32.gmra.mrb[58].mxu0 %vm92_vm0, %v4180_v10  ;;  %v55_v29 = vsel %vm49_vm3, %v53_v23, 0.0 }
  0x88   :  { %3765 = vmatprep.mubr.msk.f32.mxu0 %vm92_vm0, %v4185_v11 }
  0x8b   :  { %3766 = vmatmul.mubr.msk.f32.gmra.mrb[60].mxu0 %vm92_vm0, %v4203_v8 }
  0x8c   :  { %3768 = vmatprep.mubr.msk.f32.mxu0 %vm92_vm0, %v4208_v9 }
  0x8e   :  { %v62_v27 = vpop.permute.xlu1 %61 }
  0x8f   :  { %3769 = vmatmul.mubr.msk.f32.gmra.mrb[62].mxu0 %vm92_vm0, %v36_v7  ;;  %v58_v25 = vpop.permute.xlu0 %57 }
  0x90   :  { %vm59_vm4 = vcmp.eq.s32.totalorder %v4315_v24, %v58_v25 }
  0x91   :  { %v64_v30 = vsel %vm59_vm4, %v62_v27, 0.0 }
  0x92   :  { %v65_v33 = vadd.f32 %v64_v30, %v55_v29 }
  0x93   :  { %v875_v49 = vpop.permute.xlu1 %874 }
  0x94   :  { %v885_v51 = vpop.permute.xlu0 %884  ;;  %vm876_vm5 = vcmp.eq.s32.totalorder %v4315_v24, %v875_v49 }
  0x95   :  { %vm886_vm6 = vcmp.eq.s32.totalorder %v4315_v24, %v885_v51 }
  0x97   :  { %v880_v55 = vpop.permute.xlu1 %879 }
  0x98   :  { %v889_v57 = vpop.permute.xlu0 %888  ;;  %v882_v59 = vsel %vm876_vm5, %v880_v55, 0.0 }
  0x99   :  { %v891_v60 = vsel %vm886_vm6, %v889_v57, 0.0 }
  0x9a   :  { %v892_v63 = vadd.f32 %v891_v60, %v882_v59 }
  0x9b   :  { %v1653_v18 = vpop.permute.xlu1 %1652 }
  0x9c   :  { %v1663_v20 = vpop.permute.xlu0 %1662  ;;  %vm1654_vm7 = vcmp.eq.s32.totalorder %v4315_v24, %v1653_v18 }
  0x9d   :  { %vm1664_vm8 = vcmp.eq.s32.totalorder %v4315_v24, %v1663_v20 }
  0xe6   :  { %v3497_v26 = vpop.f32.mrb[0].mxu0 }
  0xe7   :  { %v207_v28 = vpop.f32.mrb[1].mxu0 }
  0xe8   :  { %v3832_v31 = vpack.c.bf16 %v3497_v26, %v207_v28  ;;  %v1658_v26 = vpop.permute.xlu1 %1657  ;;  %v1667_v28 = vpop.permute.xlu0 %1666 }
  0xe9   :  { %v1660_v30 = vsel %vm1654_vm7, %v1658_v26, 0.0 }
  0xea   :  { %v3500_v32 = vpop.f32.mrb[2].mxu0  ;;  %3833 = vmatpush3.bf16.msra.mxu1 %v3832_v31  ;;  %v1669_v31 = vsel %vm1664_vm8, %v1667_v28, 0.0 }
  0xeb   :  { %v217_v34 = vpop.f32.mrb[3].mxu0  ;;  %3834 = vmatprep.subr.bf16.mxu1 %v3978_v21 }
  0xec   :  { %v3835_v35 = vpack.c.bf16 %v3500_v32, %v217_v34  ;;  %v1670_v34 = vadd.f32 %v1669_v31, %v1660_v30 }
  0xed   :  { %3524 = vmatmul.mubr.msk.f32.vlgmr.msra.gmra.mrb[0].mxu1 %vm92_vm0, %v65_v33 }
  0xee   :  { %v3503_v0 = vpop.f32.mrb[4].mxu0  ;;  %3836 = vmatpush3.bf16.msra.mxu1 %v3835_v35  ;;  %3530 = vmatprep.mubr.msk.f32.mxu1 %vm3979_vm2, %v3980_v22 }
  0xef   :  { %v227_v36 = vpop.f32.mrb[5].mxu0  ;;  %3837 = vmatprep.subr.bf16.mxu1 %v3978_v21 }
  0xf0   :  { %v3838_v37 = vpack.c.bf16 %v3503_v0, %v227_v36 }
  0xf1   :  { %3531 = vmatmul.mubr.msk.f32.vlgmr.msra.gmra.mrb[2].mxu1 %vm92_vm0, %v65_v33 }
  0xf2   :  { %v3506_v38 = vpop.f32.mrb[6].mxu0  ;;  %3839 = vmatpush3.bf16.msra.mxu1 %v3838_v37  ;;  %3537 = vmatprep.mubr.msk.f32.mxu1 %vm3979_vm2, %v3980_v22 }
  0xf3   :  { %v237_v39 = vpop.f32.mrb[7].mxu0  ;;  %3840 = vmatprep.subr.bf16.mxu1 %v3978_v21 }
  0xf4   :  { %v3841_v40 = vpack.c.bf16 %v3506_v38, %v237_v39 }
  0xf5   :  { %3538 = vmatmul.mubr.msk.f32.vlgmr.msra.gmra.mrb[4].mxu1 %vm92_vm0, %v65_v33 }
  0xf6   :  { %v3509_v41 = vpop.f32.mrb[8].mxu0  ;;  %3842 = vmatpush3.bf16.msra.mxu1 %v3841_v40  ;;  %3544 = vmatprep.mubr.msk.f32.mxu1 %vm3979_vm2, %v3980_v22 }
  0xf7   :  { %v247_v42 = vpop.f32.mrb[9].mxu0  ;;  %3843 = vmatprep.subr.bf16.mxu1 %v3978_v21 }
  0xf8   :  { %v3844_v43 = vpack.c.bf16 %v3509_v41, %v247_v42 }
  0xf9   :  { %3545 = vmatmul.mubr.msk.f32.vlgmr.msra.gmra.mrb[6].mxu1 %vm92_vm0, %v65_v33 }
  0xfa   :  { %v3512_v44 = vpop.f32.mrb[10].mxu0  ;;  %3845 = vmatpush3.bf16.msra.mxu1 %v3844_v43  ;;  %3551 = vmatprep.mubr.msk.f32.mxu1 %vm3979_vm2, %v3980_v22 }
  0xfb   :  { %v257_v45 = vpop.f32.mrb[11].mxu0  ;;  %3846 = vmatprep.subr.bf16.mxu1 %v3978_v21 }
  0xfc   :  { %v3847_v46 = vpack.c.bf16 %v3512_v44, %v257_v45 }
  0xfd   :  { %3552 = vmatmul.mubr.msk.f32.vlgmr.msra.gmra.mrb[8].mxu1 %vm92_vm0, %v65_v33 }
  0xfe   :  { %v3515_v47 = vpop.f32.mrb[12].mxu0  ;;  %3848 = vmatpush3.bf16.msra.mxu1 %v3847_v46  ;;  %3558 = vmatprep.mubr.msk.f32.mxu1 %vm3979_vm2, %v3980_v22 }
  0xff   :  { %v267_v48 = vpop.f32.mrb[13].mxu0  ;;  %3849 = vmatprep.subr.bf16.mxu1 %v3978_v21 }
 0x100   :  { %v3850_v50 = vpack.c.bf16 %v3515_v47, %v267_v48  ;;  %v2431_v48 = vpop.permute.xlu1 %2430 }
 0x101   :  { %3559 = vmatmul.mubr.msk.f32.vlgmr.msra.gmra.mrb[10].mxu1 %vm92_vm0, %v65_v33  ;;  %vm2432_vm9 = vcmp.eq.s32.totalorder %v4315_v24, %v2431_v48 }
 0x102   :  { %v3518_v52 = vpop.f32.mrb[14].mxu0  ;;  %3851 = vmatpush3.bf16.msra.mxu1 %v3850_v50  ;;  %3565 = vmatprep.mubr.msk.f32.mxu1 %vm3979_vm2, %v3980_v22  ;;  %v2441_v50 = vpop.permute.xlu0 %2440 }
 0x103   :  { %v277_v53 = vpop.f32.mrb[15].mxu0  ;;  %3852 = vmatprep.subr.bf16.mxu1 %v3978_v21  ;;  %vm2442_vm10 = vcmp.eq.s32.totalorder %v4315_v24, %v2441_v50 }
 0x104   :  { %v3853_v54 = vpack.c.bf16 %v3518_v52, %v277_v53 }
 0x105   :  { %3566 = vmatmul.mubr.msk.f32.vlgmr.msra.gmra.mrb[12].mxu1 %vm92_vm0, %v65_v33 }
 0x106   :  { %3854 = vmatpush3.bf16.msra.mxu1 %v3853_v54  ;;  %v3581_v56 = vpop.f32.mrb[16].mxu0  ;;  %3572 = vmatprep.mubr.msk.f32.mxu1 %vm3979_vm2, %v3980_v22  ;;  %v2445_v57 = vpop.permute.xlu0 %2444 }
 0x107   :  { %v985_v58 = vpop.f32.mrb[17].mxu0  ;;  %3859 = vmatprep.subr.bf16.mxu1 %v3978_v21 }
 0x108   :  { %v3860_v61 = vpack.c.bf16 %v3581_v56, %v985_v58  ;;  %v2436_v56 = vpop.permute.xlu1 %2435 }
 0x109   :  { %3573 = vmatmul.mubr.msk.f32.vlgmr.msra.gmra.mrb[14].mxu1 %vm92_vm0, %v65_v33  ;;  %v2438_v60 = vsel %vm2432_vm9, %v2436_v56, 0.0 }
 0x10a   :  { %v3584_v62 = vpop.f32.mrb[18].mxu0  ;;  %3861 = vmatpush3.bf16.msra.mxu1 %v3860_v61  ;;  %3607 = vmatprep.mubr.msk.f32.mxu1 %vm3979_vm2, %v3980_v22  ;;  %v2447_v61 = vsel %vm2442_vm10, %v2445_v57, 0.0 }
 0x10b   :  { %v995_v3 = vpop.f32.mrb[19].mxu0  ;;  %3862 = vmatprep.subr.bf16.mxu1 %v3978_v21  ;;  %v2448_v24 = vadd.f32 %v2447_v61, %v2438_v60 }
 0x10c   :  { %v3863_v4 = vpack.c.bf16 %v3584_v62, %v995_v3 }
 0x10d   :  { %3608 = vmatmul.mubr.msk.f32.vlgmr.msra.gmra.mrb[16].mxu1 %vm92_vm0, %v892_v63 }
 0x10e   :  { %v3587_v5 = vpop.f32.mrb[20].mxu0  ;;  %3864 = vmatpush3.bf16.msra.mxu1 %v3863_v4  ;;  %3614 = vmatprep.mubr.msk.f32.mxu1 %vm3979_vm2, %v3980_v22 }
 0x10f   :  { %v1005_v6 = vpop.f32.mrb[21].mxu0  ;;  %3865 = vmatprep.subr.bf16.mxu1 %v3978_v21 }
 0x110   :  { %v3866_v10 = vpack.c.bf16 %v3587_v5, %v1005_v6 }
 0x111   :  { %3615 = vmatmul.mubr.msk.f32.vlgmr.msra.gmra.mrb[18].mxu1 %vm92_vm0, %v892_v63 }
 0x112   :  { %v3590_v11 = vpop.f32.mrb[22].mxu0  ;;  %3867 = vmatpush3.bf16.msra.mxu1 %v3866_v10  ;;  %3621 = vmatprep.mubr.msk.f32.mxu1 %vm3979_vm2, %v3980_v22 }
 0x113   :  { %v1015_v12 = vpop.f32.mrb[23].mxu0  ;;  %3868 = vmatprep.subr.bf16.mxu1 %v3978_v21 }
 0x114   :  { %v3869_v13 = vpack.c.bf16 %v3590_v11, %v1015_v12 }
 0x115   :  { %3622 = vmatmul.mubr.msk.f32.vlgmr.msra.gmra.mrb[20].mxu1 %vm92_vm0, %v892_v63 }
 0x116   :  { %v3593_v14 = vpop.f32.mrb[24].mxu0  ;;  %3870 = vmatpush3.bf16.msra.mxu1 %v3869_v13  ;;  %3628 = vmatprep.mubr.msk.f32.mxu1 %vm3979_vm2, %v3980_v22 }
 0x117   :  { %v1025_v8 = vpop.f32.mrb[25].mxu0  ;;  %3871 = vmatprep.subr.bf16.mxu1 %v3978_v21 }
 0x118   :  { %v3872_v9 = vpack.c.bf16 %v3593_v14, %v1025_v8 }
 0x119   :  { %3629 = vmatmul.mubr.msk.f32.vlgmr.msra.gmra.mrb[22].mxu1 %vm92_vm0, %v892_v63 }
 0x11a   :  { %v3596_v15 = vpop.f32.mrb[26].mxu0  ;;  %3873 = vmatpush3.bf16.msra.mxu1 %v3872_v9  ;;  %3635 = vmatprep.mubr.msk.f32.mxu1 %vm3979_vm2, %v3980_v22 }
 0x11b   :  { %v1035_v16 = vpop.f32.mrb[27].mxu0  ;;  %3874 = vmatprep.subr.bf16.mxu1 %v3978_v21 }
 0x11c   :  { %v3875_v2 = vpack.c.bf16 %v3596_v15, %v1035_v16 }
 0x11d   :  { %3636 = vmatmul.mubr.msk.f32.vlgmr.msra.gmra.mrb[24].mxu1 %vm92_vm0, %v892_v63 }
 0x11e   :  { %v3599_v17 = vpop.f32.mrb[28].mxu0  ;;  %3876 = vmatpush3.bf16.msra.mxu1 %v3875_v2  ;;  %3642 = vmatprep.mubr.msk.f32.mxu1 %vm3979_vm2, %v3980_v22 }
 0x11f   :  { %v1045_v7 = vpop.f32.mrb[29].mxu0  ;;  %3877 = vmatprep.subr.bf16.mxu1 %v3978_v21 }
 0x120   :  { %v3878_v19 = vpack.c.bf16 %v3599_v17, %v1045_v7 }
 0x121   :  { %3643 = vmatmul.mubr.msk.f32.vlgmr.msra.gmra.mrb[26].mxu1 %vm92_vm0, %v892_v63 }
 0x122   :  { %v3602_v1 = vpop.f32.mrb[30].mxu0  ;;  %3879 = vmatpush3.bf16.msra.mxu1 %v3878_v19  ;;  %3649 = vmatprep.mubr.msk.f32.mxu1 %vm3979_vm2, %v3980_v22 }
 0x123   :  { %v1055_v23 = vpop.f32.mrb[31].mxu0  ;;  %3880 = vmatprep.subr.bf16.mxu1 %v3978_v21 }
 0x124   :  { %v3881_v25 = vpack.c.bf16 %v3602_v1, %v1055_v23 }
 0x125   :  { %3650 = vmatmul.mubr.msk.f32.vlgmr.msra.gmra.mrb[28].mxu1 %vm92_vm0, %v892_v63 }
 0x126   :  { %3882 = vmatpush3.bf16.msra.mxu1 %v3881_v25  ;;  %v3665_v27 = vpop.f32.mrb[32].mxu0  ;;  %3656 = vmatprep.mubr.msk.f32.mxu1 %vm3979_vm2, %v3980_v22 }
 0x127   :  { %v1763_v29 = vpop.f32.mrb[33].mxu0  ;;  %3887 = vmatprep.subr.bf16.mxu1 %v3978_v21 }
 0x128   :  { %v3888_v32 = vpack.c.bf16 %v3665_v27, %v1763_v29 }
 0x129   :  { %3657 = vmatmul.mubr.msk.f32.vlgmr.msra.gmra.mrb[30].mxu1 %vm92_vm0, %v892_v63 }
 0x12a   :  { %v3668_v33 = vpop.f32.mrb[34].mxu0  ;;  %3889 = vmatpush3.bf16.msra.mxu1 %v3888_v32  ;;  %3691 = vmatprep.mubr.msk.f32.mxu1 %vm3979_vm2, %v3980_v22 }
 0x12b   :  { %v1773_v35 = vpop.f32.mrb[35].mxu0  ;;  %3890 = vmatprep.subr.bf16.mxu1 %v3978_v21 }
 0x12c   :  { %v3891_v0 = vpack.c.bf16 %v3668_v33, %v1773_v35 }
 0x12d   :  { %3692 = vmatmul.mubr.msk.f32.vlgmr.msra.gmra.mrb[32].mxu1 %vm92_vm0, %v1670_v34 }
 0x12e   :  { %v3671_v36 = vpop.f32.mrb[36].mxu0  ;;  %3892 = vmatpush3.bf16.msra.mxu1 %v3891_v0  ;;  %3698 = vmatprep.mubr.msk.f32.mxu1 %vm3979_vm2, %v3980_v22 }
 0x12f   :  { %v1783_v37 = vpop.f32.mrb[37].mxu0  ;;  %3893 = vmatprep.subr.bf16.mxu1 %v3978_v21 }
 0x130   :  { %v3894_v38 = vpack.c.bf16 %v3671_v36, %v1783_v37 }
 0x131   :  { %3699 = vmatmul.mubr.msk.f32.vlgmr.msra.gmra.mrb[34].mxu1 %vm92_vm0, %v1670_v34 }
 0x132   :  { %v3674_v39 = vpop.f32.mrb[38].mxu0  ;;  %3895 = vmatpush3.bf16.msra.mxu1 %v3894_v38  ;;  %3705 = vmatprep.mubr.msk.f32.mxu1 %vm3979_vm2, %v3980_v22 }
 0x133   :  { %v1793_v40 = vpop.f32.mrb[39].mxu0  ;;  %3896 = vmatprep.subr.bf16.mxu1 %v3978_v21 }
 0x134   :  { %v3897_v41 = vpack.c.bf16 %v3674_v39, %v1793_v40 }
 0x135   :  { %3706 = vmatmul.mubr.msk.f32.vlgmr.msra.gmra.mrb[36].mxu1 %vm92_vm0, %v1670_v34 }
 0x136   :  { %v3677_v42 = vpop.f32.mrb[40].mxu0  ;;  %3898 = vmatpush3.bf16.msra.mxu1 %v3897_v41  ;;  %3712 = vmatprep.mubr.msk.f32.mxu1 %vm3979_vm2, %v3980_v22 }
 0x137   :  { %v1803_v43 = vpop.f32.mrb[41].mxu0  ;;  %3899 = vmatprep.subr.bf16.mxu1 %v3978_v21 }
 0x138   :  { %v3900_v44 = vpack.c.bf16 %v3677_v42, %v1803_v43 }
 0x139   :  { %3713 = vmatmul.mubr.msk.f32.vlgmr.msra.gmra.mrb[38].mxu1 %vm92_vm0, %v1670_v34 }
 0x13a   :  { %v3680_v45 = vpop.f32.mrb[42].mxu0  ;;  %3901 = vmatpush3.bf16.msra.mxu1 %v3900_v44  ;;  %3719 = vmatprep.mubr.msk.f32.mxu1 %vm3979_vm2, %v3980_v22 }
 0x13b   :  { %v1813_v46 = vpop.f32.mrb[43].mxu0  ;;  %3902 = vmatprep.subr.bf16.mxu1 %v3978_v21 }
 0x13c   :  { %v3903_v47 = vpack.c.bf16 %v3680_v45, %v1813_v46 }
 0x13d   :  { %3720 = vmatmul.mubr.msk.f32.vlgmr.msra.gmra.mrb[40].mxu1 %vm92_vm0, %v1670_v34 }
 0x13e   :  { %v3683_v49 = vpop.f32.mrb[44].mxu0  ;;  %3904 = vmatpush3.bf16.msra.mxu1 %v3903_v47  ;;  %3726 = vmatprep.mubr.msk.f32.mxu1 %vm3979_vm2, %v3980_v22 }
 0x13f   :  { %v1823_v51 = vpop.f32.mrb[45].mxu0  ;;  %3905 = vmatprep.subr.bf16.mxu1 %v3978_v21 }
 0x140   :  { %v3906_v52 = vpack.c.bf16 %v3683_v49, %v1823_v51 }
 0x141   :  { %3727 = vmatmul.mubr.msk.f32.vlgmr.msra.gmra.mrb[42].mxu1 %vm92_vm0, %v1670_v34 }
 0x142   :  { %v3686_v53 = vpop.f32.mrb[46].mxu0  ;;  %3907 = vmatpush3.bf16.msra.mxu1 %v3906_v52  ;;  %3733 = vmatprep.mubr.msk.f32.mxu1 %vm3979_vm2, %v3980_v22 }
 0x143   :  { %v1833_v54 = vpop.f32.mrb[47].mxu0  ;;  %3908 = vmatprep.subr.bf16.mxu1 %v3978_v21 }
 0x144   :  { %v3909_v55 = vpack.c.bf16 %v3686_v53, %v1833_v54 }
 0x145   :  { %3734 = vmatmul.mubr.msk.f32.vlgmr.msra.gmra.mrb[44].mxu1 %vm92_vm0, %v1670_v34 }
 0x146   :  { %3910 = vmatpush3.bf16.msra.mxu1 %v3909_v55  ;;  %v3749_v58 = vpop.f32.mrb[48].mxu0  ;;  %3740 = vmatprep.mubr.msk.f32.mxu1 %vm3979_vm2, %v3980_v22 }
 0x147   :  { %v2541_v59 = vpop.f32.mrb[49].mxu0  ;;  %3915 = vmatprep.subr.bf16.mxu1 %v3978_v21 }
 0x148   :  { %v3916_v62 = vpack.c.bf16 %v3749_v58, %v2541_v59 }
 0x149   :  { %3741 = vmatmul.mubr.msk.f32.vlgmr.msra.gmra.mrb[46].mxu1 %vm92_vm0, %v1670_v34 }
 0x14a   :  { %v3752_v63 = vpop.f32.mrb[50].mxu0  ;;  %3917 = vmatpush3.bf16.msra.mxu1 %v3916_v62  ;;  %3775 = vmatprep.mubr.msk.f32.mxu1 %vm3979_vm2, %v3980_v22 }
 0x14b   :  { %v2551_v3 = vpop.f32.mrb[51].mxu0  ;;  %3918 = vmatprep.subr.bf16.mxu1 %v3978_v21 }
 0x14c   :  { %v3919_v4 = vpack.c.bf16 %v3752_v63, %v2551_v3 }
 0x14d   :  { %3776 = vmatmul.mubr.msk.f32.vlgmr.msra.gmra.mrb[48].mxu1 %vm92_vm0, %v2448_v24 }
 0x14e   :  { %v3755_v5 = vpop.f32.mrb[52].mxu0  ;;  %3920 = vmatpush3.bf16.msra.mxu1 %v3919_v4  ;;  %3782 = vmatprep.mubr.msk.f32.mxu1 %vm3979_vm2, %v3980_v22 }
 0x14f   :  { %v2561_v6 = vpop.f32.mrb[53].mxu0  ;;  %3921 = vmatprep.subr.bf16.mxu1 %v3978_v21 }
 0x150   :  { %v3922_v10 = vpack.c.bf16 %v3755_v5, %v2561_v6 }
 0x151   :  { %3783 = vmatmul.mubr.msk.f32.vlgmr.msra.gmra.mrb[50].mxu1 %vm92_vm0, %v2448_v24 }
 0x152   :  { %v3758_v11 = vpop.f32.mrb[54].mxu0  ;;  %3923 = vmatpush3.bf16.msra.mxu1 %v3922_v10  ;;  %3789 = vmatprep.mubr.msk.f32.mxu1 %vm3979_vm2, %v3980_v22 }
 0x153   :  { %v2571_v12 = vpop.f32.mrb[55].mxu0  ;;  %3924 = vmatprep.subr.bf16.mxu1 %v3978_v21 }
 0x154   :  { %v3925_v13 = vpack.c.bf16 %v3758_v11, %v2571_v12 }
 0x155   :  { %3790 = vmatmul.mubr.msk.f32.vlgmr.msra.gmra.mrb[52].mxu1 %vm92_vm0, %v2448_v24 }
 0x156   :  { %v3761_v14 = vpop.f32.mrb[56].mxu0  ;;  %3926 = vmatpush3.bf16.msra.mxu1 %v3925_v13  ;;  %3796 = vmatprep.mubr.msk.f32.mxu1 %vm3979_vm2, %v3980_v22 }
 0x157   :  { %v2581_v8 = vpop.f32.mrb[57].mxu0  ;;  %3927 = vmatprep.subr.bf16.mxu1 %v3978_v21 }
 0x158   :  { %v3928_v9 = vpack.c.bf16 %v3761_v14, %v2581_v8 }
 0x159   :  { %3797 = vmatmul.mubr.msk.f32.vlgmr.msra.gmra.mrb[54].mxu1 %vm92_vm0, %v2448_v24 }
 0x15a   :  { %v3764_v15 = vpop.f32.mrb[58].mxu0  ;;  %3929 = vmatpush3.bf16.msra.mxu1 %v3928_v9  ;;  %3803 = vmatprep.mubr.msk.f32.mxu1 %vm3979_vm2, %v3980_v22 }
 0x15b   :  { %v2591_v16 = vpop.f32.mrb[59].mxu0  ;;  %3930 = vmatprep.subr.bf16.mxu1 %v3978_v21 }
 0x15c   :  { %v3931_v2 = vpack.c.bf16 %v3764_v15, %v2591_v16 }
 0x15d   :  { %3804 = vmatmul.mubr.msk.f32.vlgmr.msra.gmra.mrb[56].mxu1 %vm92_vm0, %v2448_v24 }
 0x15e   :  { %v3767_v17 = vpop.f32.mrb[60].mxu0  ;;  %3932 = vmatpush3.bf16.msra.mxu1 %v3931_v2  ;;  %3810 = vmatprep.mubr.msk.f32.mxu1 %vm3979_vm2, %v3980_v22 }
 0x15f   :  { %v2601_v7 = vpop.f32.mrb[61].mxu0  ;;  %3933 = vmatprep.subr.bf16.mxu1 %v3978_v21 }
 0x160   :  { %v3934_v18 = vpack.c.bf16 %v3767_v17, %v2601_v7 }
 0x161   :  { %3811 = vmatmul.mubr.msk.f32.vlgmr.msra.gmra.mrb[58].mxu1 %vm92_vm0, %v2448_v24 }
 0x162   :  { %v3770_v19 = vpop.f32.mrb[62].mxu0  ;;  %3935 = vmatpush3.bf16.msra.mxu1 %v3934_v18  ;;  %3817 = vmatprep.mubr.msk.f32.mxu1 %vm3979_vm2, %v3980_v22 }
 0x163   :  { %v2611_v20 = vpop.f32.mrb[63].mxu0  ;;  %3936 = vmatprep.subr.bf16.mxu1 %v3978_v21 }
 0x164   :  { %v3937_v1 = vpack.c.bf16 %v3770_v19, %v2611_v20 }
 0x165   :  { %3818 = vmatmul.mubr.msk.f32.vlgmr.msra.gmra.mrb[60].mxu1 %vm92_vm0, %v2448_v24 }
 0x166   :  { %3938 = vmatpush3.bf16.msra.mxu1 %v3937_v1  ;;  %3824 = vmatprep.mubr.msk.f32.mxu1 %vm3979_vm2, %v3980_v22 }
 0x169   :  { %3825 = vmatmul.mubr.msk.f32.vlgmr.msra.gmra.mrb[62].mxu1 %vm92_vm0, %v2448_v24 }
 0x1c0   :  { %v355_v23 = vpop.f32.mrb[0].mxu1 }
 0x1c1   :  { %360 = vst.msk [vmem:[#allocation2] sm:$0xff] %vm359_vm11, %v355_v23  ;;  %v3525_v25 = vpop.f32.mrb[1].mxu1 }
 0x1c4   :  { %v427_v26 = vpop.f32.mrb[2].mxu1 }
 0x1c5   :  { %432 = vst.msk [vmem:[#allocation2 + $0x8] sm:$0xff] %vm359_vm11, %v427_v26  ;;  %v3532_v27 = vpop.f32.mrb[3].mxu1 }
 0x1c8   :  { %v499_v28 = vpop.f32.mrb[4].mxu1 }
 0x1c9   :  { %504 = vst.msk [vmem:[#allocation2 + $0x10] sm:$0xff] %vm359_vm11, %v499_v28  ;;  %v3539_v21 = vpop.f32.mrb[5].mxu1 }
 0x1cc   :  { %v571_v29 = vpop.f32.mrb[6].mxu1 }
 0x1cd   :  { %576 = vst.msk [vmem:[#allocation2 + $0x18] sm:$0xff] %vm359_vm11, %v571_v29  ;;  %v3546_v30 = vpop.f32.mrb[7].mxu1 }
 0x1d0   :  { %v643_v22 = vpop.f32.mrb[8].mxu1 }
 0x1d1   :  { %648 = vst.msk [vmem:[#allocation2 + $0x20] sm:$0xff] %vm359_vm11, %v643_v22  ;;  %v3553_v31 = vpop.f32.mrb[9].mxu1 }
 0x1d4   :  { %v715_v32 = vpop.f32.mrb[10].mxu1 }
 0x1d5   :  { %720 = vst.msk [vmem:[#allocation2 + $0x28] sm:$0xff] %vm359_vm11, %v715_v32  ;;  %v3560_v33 = vpop.f32.mrb[11].mxu1 }
 0x1d8   :  { %v787_v34 = vpop.f32.mrb[12].mxu1 }
 0x1d9   :  { %792 = vst.msk [vmem:[#allocation2 + $0x30] sm:$0xff] %vm359_vm11, %v787_v34  ;;  %v3567_v35 = vpop.f32.mrb[13].mxu1 }
 0x1dc   :  { %v859_v0 = vpop.f32.mrb[14].mxu1 }
 0x1dd   :  { %864 = vst.msk [vmem:[#allocation2 + $0x38] sm:$0xff] %vm359_vm11, %v859_v0  ;;  %v3574_v36 = vpop.f32.mrb[15].mxu1 }
 0x1e0   :  { %v1133_v37 = vpop.f32.mrb[16].mxu1 }
 0x1e1   :  { %1138 = vst.msk [vmem:[#allocation2 + $0x40] sm:$0xff] %vm359_vm11, %v1133_v37  ;;  %v3609_v38 = vpop.f32.mrb[17].mxu1 }
 0x1e4   :  { %v1205_v39 = vpop.f32.mrb[18].mxu1 }
 0x1e5   :  { %1210 = vst.msk [vmem:[#allocation2 + $0x48] sm:$0xff] %vm359_vm11, %v1205_v39  ;;  %v3616_v40 = vpop.f32.mrb[19].mxu1 }
 0x1e8   :  { %v1277_v41 = vpop.f32.mrb[20].mxu1 }
 0x1e9   :  { %1282 = vst.msk [vmem:[#allocation2 + $0x50] sm:$0xff] %vm359_vm11, %v1277_v41  ;;  %v3623_v42 = vpop.f32.mrb[21].mxu1 }
 0x1ec   :  { %v1349_v43 = vpop.f32.mrb[22].mxu1 }
 0x1ed   :  { %1354 = vst.msk [vmem:[#allocation2 + $0x58] sm:$0xff] %vm359_vm11, %v1349_v43  ;;  %v3630_v44 = vpop.f32.mrb[23].mxu1 }
 0x1f0   :  { %v1421_v45 = vpop.f32.mrb[24].mxu1 }
 0x1f1   :  { %1426 = vst.msk [vmem:[#allocation2 + $0x60] sm:$0xff] %vm359_vm11, %v1421_v45  ;;  %v3637_v46 = vpop.f32.mrb[25].mxu1 }
 0x1f4   :  { %v1493_v47 = vpop.f32.mrb[26].mxu1 }
 0x1f5   :  { %1498 = vst.msk [vmem:[#allocation2 + $0x68] sm:$0xff] %vm359_vm11, %v1493_v47  ;;  %v3644_v48 = vpop.f32.mrb[27].mxu1 }
 0x1f8   :  { %v1565_v49 = vpop.f32.mrb[28].mxu1 }
 0x1f9   :  { %1570 = vst.msk [vmem:[#allocation2 + $0x70] sm:$0xff] %vm359_vm11, %v1565_v49  ;;  %v3651_v50 = vpop.f32.mrb[29].mxu1 }
 0x1fc   :  { %v1637_v51 = vpop.f32.mrb[30].mxu1 }
 0x1fd   :  { %1642 = vst.msk [vmem:[#allocation2 + $0x78] sm:$0xff] %vm359_vm11, %v1637_v51  ;;  %v3658_v52 = vpop.f32.mrb[31].mxu1 }
 0x200   :  { %v1911_v53 = vpop.f32.mrb[32].mxu1 }
 0x201   :  { %1916 = vst.msk [vmem:[#allocation2 + $0x80] sm:$0xff] %vm359_vm11, %v1911_v53  ;;  %v3693_v54 = vpop.f32.mrb[33].mxu1 }
 0x204   :  { %v1983_v55 = vpop.f32.mrb[34].mxu1 }
 0x205   :  { %1988 = vst.msk [vmem:[#allocation2 + $0x88] sm:$0xff] %vm359_vm11, %v1983_v55  ;;  %v3700_v56 = vpop.f32.mrb[35].mxu1 }
 0x208   :  { %v2055_v57 = vpop.f32.mrb[36].mxu1 }
 0x209   :  { %2060 = vst.msk [vmem:[#allocation2 + $0x90] sm:$0xff] %vm359_vm11, %v2055_v57  ;;  %v3707_v58 = vpop.f32.mrb[37].mxu1 }
 0x20c   :  { %v2127_v59 = vpop.f32.mrb[38].mxu1 }
 0x20d   :  { %2132 = vst.msk [vmem:[#allocation2 + $0x98] sm:$0xff] %vm359_vm11, %v2127_v59  ;;  %v3714_v60 = vpop.f32.mrb[39].mxu1 }
 0x210   :  { %v2199_v61 = vpop.f32.mrb[40].mxu1 }
 0x211   :  { %2204 = vst.msk [vmem:[#allocation2 + $0xa0] sm:$0xff] %vm359_vm11, %v2199_v61  ;;  %v3721_v62 = vpop.f32.mrb[41].mxu1 }
 0x214   :  { %v2271_v63 = vpop.f32.mrb[42].mxu1 }
 0x215   :  { %2276 = vst.msk [vmem:[#allocation2 + $0xa8] sm:$0xff] %vm359_vm11, %v2271_v63  ;;  %v3728_v24 = vpop.f32.mrb[43].mxu1 }
 0x218   :  { %v2343_v3 = vpop.f32.mrb[44].mxu1 }
 0x219   :  { %2348 = vst.msk [vmem:[#allocation2 + $0xb0] sm:$0xff] %vm359_vm11, %v2343_v3  ;;  %v3735_v4 = vpop.f32.mrb[45].mxu1 }
 0x21c   :  { %v2415_v5 = vpop.f32.mrb[46].mxu1 }
 0x21d   :  { %2420 = vst.msk [vmem:[#allocation2 + $0xb8] sm:$0xff] %vm359_vm11, %v2415_v5  ;;  %v3742_v6 = vpop.f32.mrb[47].mxu1 }
 0x220   :  { %v2689_v10 = vpop.f32.mrb[48].mxu1 }
 0x221   :  { %2694 = vst.msk [vmem:[#allocation2 + $0xc0] sm:$0xff] %vm359_vm11, %v2689_v10  ;;  %v3777_v11 = vpop.f32.mrb[49].mxu1 }
 0x224   :  { %v2761_v12 = vpop.f32.mrb[50].mxu1 }
 0x225   :  { %2766 = vst.msk [vmem:[#allocation2 + $0xc8] sm:$0xff] %vm359_vm11, %v2761_v12  ;;  %v3784_v13 = vpop.f32.mrb[51].mxu1 }
 0x228   :  { %v2833_v14 = vpop.f32.mrb[52].mxu1 }
 0x229   :  { %2838 = vst.msk [vmem:[#allocation2 + $0xd0] sm:$0xff] %vm359_vm11, %v2833_v14  ;;  %v3791_v8 = vpop.f32.mrb[53].mxu1 }
 0x22c   :  { %v2905_v9 = vpop.f32.mrb[54].mxu1 }
 0x22d   :  { %2910 = vst.msk [vmem:[#allocation2 + $0xd8] sm:$0xff] %vm359_vm11, %v2905_v9  ;;  %v3798_v15 = vpop.f32.mrb[55].mxu1 }
 0x230   :  { %v2977_v16 = vpop.f32.mrb[56].mxu1 }
 0x231   :  { %2982 = vst.msk [vmem:[#allocation2 + $0xe0] sm:$0xff] %vm359_vm11, %v2977_v16  ;;  %v3805_v2 = vpop.f32.mrb[57].mxu1 }
 0x234   :  { %v3049_v17 = vpop.f32.mrb[58].mxu1 }
 0x235   :  { %3054 = vst.msk [vmem:[#allocation2 + $0xe8] sm:$0xff] %vm359_vm11, %v3049_v17  ;;  %v3812_v7 = vpop.f32.mrb[59].mxu1 }
 0x238   :  { %v3121_v18 = vpop.f32.mrb[60].mxu1 }
 0x239   :  { %3126 = vst.msk [vmem:[#allocation2 + $0xf0] sm:$0xff] %vm359_vm11, %v3121_v18  ;;  %v3819_v19 = vpop.f32.mrb[61].mxu1 }
 0x23c   :  { %v3193_v20 = vpop.f32.mrb[62].mxu1 }
 0x23d   :  { %3198 = vst.msk [vmem:[#allocation2 + $0xf8] sm:$0xff] %vm359_vm11, %v3193_v20  ;;  %v3826_v1 = vpop.f32.mrb[63].mxu1 }
 0x23e   :  { %3963 = shalt.err (!%p3960_p4)
}
 0x23f   :  { %s3964_s7 = scalar_lea.hbm %s4499_s5, 4096 }
 0x240   :  { %p3965_p5 = scmp.ne.s32.totalorder %s4499_s5, %s3964_s7  ;;  %p3968_p6 = scmp.lt.u32.totalorder %s3964_s7, %s4499_s5 }
 0x242   :  { %p3970_p7 = pnand %p3968_p6, %p3965_p5 }
 0x244   :  { %3973 = shalt.err (!%p3970_p7)
}
 0x245   :  { %s3982_s12 = smov 128   ;;  %s3983_s13 = smov 8  }
 0x246   :  { %3210 = dma.vmem_to_hbm [thread:$0]  %s3205_s28, 4096, %s4499_s5, [#allocation3], %s3982_s12, %s3982_s12, %s3983_s13  }
 0x247   :  { %3974 = dma.done.wait [#allocation3], 4096  }
 0x248   :  { %3975 = vsyncadd [#allocation3], 4294963200 }
 0x249   :  { %3214 = vsyncpa [#allocation3], 1 }

</bundles_post_ra>
